<compile_context>
chip_gen: v6e
topology: v6e:2x2x1
jax: 0.10.0
libtpu: 0.0.40
codegen_flags: <defaults>
</compile_context>

<pallas_src>
import jax
import jax.numpy as jnp
from jax import lax
from jax.experimental import pallas as pl
from jax.experimental.pallas import tpu as pltpu

# ----------------------------- config (small) -----------------------------
B = 2          # batch
T = 8          # decoder (target) sequence length
S_ENC = 16     # encoder (source) sequence length
D = 32         # d_model
H = 4          # decoder_attention_heads
HD = D // H    # head_dim
FFN = 64       # decoder_ffn_dim
EPS = 1e-5
LANE = 128     # TPU lane width


def _round_up(n, m):
    return ((n + m - 1) // m) * m


# ----------------------------- in-kernel helpers ---------------------------
def _layer_norm(h, g, b):
    """LayerNorm over the last dim.  h: (T, D), g/b: (1, D)."""
    mu = jnp.mean(h, axis=-1, keepdims=True)
    var = jnp.mean((h - mu) ** 2, axis=-1, keepdims=True)
    return (h - mu) * lax.rsqrt(var + EPS) * g + b


def _attention(x, kv, mask, w_qkv, b_q, b_k, b_v, w_o, b_o, *, fused_qkv):
    """Multi-head attention for one batch element (2-D ops only).

    x:     (T, D)  query-side hidden states
    kv:    (S, D)  key/value-side hidden states
    mask:  (T, S)  additive attention mask
    w_qkv: (D, 3D) columns ordered [Wq | Wk | Wv]
    b_q/b_k/b_v/b_o: (1, D)
    w_o:   (D, D)
    fused_qkv: if True (self-attention, kv is x), a single (T,D)x(D,3D) GEMM
               computes Q, K, V at once; otherwise one q-side GEMM and one
               packed kv-side GEMM.
    """
    d = x.shape[-1]
    hd = d // H
    scale = hd ** -0.5

    if fused_qkv:
        qkv = jnp.dot(x, w_qkv, preferred_element_type=jnp.float32)       # (T, 3D)
        q = qkv[:, :d] + b_q
        k = qkv[:, d:2 * d] + b_k
        v = qkv[:, 2 * d:] + b_v
    else:
        q = jnp.dot(x, w_qkv[:, :d], preferred_element_type=jnp.float32) + b_q
        kvp = jnp.dot(kv, w_qkv[:, d:], preferred_element_type=jnp.float32)  # (S, 2D)
        k = kvp[:, :d] + b_k
        v = kvp[:, d:] + b_v

    q = q * scale  # Bart scales queries after the bias add

    # Per-head scores/softmax/context.  These pushes are inherently per-head
    # (same MXU push count as a head-batched dot_general); the static Python
    # loop just keeps every op a simple 2-D contraction.
    ctx_heads = []
    for h in range(H):
        sl = slice(h * hd, (h + 1) * hd)
        qh, kh, vh = q[:, sl], k[:, sl], v[:, sl]
        s = lax.dot_general(qh, kh, (((1,), (1,)), ((), ())),
                            preferred_element_type=jnp.float32)           # (T, S)
        s = s + mask
        s = s - jnp.max(s, axis=-1, keepdims=True)
        p = jnp.exp(s)
        inv = 1.0 / jnp.sum(p, axis=-1, keepdims=True)   # one divide per row
        p = p * inv
        ctx_heads.append(jnp.dot(p, vh, preferred_element_type=jnp.float32))  # (T, HD)

    ctx = jnp.concatenate(ctx_heads, axis=-1)                              # (T, D)
    return jnp.dot(ctx, w_o, preferred_element_type=jnp.float32) + b_o     # (T, D)


# ----------------------------- fused layer kernel --------------------------
def _bart_layer_kernel(hs_ref, enc_ref, smask_ref, cmask_ref,
                       qkv_w_ref, out_w_ref, ffn_w_ref, fc1_b_ref, dvec_ref,
                       o_ref):
    Bq, Tq, Dm = hs_ref.shape

    dv = dvec_ref[...]          # (15, D) packed D-length vectors (see wrapper)
    fc1_b = fc1_b_ref[...]      # (1, FFN)
    w_qkv_sa = qkv_w_ref[0]     # (D, 3D)
    w_qkv_ca = qkv_w_ref[1]
    w_o_sa = out_w_ref[0]       # (D, D)
    w_o_ca = out_w_ref[1]
    w_fc1 = ffn_w_ref[0]        # (D, FFN)
    w_fc2t = ffn_w_ref[1]       # (D, FFN)  == fc2_w.T

    d_pad = o_ref.shape[-1]

    # Whole batch handled in one kernel invocation; B is tiny, so a trace-time
    # unrolled loop keeps every op a plain 2-D tile op (no batch relayouts).
    for b in range(Bq):
        x = hs_ref[b]           # (T, D)
        enc = enc_ref[b]        # (S, D)

        # --- self-attention block (fused QKV GEMM) ---
        attn = _attention(x, x, smask_ref[b], w_qkv_sa,
                          dv[0:1], dv[1:2], dv[2:3], w_o_sa, dv[3:4],
                          fused_qkv=True)
        x = _layer_norm(x + attn, dv[4:5], dv[5:6])

        # --- cross-attention block ---
        attn = _attention(x, enc, cmask_ref[b], w_qkv_ca,
                          dv[6:7], dv[7:8], dv[8:9], w_o_ca, dv[9:10],
                          fused_qkv=False)
        x = _layer_norm(x + attn, dv[10:11], dv[11:12])

        # --- feed-forward block (exact erf GELU, matching HF GELUActivation) ---
        h = jnp.dot(x, w_fc1, preferred_element_type=jnp.float32) + fc1_b
        h = 0.5 * h * (1.0 + lax.erf(h * (2.0 ** -0.5)))
        h = lax.dot_general(h, w_fc2t, (((1,), (1,)), ((), ())),
                            preferred_element_type=jnp.float32) + dv[12:13]
        x = _layer_norm(x + h, dv[13:14], dv[14:15])

        # --- lane-dense store (pad only when D is not a multiple of 128) ---
        if d_pad > Dm:
            x = jnp.concatenate(
                [x, jnp.zeros((Tq, d_pad - Dm), x.dtype)], axis=-1)
        o_ref[b] = x


# ----------------------------- wrapper --------------------------------------
def bart_decoder_layer(hidden_states, attention_mask,
                       encoder_hidden_states, encoder_attention_mask, params):
    """Forward pass of BartDecoderLayer (eval mode: dropout = identity).

    hidden_states:            (B, T, D)
    attention_mask:           (B, T, T)     additive
    encoder_hidden_states:    (B, S_enc, D)
    encoder_attention_mask:   (B, T, S_enc) additive
    """
    p = params
    Bq, Tq, Dm = hidden_states.shape
    Sq = encoder_hidden_states.shape[1]

    # ---- host-side (free) operand packing: 9 operands instead of ~30 ----
    qkv_w = jnp.stack([
        jnp.concatenate([p["sa_wq"], p["sa_wk"], p["sa_wv"]], axis=1),
        jnp.concatenate([p["ca_wq"], p["ca_wk"], p["ca_wv"]], axis=1)])    # (2, D, 3D)
    out_w = jnp.stack([p["sa_wo"], p["ca_wo"]])                            # (2, D, D)
    ffn_w = jnp.stack([p["fc1_w"], p["fc2_w"].T])                          # (2, D, FFN)
    fc1_b = p["fc1_b"].reshape(1, -1)                                      # (1, FFN)
    dvec = jnp.concatenate([
        p["sa_bq"].reshape(1, Dm), p["sa_bk"].reshape(1, Dm), p["sa_bv"].reshape(1, Dm),
        p["sa_bo"].reshape(1, Dm), p["sa_ln_g"].reshape(1, Dm), p["sa_ln_b"].reshape(1, Dm),
        p["ca_bq"].reshape(1, Dm), p["ca_bk"].reshape(1, Dm), p["ca_bv"].reshape(1, Dm),
        p["ca_bo"].reshape(1, Dm), p["ca_ln_g"].reshape(1, Dm), p["ca_ln_b"].reshape(1, Dm),
        p["fc2_b"].reshape(1, Dm), p["f_ln_g"].reshape(1, Dm), p["f_ln_b"].reshape(1, Dm),
    ], axis=0)                                                             # (15, D)

    d_pad = _round_up(Dm, LANE)   # lane-dense store; == Dm when Dm % 128 == 0

    vmem = pl.BlockSpec(memory_space=pltpu.MemorySpace.VMEM)
    out = pl.pallas_call(
        _bart_layer_kernel,
        out_shape=jax.ShapeDtypeStruct((Bq, Tq, d_pad), jnp.float32),
        in_specs=[vmem] * 9,
        out_specs=vmem,
    )(hidden_states, encoder_hidden_states, attention_mask,
      encoder_attention_mask, qkv_w, out_w, ffn_w, fc1_b, dvec)

    if d_pad != Dm:
        out = out[:, :, :Dm]
    return out


# ----------------------------- pure-JAX reference ---------------------------
SCALE = HD ** -0.5


def _ref_attention(x, kv, mask, wq, bq, wk, bk, wv, bv, wo, bo):
    q = (x @ wq + bq) * SCALE
    k = kv @ wk + bk
    v = kv @ wv + bv
    Bq, Tq, _ = x.shape
    Skv = kv.shape[1]
    q = q.reshape(Bq, Tq, H, HD).transpose(0, 2, 1, 3)
    k = k.reshape(Bq, Skv, H, HD).transpose(0, 2, 1, 3)
    v = v.reshape(Bq, Skv, H, HD).transpose(0, 2, 1, 3)
    s = jnp.einsum("bhtd,bhsd->bhts", q, k) + mask[:, None, :, :]
    pr = jax.nn.softmax(s, axis=-1)
    ctx = jnp.einsum("bhts,bhsd->bhtd", pr, v)
    ctx = ctx.transpose(0, 2, 1, 3).reshape(Bq, Tq, D)
    return ctx @ wo + bo


def _ref_ln(x, g, b):
    mu = jnp.mean(x, axis=-1, keepdims=True)
    var = jnp.mean((x - mu) ** 2, axis=-1, keepdims=True)
    return (x - mu) / jnp.sqrt(var + EPS) * g + b


def _ref_layer(hs, attn_mask, enc_hs, enc_mask, p):
    res = hs
    hs = _ref_attention(hs, hs, attn_mask, p["sa_wq"], p["sa_bq"], p["sa_wk"],
                        p["sa_bk"], p["sa_wv"], p["sa_bv"], p["sa_wo"], p["sa_bo"])
    hs = _ref_ln(res + hs, p["sa_ln_g"], p["sa_ln_b"])
    res = hs
    hs = _ref_attention(hs, enc_hs, enc_mask, p["ca_wq"], p["ca_bq"], p["ca_wk"],
                        p["ca_bk"], p["ca_wv"], p["ca_bv"], p["ca_wo"], p["ca_bo"])
    hs = _ref_ln(res + hs, p["ca_ln_g"], p["ca_ln_b"])
    res = hs
    h = hs @ p["fc1_w"] + p["fc1_b"]
    h = 0.5 * h * (1.0 + lax.erf(h / jnp.sqrt(2.0)))
    h = h @ p["fc2_w"] + p["fc2_b"]
    return _ref_ln(res + h, p["f_ln_g"], p["f_ln_b"])


# ----------------------------- main ----------------------------------------
if __name__ == "__main__":
    key = jax.random.PRNGKey(0)
    ks = jax.random.split(key, 32)
    ki = iter(ks)

    def w(shape, scale=0.05):
        return (scale * jax.random.normal(next(ki), shape)).astype(jnp.float32)

    params = {}
    # attention projections (weights stored [in, out])
    for pfx in ("sa", "ca"):
        for name in ("q", "k", "v", "o"):
            params[f"{pfx}_w{name}"] = w((D, D))
            params[f"{pfx}_b{name}"] = w((1, D), 0.02)
        params[f"{pfx}_ln_g"] = (1.0 + 0.1 * jax.random.normal(next(ki), (1, D))).astype(jnp.float32)
        params[f"{pfx}_ln_b"] = w((1, D), 0.02)
    params["fc1_w"] = w((D, FFN))
    params["fc1_b"] = w((1, FFN), 0.02)
    params["fc2_w"] = w((FFN, D))
    params["fc2_b"] = w((1, D), 0.02)
    params["f_ln_g"] = (1.0 + 0.1 * jax.random.normal(next(ki), (1, D))).astype(jnp.float32)
    params["f_ln_b"] = w((1, D), 0.02)

    hidden_states = jax.random.normal(next(ki), (B, T, D), dtype=jnp.float32)
    encoder_hidden_states = jax.random.normal(next(ki), (B, S_ENC, D), dtype=jnp.float32)

    # causal additive mask for self-attention, no padding for cross-attention
    causal = jnp.where(jnp.tril(jnp.ones((T, T), dtype=bool)), 0.0, -1e9).astype(jnp.float32)
    attention_mask = jnp.broadcast_to(causal, (B, T, T))
    encoder_attention_mask = jnp.zeros((B, T, S_ENC), dtype=jnp.float32)

    out = bart_decoder_layer(hidden_states, attention_mask,
                             encoder_hidden_states, encoder_attention_mask, params)
    out = jax.block_until_ready(out)

    ref = _ref_layer(hidden_states, attention_mask,
                     encoder_hidden_states, encoder_attention_mask, params)
    assert out.shape == (B, T, D)
    assert jnp.allclose(out, ref, rtol=1e-4, atol=1e-4), "mismatch vs pure-JAX reference"

    print("KERNEL_OK")
</pallas_src>

<mosaic_0001>
module attributes {stable_mosaic.version = 11 : i64} {
  func.func @_bart_layer_kernel(%arg0: memref<2x8x32xf32, #tpu.memory_space<vmem>>, %arg1: memref<2x16x32xf32, #tpu.memory_space<vmem>>, %arg2: memref<2x8x8xf32, #tpu.memory_space<vmem>>, %arg3: memref<2x8x16xf32, #tpu.memory_space<vmem>>, %arg4: memref<2x32x96xf32, #tpu.memory_space<vmem>>, %arg5: memref<2x32x32xf32, #tpu.memory_space<vmem>>, %arg6: memref<2x32x64xf32, #tpu.memory_space<vmem>>, %arg7: memref<1x64xf32, #tpu.memory_space<vmem>>, %arg8: memref<15x32xf32, #tpu.memory_space<vmem>>, %arg9: memref<2x8x128xf32, #tpu.memory_space<vmem>>) attributes {dimension_semantics = [], scalar_prefetch = 0 : i64, scratch_operands = 0 : i64, tpu.core_type = #tpu.core_type<tc>} {
    %c0 = arith.constant 0 : index
    %c0_0 = arith.constant 0 : index
    %0 = vector.load %arg8[%c0, %c0_0] : memref<15x32xf32, #tpu.memory_space<vmem>>, vector<15x32xf32>
    %c0_1 = arith.constant 0 : index
    %c0_2 = arith.constant 0 : index
    %1 = vector.load %arg7[%c0_1, %c0_2] : memref<1x64xf32, #tpu.memory_space<vmem>>, vector<1x64xf32>
    %c0_3 = arith.constant 0 : index
    %c0_4 = arith.constant 0 : index
    %c0_5 = arith.constant 0 : index
    %2 = vector.load %arg4[%c0_3, %c0_4, %c0_5] : memref<2x32x96xf32, #tpu.memory_space<vmem>>, vector<1x32x96xf32>
    %3 = vector.shape_cast %2 : vector<1x32x96xf32> to vector<32x96xf32>
    %c1 = arith.constant 1 : index
    %c0_6 = arith.constant 0 : index
    %c0_7 = arith.constant 0 : index
    %4 = vector.load %arg4[%c1, %c0_6, %c0_7] : memref<2x32x96xf32, #tpu.memory_space<vmem>>, vector<1x32x96xf32>
    %5 = vector.shape_cast %4 : vector<1x32x96xf32> to vector<32x96xf32>
    %c0_8 = arith.constant 0 : index
    %c0_9 = arith.constant 0 : index
    %c0_10 = arith.constant 0 : index
    %6 = vector.load %arg5[%c0_8, %c0_9, %c0_10] : memref<2x32x32xf32, #tpu.memory_space<vmem>>, vector<1x32x32xf32>
    %7 = vector.shape_cast %6 : vector<1x32x32xf32> to vector<32x32xf32>
    %c1_11 = arith.constant 1 : index
    %c0_12 = arith.constant 0 : index
    %c0_13 = arith.constant 0 : index
    %8 = vector.load %arg5[%c1_11, %c0_12, %c0_13] : memref<2x32x32xf32, #tpu.memory_space<vmem>>, vector<1x32x32xf32>
    %9 = vector.shape_cast %8 : vector<1x32x32xf32> to vector<32x32xf32>
    %c0_14 = arith.constant 0 : index
    %c0_15 = arith.constant 0 : index
    %c0_16 = arith.constant 0 : index
    %10 = vector.load %arg6[%c0_14, %c0_15, %c0_16] : memref<2x32x64xf32, #tpu.memory_space<vmem>>, vector<1x32x64xf32>
    %11 = vector.shape_cast %10 : vector<1x32x64xf32> to vector<32x64xf32>
    %c1_17 = arith.constant 1 : index
    %c0_18 = arith.constant 0 : index
    %c0_19 = arith.constant 0 : index
    %12 = vector.load %arg6[%c1_17, %c0_18, %c0_19] : memref<2x32x64xf32, #tpu.memory_space<vmem>>, vector<1x32x64xf32>
    %13 = vector.shape_cast %12 : vector<1x32x64xf32> to vector<32x64xf32>
    %c0_20 = arith.constant 0 : index
    %c0_21 = arith.constant 0 : index
    %c0_22 = arith.constant 0 : index
    %14 = vector.load %arg0[%c0_20, %c0_21, %c0_22] : memref<2x8x32xf32, #tpu.memory_space<vmem>>, vector<1x8x32xf32>
    %15 = vector.shape_cast %14 : vector<1x8x32xf32> to vector<8x32xf32>
    %c0_23 = arith.constant 0 : index
    %c0_24 = arith.constant 0 : index
    %c0_25 = arith.constant 0 : index
    %16 = vector.load %arg1[%c0_23, %c0_24, %c0_25] : memref<2x16x32xf32, #tpu.memory_space<vmem>>, vector<1x16x32xf32>
    %17 = vector.shape_cast %16 : vector<1x16x32xf32> to vector<16x32xf32>
    %c0_26 = arith.constant 0 : index
    %c0_27 = arith.constant 0 : index
    %c0_28 = arith.constant 0 : index
    %18 = vector.load %arg2[%c0_26, %c0_27, %c0_28] : memref<2x8x8xf32, #tpu.memory_space<vmem>>, vector<1x8x8xf32>
    %19 = vector.shape_cast %18 : vector<1x8x8xf32> to vector<8x8xf32>
    %20 = vector.extract_strided_slice %0 {offsets = [0, 0], sizes = [1, 32], strides = [1, 1]} : vector<15x32xf32> to vector<1x32xf32>
    %21 = vector.extract_strided_slice %0 {offsets = [1, 0], sizes = [1, 32], strides = [1, 1]} : vector<15x32xf32> to vector<1x32xf32>
    %22 = vector.extract_strided_slice %0 {offsets = [2, 0], sizes = [1, 32], strides = [1, 1]} : vector<15x32xf32> to vector<1x32xf32>
    %23 = vector.extract_strided_slice %0 {offsets = [3, 0], sizes = [1, 32], strides = [1, 1]} : vector<15x32xf32> to vector<1x32xf32>
    %cst = arith.constant dense<0.000000e+00> : vector<8x96xf32>
    %24 = tpu.matmul %15, %3, %cst {dimension_numbers = #tpu.dot_dimension_numbers<[1], [0], [0], [1], [0, 0, 1, 1], [], []>} : vector<8x32xf32>, vector<32x96xf32>, vector<8x96xf32> -> vector<8x96xf32>
    %25 = vector.extract_strided_slice %24 {offsets = [0, 0], sizes = [8, 32], strides = [1, 1]} : vector<8x96xf32> to vector<8x32xf32>
    %26 = vector.broadcast %20 : vector<1x32xf32> to vector<8x32xf32>
    %27 = arith.addf %25, %26 : vector<8x32xf32>
    %28 = vector.extract_strided_slice %24 {offsets = [0, 32], sizes = [8, 32], strides = [1, 1]} : vector<8x96xf32> to vector<8x32xf32>
    %29 = vector.broadcast %21 : vector<1x32xf32> to vector<8x32xf32>
    %30 = arith.addf %28, %29 : vector<8x32xf32>
    %31 = vector.extract_strided_slice %24 {offsets = [0, 64], sizes = [8, 32], strides = [1, 1]} : vector<8x96xf32> to vector<8x32xf32>
    %32 = vector.broadcast %22 : vector<1x32xf32> to vector<8x32xf32>
    %33 = arith.addf %31, %32 : vector<8x32xf32>
    %cst_29 = arith.constant 0.353553385 : f32
    %34 = vector.broadcast %cst_29 : f32 to vector<8x32xf32>
    %35 = arith.mulf %27, %34 : vector<8x32xf32>
    %36 = vector.extract_strided_slice %35 {offsets = [0, 0], sizes = [8, 8], strides = [1, 1]} : vector<8x32xf32> to vector<8x8xf32>
    %37 = vector.extract_strided_slice %30 {offsets = [0, 0], sizes = [8, 8], strides = [1, 1]} : vector<8x32xf32> to vector<8x8xf32>
    %38 = vector.extract_strided_slice %33 {offsets = [0, 0], sizes = [8, 8], strides = [1, 1]} : vector<8x32xf32> to vector<8x8xf32>
    %cst_30 = arith.constant dense<0.000000e+00> : vector<8x8xf32>
    %39 = tpu.matmul %36, %37, %cst_30 {dimension_numbers = #tpu.dot_dimension_numbers<[1], [1], [0], [0], [0, 0, 1, 0], [], []>} : vector<8x8xf32>, vector<8x8xf32>, vector<8x8xf32> -> vector<8x8xf32>
    %40 = arith.addf %39, %19 : vector<8x8xf32>
    %cst_31 = arith.constant dense<0xFF800000> : vector<8xf32>
    %41 = vector.multi_reduction <maximumf>, %40, %cst_31 [1] : vector<8x8xf32> to vector<8xf32>
    %42 = vector.shape_cast %41 : vector<8xf32> to vector<8x1xf32>
    %43 = vector.broadcast %42 : vector<8x1xf32> to vector<8x8xf32>
    %44 = arith.subf %40, %43 : vector<8x8xf32>
    %45 = math.exp %44 : vector<8x8xf32>
    %cst_32 = arith.constant dense<0.000000e+00> : vector<8xf32>
    %46 = vector.multi_reduction <add>, %45, %cst_32 [1] : vector<8x8xf32> to vector<8xf32>
    %47 = vector.shape_cast %46 : vector<8xf32> to vector<8x1xf32>
    %cst_33 = arith.constant 1.000000e+00 : f32
    %48 = vector.broadcast %cst_33 : f32 to vector<8x1xf32>
    %49 = arith.divf %48, %47 : vector<8x1xf32>
    %50 = vector.broadcast %49 : vector<8x1xf32> to vector<8x8xf32>
    %51 = arith.mulf %45, %50 : vector<8x8xf32>
    %cst_34 = arith.constant dense<0.000000e+00> : vector<8x8xf32>
    %52 = tpu.matmul %51, %38, %cst_34 {dimension_numbers = #tpu.dot_dimension_numbers<[1], [0], [0], [1], [0, 0, 1, 1], [], []>} : vector<8x8xf32>, vector<8x8xf32>, vector<8x8xf32> -> vector<8x8xf32>
    %53 = vector.extract_strided_slice %35 {offsets = [0, 8], sizes = [8, 8], strides = [1, 1]} : vector<8x32xf32> to vector<8x8xf32>
    %54 = vector.extract_strided_slice %30 {offsets = [0, 8], sizes = [8, 8], strides = [1, 1]} : vector<8x32xf32> to vector<8x8xf32>
    %55 = vector.extract_strided_slice %33 {offsets = [0, 8], sizes = [8, 8], strides = [1, 1]} : vector<8x32xf32> to vector<8x8xf32>
    %cst_35 = arith.constant dense<0.000000e+00> : vector<8x8xf32>
    %56 = tpu.matmul %53, %54, %cst_35 {dimension_numbers = #tpu.dot_dimension_numbers<[1], [1], [0], [0], [0, 0, 1, 0], [], []>} : vector<8x8xf32>, vector<8x8xf32>, vector<8x8xf32> -> vector<8x8xf32>
    %57 = arith.addf %56, %19 : vector<8x8xf32>
    %cst_36 = arith.constant dense<0xFF800000> : vector<8xf32>
    %58 = vector.multi_reduction <maximumf>, %57, %cst_36 [1] : vector<8x8xf32> to vector<8xf32>
    %59 = vector.shape_cast %58 : vector<8xf32> to vector<8x1xf32>
    %60 = vector.broadcast %59 : vector<8x1xf32> to vector<8x8xf32>
    %61 = arith.subf %57, %60 : vector<8x8xf32>
    %62 = math.exp %61 : vector<8x8xf32>
    %cst_37 = arith.constant dense<0.000000e+00> : vector<8xf32>
    %63 = vector.multi_reduction <add>, %62, %cst_37 [1] : vector<8x8xf32> to vector<8xf32>
    %64 = vector.shape_cast %63 : vector<8xf32> to vector<8x1xf32>
    %cst_38 = arith.constant 1.000000e+00 : f32
    %65 = vector.broadcast %cst_38 : f32 to vector<8x1xf32>
    %66 = arith.divf %65, %64 : vector<8x1xf32>
    %67 = vector.broadcast %66 : vector<8x1xf32> to vector<8x8xf32>
    %68 = arith.mulf %62, %67 : vector<8x8xf32>
    %cst_39 = arith.constant dense<0.000000e+00> : vector<8x8xf32>
    %69 = tpu.matmul %68, %55, %cst_39 {dimension_numbers = #tpu.dot_dimension_numbers<[1], [0], [0], [1], [0, 0, 1, 1], [], []>} : vector<8x8xf32>, vector<8x8xf32>, vector<8x8xf32> -> vector<8x8xf32>
    %70 = vector.extract_strided_slice %35 {offsets = [0, 16], sizes = [8, 8], strides = [1, 1]} : vector<8x32xf32> to vector<8x8xf32>
    %71 = vector.extract_strided_slice %30 {offsets = [0, 16], sizes = [8, 8], strides = [1, 1]} : vector<8x32xf32> to vector<8x8xf32>
    %72 = vector.extract_strided_slice %33 {offsets = [0, 16], sizes = [8, 8], strides = [1, 1]} : vector<8x32xf32> to vector<8x8xf32>
    %cst_40 = arith.constant dense<0.000000e+00> : vector<8x8xf32>
    %73 = tpu.matmul %70, %71, %cst_40 {dimension_numbers = #tpu.dot_dimension_numbers<[1], [1], [0], [0], [0, 0, 1, 0], [], []>} : vector<8x8xf32>, vector<8x8xf32>, vector<8x8xf32> -> vector<8x8xf32>
    %74 = arith.addf %73, %19 : vector<8x8xf32>
    %cst_41 = arith.constant dense<0xFF800000> : vector<8xf32>
    %75 = vector.multi_reduction <maximumf>, %74, %cst_41 [1] : vector<8x8xf32> to vector<8xf32>
    %76 = vector.shape_cast %75 : vector<8xf32> to vector<8x1xf32>
    %77 = vector.broadcast %76 : vector<8x1xf32> to vector<8x8xf32>
    %78 = arith.subf %74, %77 : vector<8x8xf32>
    %79 = math.exp %78 : vector<8x8xf32>
    %cst_42 = arith.constant dense<0.000000e+00> : vector<8xf32>
    %80 = vector.multi_reduction <add>, %79, %cst_42 [1] : vector<8x8xf32> to vector<8xf32>
    %81 = vector.shape_cast %80 : vector<8xf32> to vector<8x1xf32>
    %cst_43 = arith.constant 1.000000e+00 : f32
    %82 = vector.broadcast %cst_43 : f32 to vector<8x1xf32>
    %83 = arith.divf %82, %81 : vector<8x1xf32>
    %84 = vector.broadcast %83 : vector<8x1xf32> to vector<8x8xf32>
    %85 = arith.mulf %79, %84 : vector<8x8xf32>
    %cst_44 = arith.constant dense<0.000000e+00> : vector<8x8xf32>
    %86 = tpu.matmul %85, %72, %cst_44 {dimension_numbers = #tpu.dot_dimension_numbers<[1], [0], [0], [1], [0, 0, 1, 1], [], []>} : vector<8x8xf32>, vector<8x8xf32>, vector<8x8xf32> -> vector<8x8xf32>
    %87 = vector.extract_strided_slice %35 {offsets = [0, 24], sizes = [8, 8], strides = [1, 1]} : vector<8x32xf32> to vector<8x8xf32>
    %88 = vector.extract_strided_slice %30 {offsets = [0, 24], sizes = [8, 8], strides = [1, 1]} : vector<8x32xf32> to vector<8x8xf32>
    %89 = vector.extract_strided_slice %33 {offsets = [0, 24], sizes = [8, 8], strides = [1, 1]} : vector<8x32xf32> to vector<8x8xf32>
    %cst_45 = arith.constant dense<0.000000e+00> : vector<8x8xf32>
    %90 = tpu.matmul %87, %88, %cst_45 {dimension_numbers = #tpu.dot_dimension_numbers<[1], [1], [0], [0], [0, 0, 1, 0], [], []>} : vector<8x8xf32>, vector<8x8xf32>, vector<8x8xf32> -> vector<8x8xf32>
    %91 = arith.addf %90, %19 : vector<8x8xf32>
    %cst_46 = arith.constant dense<0xFF800000> : vector<8xf32>
    %92 = vector.multi_reduction <maximumf>, %91, %cst_46 [1] : vector<8x8xf32> to vector<8xf32>
    %93 = vector.shape_cast %92 : vector<8xf32> to vector<8x1xf32>
    %94 = vector.broadcast %93 : vector<8x1xf32> to vector<8x8xf32>
    %95 = arith.subf %91, %94 : vector<8x8xf32>
    %96 = math.exp %95 : vector<8x8xf32>
    %cst_47 = arith.constant dense<0.000000e+00> : vector<8xf32>
    %97 = vector.multi_reduction <add>, %96, %cst_47 [1] : vector<8x8xf32> to vector<8xf32>
    %98 = vector.shape_cast %97 : vector<8xf32> to vector<8x1xf32>
    %cst_48 = arith.constant 1.000000e+00 : f32
    %99 = vector.broadcast %cst_48 : f32 to vector<8x1xf32>
    %100 = arith.divf %99, %98 : vector<8x1xf32>
    %101 = vector.broadcast %100 : vector<8x1xf32> to vector<8x8xf32>
    %102 = arith.mulf %96, %101 : vector<8x8xf32>
    %cst_49 = arith.constant dense<0.000000e+00> : vector<8x8xf32>
    %103 = tpu.matmul %102, %89, %cst_49 {dimension_numbers = #tpu.dot_dimension_numbers<[1], [0], [0], [1], [0, 0, 1, 1], [], []>} : vector<8x8xf32>, vector<8x8xf32>, vector<8x8xf32> -> vector<8x8xf32>
    %104 = tpu.concatenate %52, %69, %86, %103 in 1 : vector<8x8xf32>, vector<8x8xf32>, vector<8x8xf32>, vector<8x8xf32> -> vector<8x32xf32>
    %cst_50 = arith.constant dense<0.000000e+00> : vector<8x32xf32>
    %105 = tpu.matmul %104, %7, %cst_50 {dimension_numbers = #tpu.dot_dimension_numbers<[1], [0], [0], [1], [0, 0, 1, 1], [], []>} : vector<8x32xf32>, vector<32x32xf32>, vector<8x32xf32> -> vector<8x32xf32>
    %106 = vector.broadcast %23 : vector<1x32xf32> to vector<8x32xf32>
    %107 = arith.addf %105, %106 : vector<8x32xf32>
    %108 = arith.addf %15, %107 : vector<8x32xf32>
    %109 = vector.extract_strided_slice %0 {offsets = [4, 0], sizes = [1, 32], strides = [1, 1]} : vector<15x32xf32> to vector<1x32xf32>
    %110 = vector.extract_strided_slice %0 {offsets = [5, 0], sizes = [1, 32], strides = [1, 1]} : vector<15x32xf32> to vector<1x32xf32>
    %cst_51 = arith.constant dense<0.000000e+00> : vector<8xf32>
    %111 = vector.multi_reduction <add>, %108, %cst_51 [1] : vector<8x32xf32> to vector<8xf32>
    %112 = vector.shape_cast %111 : vector<8xf32> to vector<8x1xf32>
    %cst_52 = arith.constant 3.200000e+01 : f32
    %113 = vector.broadcast %cst_52 : f32 to vector<8x1xf32>
    %114 = arith.divf %112, %113 : vector<8x1xf32>
    %115 = vector.broadcast %114 : vector<8x1xf32> to vector<8x32xf32>
    %116 = arith.subf %108, %115 : vector<8x32xf32>
    %117 = arith.mulf %116, %116 : vector<8x32xf32>
    %cst_53 = arith.constant dense<0.000000e+00> : vector<8xf32>
    %118 = vector.multi_reduction <add>, %117, %cst_53 [1] : vector<8x32xf32> to vector<8xf32>
    %119 = vector.shape_cast %118 : vector<8xf32> to vector<8x1xf32>
    %cst_54 = arith.constant 3.200000e+01 : f32
    %120 = vector.broadcast %cst_54 : f32 to vector<8x1xf32>
    %121 = arith.divf %119, %120 : vector<8x1xf32>
    %122 = vector.broadcast %114 : vector<8x1xf32> to vector<8x32xf32>
    %123 = arith.subf %108, %122 : vector<8x32xf32>
    %cst_55 = arith.constant 9.99999974E-6 : f32
    %124 = vector.broadcast %cst_55 : f32 to vector<8x1xf32>
    %125 = arith.addf %121, %124 : vector<8x1xf32>
    %126 = math.rsqrt %125 : vector<8x1xf32>
    %127 = vector.broadcast %126 : vector<8x1xf32> to vector<8x32xf32>
    %128 = arith.mulf %123, %127 : vector<8x32xf32>
    %129 = vector.broadcast %109 : vector<1x32xf32> to vector<8x32xf32>
    %130 = arith.mulf %128, %129 : vector<8x32xf32>
    %131 = vector.broadcast %110 : vector<1x32xf32> to vector<8x32xf32>
    %132 = arith.addf %130, %131 : vector<8x32xf32>
    %c0_56 = arith.constant 0 : index
    %c0_57 = arith.constant 0 : index
    %c0_58 = arith.constant 0 : index
    %133 = vector.load %arg3[%c0_56, %c0_57, %c0_58] : memref<2x8x16xf32, #tpu.memory_space<vmem>>, vector<1x8x16xf32>
    %134 = vector.shape_cast %133 : vector<1x8x16xf32> to vector<8x16xf32>
    %135 = vector.extract_strided_slice %0 {offsets = [6, 0], sizes = [1, 32], strides = [1, 1]} : vector<15x32xf32> to vector<1x32xf32>
    %136 = vector.extract_strided_slice %0 {offsets = [7, 0], sizes = [1, 32], strides = [1, 1]} : vector<15x32xf32> to vector<1x32xf32>
    %137 = vector.extract_strided_slice %0 {offsets = [8, 0], sizes = [1, 32], strides = [1, 1]} : vector<15x32xf32> to vector<1x32xf32>
    %138 = vector.extract_strided_slice %0 {offsets = [9, 0], sizes = [1, 32], strides = [1, 1]} : vector<15x32xf32> to vector<1x32xf32>
    %139 = vector.extract_strided_slice %5 {offsets = [0, 0], sizes = [32, 32], strides = [1, 1]} : vector<32x96xf32> to vector<32x32xf32>
    %cst_59 = arith.constant dense<0.000000e+00> : vector<8x32xf32>
    %140 = tpu.matmul %132, %139, %cst_59 {dimension_numbers = #tpu.dot_dimension_numbers<[1], [0], [0], [1], [0, 0, 1, 1], [], []>} : vector<8x32xf32>, vector<32x32xf32>, vector<8x32xf32> -> vector<8x32xf32>
    %141 = vector.broadcast %135 : vector<1x32xf32> to vector<8x32xf32>
    %142 = arith.addf %140, %141 : vector<8x32xf32>
    %143 = vector.extract_strided_slice %5 {offsets = [0, 32], sizes = [32, 64], strides = [1, 1]} : vector<32x96xf32> to vector<32x64xf32>
    %cst_60 = arith.constant dense<0.000000e+00> : vector<16x64xf32>
    %144 = tpu.matmul %17, %143, %cst_60 {dimension_numbers = #tpu.dot_dimension_numbers<[1], [0], [0], [1], [0, 0, 1, 1], [], []>} : vector<16x32xf32>, vector<32x64xf32>, vector<16x64xf32> -> vector<16x64xf32>
    %145 = vector.extract_strided_slice %144 {offsets = [0, 0], sizes = [16, 32], strides = [1, 1]} : vector<16x64xf32> to vector<16x32xf32>
    %146 = vector.broadcast %136 : vector<1x32xf32> to vector<16x32xf32>
    %147 = arith.addf %145, %146 : vector<16x32xf32>
    %148 = vector.extract_strided_slice %144 {offsets = [0, 32], sizes = [16, 32], strides = [1, 1]} : vector<16x64xf32> to vector<16x32xf32>
    %149 = vector.broadcast %137 : vector<1x32xf32> to vector<16x32xf32>
    %150 = arith.addf %148, %149 : vector<16x32xf32>
    %cst_61 = arith.constant 0.353553385 : f32
    %151 = vector.broadcast %cst_61 : f32 to vector<8x32xf32>
    %152 = arith.mulf %142, %151 : vector<8x32xf32>
    %153 = vector.extract_strided_slice %152 {offsets = [0, 0], sizes = [8, 8], strides = [1, 1]} : vector<8x32xf32> to vector<8x8xf32>
    %154 = vector.extract_strided_slice %147 {offsets = [0, 0], sizes = [16, 8], strides = [1, 1]} : vector<16x32xf32> to vector<16x8xf32>
    %155 = vector.extract_strided_slice %150 {offsets = [0, 0], sizes = [16, 8], strides = [1, 1]} : vector<16x32xf32> to vector<16x8xf32>
    %cst_62 = arith.constant dense<0.000000e+00> : vector<8x16xf32>
    %156 = tpu.matmul %153, %154, %cst_62 {dimension_numbers = #tpu.dot_dimension_numbers<[1], [1], [0], [0], [0, 0, 1, 0], [], []>} : vector<8x8xf32>, vector<16x8xf32>, vector<8x16xf32> -> vector<8x16xf32>
    %157 = arith.addf %156, %134 : vector<8x16xf32>
    %cst_63 = arith.constant dense<0xFF800000> : vector<8xf32>
    %158 = vector.multi_reduction <maximumf>, %157, %cst_63 [1] : vector<8x16xf32> to vector<8xf32>
    %159 = vector.shape_cast %158 : vector<8xf32> to vector<8x1xf32>
    %160 = vector.broadcast %159 : vector<8x1xf32> to vector<8x16xf32>
    %161 = arith.subf %157, %160 : vector<8x16xf32>
    %162 = math.exp %161 : vector<8x16xf32>
    %cst_64 = arith.constant dense<0.000000e+00> : vector<8xf32>
    %163 = vector.multi_reduction <add>, %162, %cst_64 [1] : vector<8x16xf32> to vector<8xf32>
    %164 = vector.shape_cast %163 : vector<8xf32> to vector<8x1xf32>
    %cst_65 = arith.constant 1.000000e+00 : f32
    %165 = vector.broadcast %cst_65 : f32 to vector<8x1xf32>
    %166 = arith.divf %165, %164 : vector<8x1xf32>
    %167 = vector.broadcast %166 : vector<8x1xf32> to vector<8x16xf32>
    %168 = arith.mulf %162, %167 : vector<8x16xf32>
    %cst_66 = arith.constant dense<0.000000e+00> : vector<8x8xf32>
    %169 = tpu.matmul %168, %155, %cst_66 {dimension_numbers = #tpu.dot_dimension_numbers<[1], [0], [0], [1], [0, 0, 1, 1], [], []>} : vector<8x16xf32>, vector<16x8xf32>, vector<8x8xf32> -> vector<8x8xf32>
    %170 = vector.extract_strided_slice %152 {offsets = [0, 8], sizes = [8, 8], strides = [1, 1]} : vector<8x32xf32> to vector<8x8xf32>
    %171 = vector.extract_strided_slice %147 {offsets = [0, 8], sizes = [16, 8], strides = [1, 1]} : vector<16x32xf32> to vector<16x8xf32>
    %172 = vector.extract_strided_slice %150 {offsets = [0, 8], sizes = [16, 8], strides = [1, 1]} : vector<16x32xf32> to vector<16x8xf32>
    %cst_67 = arith.constant dense<0.000000e+00> : vector<8x16xf32>
    %173 = tpu.matmul %170, %171, %cst_67 {dimension_numbers = #tpu.dot_dimension_numbers<[1], [1], [0], [0], [0, 0, 1, 0], [], []>} : vector<8x8xf32>, vector<16x8xf32>, vector<8x16xf32> -> vector<8x16xf32>
    %174 = arith.addf %173, %134 : vector<8x16xf32>
    %cst_68 = arith.constant dense<0xFF800000> : vector<8xf32>
    %175 = vector.multi_reduction <maximumf>, %174, %cst_68 [1] : vector<8x16xf32> to vector<8xf32>
    %176 = vector.shape_cast %175 : vector<8xf32> to vector<8x1xf32>
    %177 = vector.broadcast %176 : vector<8x1xf32> to vector<8x16xf32>
    %178 = arith.subf %174, %177 : vector<8x16xf32>
    %179 = math.exp %178 : vector<8x16xf32>
    %cst_69 = arith.constant dense<0.000000e+00> : vector<8xf32>
    %180 = vector.multi_reduction <add>, %179, %cst_69 [1] : vector<8x16xf32> to vector<8xf32>
    %181 = vector.shape_cast %180 : vector<8xf32> to vector<8x1xf32>
    %cst_70 = arith.constant 1.000000e+00 : f32
    %182 = vector.broadcast %cst_70 : f32 to vector<8x1xf32>
    %183 = arith.divf %182, %181 : vector<8x1xf32>
    %184 = vector.broadcast %183 : vector<8x1xf32> to vector<8x16xf32>
    %185 = arith.mulf %179, %184 : vector<8x16xf32>
    %cst_71 = arith.constant dense<0.000000e+00> : vector<8x8xf32>
    %186 = tpu.matmul %185, %172, %cst_71 {dimension_numbers = #tpu.dot_dimension_numbers<[1], [0], [0], [1], [0, 0, 1, 1], [], []>} : vector<8x16xf32>, vector<16x8xf32>, vector<8x8xf32> -> vector<8x8xf32>
    %187 = vector.extract_strided_slice %152 {offsets = [0, 16], sizes = [8, 8], strides = [1, 1]} : vector<8x32xf32> to vector<8x8xf32>
    %188 = vector.extract_strided_slice %147 {offsets = [0, 16], sizes = [16, 8], strides = [1, 1]} : vector<16x32xf32> to vector<16x8xf32>
    %189 = vector.extract_strided_slice %150 {offsets = [0, 16], sizes = [16, 8], strides = [1, 1]} : vector<16x32xf32> to vector<16x8xf32>
    %cst_72 = arith.constant dense<0.000000e+00> : vector<8x16xf32>
    %190 = tpu.matmul %187, %188, %cst_72 {dimension_numbers = #tpu.dot_dimension_numbers<[1], [1], [0], [0], [0, 0, 1, 0], [], []>} : vector<8x8xf32>, vector<16x8xf32>, vector<8x16xf32> -> vector<8x16xf32>
    %191 = arith.addf %190, %134 : vector<8x16xf32>
    %cst_73 = arith.constant dense<0xFF800000> : vector<8xf32>
    %192 = vector.multi_reduction <maximumf>, %191, %cst_73 [1] : vector<8x16xf32> to vector<8xf32>
    %193 = vector.shape_cast %192 : vector<8xf32> to vector<8x1xf32>
    %194 = vector.broadcast %193 : vector<8x1xf32> to vector<8x16xf32>
    %195 = arith.subf %191, %194 : vector<8x16xf32>
    %196 = math.exp %195 : vector<8x16xf32>
    %cst_74 = arith.constant dense<0.000000e+00> : vector<8xf32>
    %197 = vector.multi_reduction <add>, %196, %cst_74 [1] : vector<8x16xf32> to vector<8xf32>
    %198 = vector.shape_cast %197 : vector<8xf32> to vector<8x1xf32>
    %cst_75 = arith.constant 1.000000e+00 : f32
    %199 = vector.broadcast %cst_75 : f32 to vector<8x1xf32>
    %200 = arith.divf %199, %198 : vector<8x1xf32>
    %201 = vector.broadcast %200 : vector<8x1xf32> to vector<8x16xf32>
    %202 = arith.mulf %196, %201 : vector<8x16xf32>
    %cst_76 = arith.constant dense<0.000000e+00> : vector<8x8xf32>
    %203 = tpu.matmul %202, %189, %cst_76 {dimension_numbers = #tpu.dot_dimension_numbers<[1], [0], [0], [1], [0, 0, 1, 1], [], []>} : vector<8x16xf32>, vector<16x8xf32>, vector<8x8xf32> -> vector<8x8xf32>
    %204 = vector.extract_strided_slice %152 {offsets = [0, 24], sizes = [8, 8], strides = [1, 1]} : vector<8x32xf32> to vector<8x8xf32>
    %205 = vector.extract_strided_slice %147 {offsets = [0, 24], sizes = [16, 8], strides = [1, 1]} : vector<16x32xf32> to vector<16x8xf32>
    %206 = vector.extract_strided_slice %150 {offsets = [0, 24], sizes = [16, 8], strides = [1, 1]} : vector<16x32xf32> to vector<16x8xf32>
    %cst_77 = arith.constant dense<0.000000e+00> : vector<8x16xf32>
    %207 = tpu.matmul %204, %205, %cst_77 {dimension_numbers = #tpu.dot_dimension_numbers<[1], [1], [0], [0], [0, 0, 1, 0], [], []>} : vector<8x8xf32>, vector<16x8xf32>, vector<8x16xf32> -> vector<8x16xf32>
    %208 = arith.addf %207, %134 : vector<8x16xf32>
    %cst_78 = arith.constant dense<0xFF800000> : vector<8xf32>
    %209 = vector.multi_reduction <maximumf>, %208, %cst_78 [1] : vector<8x16xf32> to vector<8xf32>
    %210 = vector.shape_cast %209 : vector<8xf32> to vector<8x1xf32>
    %211 = vector.broadcast %210 : vector<8x1xf32> to vector<8x16xf32>
    %212 = arith.subf %208, %211 : vector<8x16xf32>
    %213 = math.exp %212 : vector<8x16xf32>
    %cst_79 = arith.constant dense<0.000000e+00> : vector<8xf32>
    %214 = vector.multi_reduction <add>, %213, %cst_79 [1] : vector<8x16xf32> to vector<8xf32>
    %215 = vector.shape_cast %214 : vector<8xf32> to vector<8x1xf32>
    %cst_80 = arith.constant 1.000000e+00 : f32
    %216 = vector.broadcast %cst_80 : f32 to vector<8x1xf32>
    %217 = arith.divf %216, %215 : vector<8x1xf32>
    %218 = vector.broadcast %217 : vector<8x1xf32> to vector<8x16xf32>
    %219 = arith.mulf %213, %218 : vector<8x16xf32>
    %cst_81 = arith.constant dense<0.000000e+00> : vector<8x8xf32>
    %220 = tpu.matmul %219, %206, %cst_81 {dimension_numbers = #tpu.dot_dimension_numbers<[1], [0], [0], [1], [0, 0, 1, 1], [], []>} : vector<8x16xf32>, vector<16x8xf32>, vector<8x8xf32> -> vector<8x8xf32>
    %221 = tpu.concatenate %169, %186, %203, %220 in 1 : vector<8x8xf32>, vector<8x8xf32>, vector<8x8xf32>, vector<8x8xf32> -> vector<8x32xf32>
    %cst_82 = arith.constant dense<0.000000e+00> : vector<8x32xf32>
    %222 = tpu.matmul %221, %9, %cst_82 {dimension_numbers = #tpu.dot_dimension_numbers<[1], [0], [0], [1], [0, 0, 1, 1], [], []>} : vector<8x32xf32>, vector<32x32xf32>, vector<8x32xf32> -> vector<8x32xf32>
    %223 = vector.broadcast %138 : vector<1x32xf32> to vector<8x32xf32>
    %224 = arith.addf %222, %223 : vector<8x32xf32>
    %225 = arith.addf %132, %224 : vector<8x32xf32>
    %226 = vector.extract_strided_slice %0 {offsets = [10, 0], sizes = [1, 32], strides = [1, 1]} : vector<15x32xf32> to vector<1x32xf32>
    %227 = vector.extract_strided_slice %0 {offsets = [11, 0], sizes = [1, 32], strides = [1, 1]} : vector<15x32xf32> to vector<1x32xf32>
    %cst_83 = arith.constant dense<0.000000e+00> : vector<8xf32>
    %228 = vector.multi_reduction <add>, %225, %cst_83 [1] : vector<8x32xf32> to vector<8xf32>
    %229 = vector.shape_cast %228 : vector<8xf32> to vector<8x1xf32>
    %cst_84 = arith.constant 3.200000e+01 : f32
    %230 = vector.broadcast %cst_84 : f32 to vector<8x1xf32>
    %231 = arith.divf %229, %230 : vector<8x1xf32>
    %232 = vector.broadcast %231 : vector<8x1xf32> to vector<8x32xf32>
    %233 = arith.subf %225, %232 : vector<8x32xf32>
    %234 = arith.mulf %233, %233 : vector<8x32xf32>
    %cst_85 = arith.constant dense<0.000000e+00> : vector<8xf32>
    %235 = vector.multi_reduction <add>, %234, %cst_85 [1] : vector<8x32xf32> to vector<8xf32>
    %236 = vector.shape_cast %235 : vector<8xf32> to vector<8x1xf32>
    %cst_86 = arith.constant 3.200000e+01 : f32
    %237 = vector.broadcast %cst_86 : f32 to vector<8x1xf32>
    %238 = arith.divf %236, %237 : vector<8x1xf32>
    %239 = vector.broadcast %231 : vector<8x1xf32> to vector<8x32xf32>
    %240 = arith.subf %225, %239 : vector<8x32xf32>
    %cst_87 = arith.constant 9.99999974E-6 : f32
    %241 = vector.broadcast %cst_87 : f32 to vector<8x1xf32>
    %242 = arith.addf %238, %241 : vector<8x1xf32>
    %243 = math.rsqrt %242 : vector<8x1xf32>
    %244 = vector.broadcast %243 : vector<8x1xf32> to vector<8x32xf32>
    %245 = arith.mulf %240, %244 : vector<8x32xf32>
    %246 = vector.broadcast %226 : vector<1x32xf32> to vector<8x32xf32>
    %247 = arith.mulf %245, %246 : vector<8x32xf32>
    %248 = vector.broadcast %227 : vector<1x32xf32> to vector<8x32xf32>
    %249 = arith.addf %247, %248 : vector<8x32xf32>
    %cst_88 = arith.constant dense<0.000000e+00> : vector<8x64xf32>
    %250 = tpu.matmul %249, %11, %cst_88 {dimension_numbers = #tpu.dot_dimension_numbers<[1], [0], [0], [1], [0, 0, 1, 1], [], []>} : vector<8x32xf32>, vector<32x64xf32>, vector<8x64xf32> -> vector<8x64xf32>
    %251 = vector.broadcast %1 : vector<1x64xf32> to vector<8x64xf32>
    %252 = arith.addf %250, %251 : vector<8x64xf32>
    %cst_89 = arith.constant 5.000000e-01 : f32
    %253 = vector.broadcast %cst_89 : f32 to vector<8x64xf32>
    %254 = arith.mulf %253, %252 : vector<8x64xf32>
    %cst_90 = arith.constant 0.707106769 : f32
    %255 = vector.broadcast %cst_90 : f32 to vector<8x64xf32>
    %256 = arith.mulf %252, %255 : vector<8x64xf32>
    %257 = math.erf %256 : vector<8x64xf32>
    %cst_91 = arith.constant 1.000000e+00 : f32
    %258 = vector.broadcast %cst_91 : f32 to vector<8x64xf32>
    %259 = arith.addf %258, %257 : vector<8x64xf32>
    %260 = arith.mulf %254, %259 : vector<8x64xf32>
    %cst_92 = arith.constant dense<0.000000e+00> : vector<8x32xf32>
    %261 = tpu.matmul %260, %13, %cst_92 {dimension_numbers = #tpu.dot_dimension_numbers<[1], [1], [0], [0], [0, 0, 1, 0], [], []>} : vector<8x64xf32>, vector<32x64xf32>, vector<8x32xf32> -> vector<8x32xf32>
    %262 = vector.extract_strided_slice %0 {offsets = [12, 0], sizes = [1, 32], strides = [1, 1]} : vector<15x32xf32> to vector<1x32xf32>
    %263 = vector.broadcast %262 : vector<1x32xf32> to vector<8x32xf32>
    %264 = arith.addf %261, %263 : vector<8x32xf32>
    %265 = arith.addf %249, %264 : vector<8x32xf32>
    %266 = vector.extract_strided_slice %0 {offsets = [13, 0], sizes = [1, 32], strides = [1, 1]} : vector<15x32xf32> to vector<1x32xf32>
    %267 = vector.extract_strided_slice %0 {offsets = [14, 0], sizes = [1, 32], strides = [1, 1]} : vector<15x32xf32> to vector<1x32xf32>
    %cst_93 = arith.constant dense<0.000000e+00> : vector<8xf32>
    %268 = vector.multi_reduction <add>, %265, %cst_93 [1] : vector<8x32xf32> to vector<8xf32>
    %269 = vector.shape_cast %268 : vector<8xf32> to vector<8x1xf32>
    %cst_94 = arith.constant 3.200000e+01 : f32
    %270 = vector.broadcast %cst_94 : f32 to vector<8x1xf32>
    %271 = arith.divf %269, %270 : vector<8x1xf32>
    %272 = vector.broadcast %271 : vector<8x1xf32> to vector<8x32xf32>
    %273 = arith.subf %265, %272 : vector<8x32xf32>
    %274 = arith.mulf %273, %273 : vector<8x32xf32>
    %cst_95 = arith.constant dense<0.000000e+00> : vector<8xf32>
    %275 = vector.multi_reduction <add>, %274, %cst_95 [1] : vector<8x32xf32> to vector<8xf32>
    %276 = vector.shape_cast %275 : vector<8xf32> to vector<8x1xf32>
    %cst_96 = arith.constant 3.200000e+01 : f32
    %277 = vector.broadcast %cst_96 : f32 to vector<8x1xf32>
    %278 = arith.divf %276, %277 : vector<8x1xf32>
    %279 = vector.broadcast %271 : vector<8x1xf32> to vector<8x32xf32>
    %280 = arith.subf %265, %279 : vector<8x32xf32>
    %cst_97 = arith.constant 9.99999974E-6 : f32
    %281 = vector.broadcast %cst_97 : f32 to vector<8x1xf32>
    %282 = arith.addf %278, %281 : vector<8x1xf32>
    %283 = math.rsqrt %282 : vector<8x1xf32>
    %284 = vector.broadcast %283 : vector<8x1xf32> to vector<8x32xf32>
    %285 = arith.mulf %280, %284 : vector<8x32xf32>
    %286 = vector.broadcast %266 : vector<1x32xf32> to vector<8x32xf32>
    %287 = arith.mulf %285, %286 : vector<8x32xf32>
    %288 = vector.broadcast %267 : vector<1x32xf32> to vector<8x32xf32>
    %289 = arith.addf %287, %288 : vector<8x32xf32>
    %cst_98 = arith.constant 0.000000e+00 : f32
    %290 = vector.broadcast %cst_98 : f32 to vector<8x96xf32>
    %291 = tpu.concatenate %289, %290 in 1 : vector<8x32xf32>, vector<8x96xf32> -> vector<8x128xf32>
    %c0_99 = arith.constant 0 : index
    %c0_100 = arith.constant 0 : index
    %c0_101 = arith.constant 0 : index
    %292 = vector.load %arg9[%c0_99, %c0_100, %c0_101] : memref<2x8x128xf32, #tpu.memory_space<vmem>>, vector<1x8x128xf32>
    %293 = vector.shape_cast %292 : vector<1x8x128xf32> to vector<8x128xf32>
    %294 = vector.shape_cast %291 : vector<8x128xf32> to vector<1x8x128xf32>
    tpu.vector_store %arg9[%c0_99, %c0_100, %c0_101], %294 {strides = array<i32>} : memref<2x8x128xf32, #tpu.memory_space<vmem>>, vector<1x8x128xf32>,
    %c1_102 = arith.constant 1 : index
    %c0_103 = arith.constant 0 : index
    %c0_104 = arith.constant 0 : index
    %295 = vector.load %arg0[%c1_102, %c0_103, %c0_104] : memref<2x8x32xf32, #tpu.memory_space<vmem>>, vector<1x8x32xf32>
    %296 = vector.shape_cast %295 : vector<1x8x32xf32> to vector<8x32xf32>
    %c1_105 = arith.constant 1 : index
    %c0_106 = arith.constant 0 : index
    %c0_107 = arith.constant 0 : index
    %297 = vector.load %arg1[%c1_105, %c0_106, %c0_107] : memref<2x16x32xf32, #tpu.memory_space<vmem>>, vector<1x16x32xf32>
    %298 = vector.shape_cast %297 : vector<1x16x32xf32> to vector<16x32xf32>
    %c1_108 = arith.constant 1 : index
    %c0_109 = arith.constant 0 : index
    %c0_110 = arith.constant 0 : index
    %299 = vector.load %arg2[%c1_108, %c0_109, %c0_110] : memref<2x8x8xf32, #tpu.memory_space<vmem>>, vector<1x8x8xf32>
    %300 = vector.shape_cast %299 : vector<1x8x8xf32> to vector<8x8xf32>
    %301 = vector.extract_strided_slice %0 {offsets = [0, 0], sizes = [1, 32], strides = [1, 1]} : vector<15x32xf32> to vector<1x32xf32>
    %302 = vector.extract_strided_slice %0 {offsets = [1, 0], sizes = [1, 32], strides = [1, 1]} : vector<15x32xf32> to vector<1x32xf32>
    %303 = vector.extract_strided_slice %0 {offsets = [2, 0], sizes = [1, 32], strides = [1, 1]} : vector<15x32xf32> to vector<1x32xf32>
    %304 = vector.extract_strided_slice %0 {offsets = [3, 0], sizes = [1, 32], strides = [1, 1]} : vector<15x32xf32> to vector<1x32xf32>
    %cst_111 = arith.constant dense<0.000000e+00> : vector<8x96xf32>
    %305 = tpu.matmul %296, %3, %cst_111 {dimension_numbers = #tpu.dot_dimension_numbers<[1], [0], [0], [1], [0, 0, 1, 1], [], []>} : vector<8x32xf32>, vector<32x96xf32>, vector<8x96xf32> -> vector<8x96xf32>
    %306 = vector.extract_strided_slice %305 {offsets = [0, 0], sizes = [8, 32], strides = [1, 1]} : vector<8x96xf32> to vector<8x32xf32>
    %307 = vector.broadcast %301 : vector<1x32xf32> to vector<8x32xf32>
    %308 = arith.addf %306, %307 : vector<8x32xf32>
    %309 = vector.extract_strided_slice %305 {offsets = [0, 32], sizes = [8, 32], strides = [1, 1]} : vector<8x96xf32> to vector<8x32xf32>
    %310 = vector.broadcast %302 : vector<1x32xf32> to vector<8x32xf32>
    %311 = arith.addf %309, %310 : vector<8x32xf32>
    %312 = vector.extract_strided_slice %305 {offsets = [0, 64], sizes = [8, 32], strides = [1, 1]} : vector<8x96xf32> to vector<8x32xf32>
    %313 = vector.broadcast %303 : vector<1x32xf32> to vector<8x32xf32>
    %314 = arith.addf %312, %313 : vector<8x32xf32>
    %cst_112 = arith.constant 0.353553385 : f32
    %315 = vector.broadcast %cst_112 : f32 to vector<8x32xf32>
    %316 = arith.mulf %308, %315 : vector<8x32xf32>
    %317 = vector.extract_strided_slice %316 {offsets = [0, 0], sizes = [8, 8], strides = [1, 1]} : vector<8x32xf32> to vector<8x8xf32>
    %318 = vector.extract_strided_slice %311 {offsets = [0, 0], sizes = [8, 8], strides = [1, 1]} : vector<8x32xf32> to vector<8x8xf32>
    %319 = vector.extract_strided_slice %314 {offsets = [0, 0], sizes = [8, 8], strides = [1, 1]} : vector<8x32xf32> to vector<8x8xf32>
    %cst_113 = arith.constant dense<0.000000e+00> : vector<8x8xf32>
    %320 = tpu.matmul %317, %318, %cst_113 {dimension_numbers = #tpu.dot_dimension_numbers<[1], [1], [0], [0], [0, 0, 1, 0], [], []>} : vector<8x8xf32>, vector<8x8xf32>, vector<8x8xf32> -> vector<8x8xf32>
    %321 = arith.addf %320, %300 : vector<8x8xf32>
    %cst_114 = arith.constant dense<0xFF800000> : vector<8xf32>
    %322 = vector.multi_reduction <maximumf>, %321, %cst_114 [1] : vector<8x8xf32> to vector<8xf32>
    %323 = vector.shape_cast %322 : vector<8xf32> to vector<8x1xf32>
    %324 = vector.broadcast %323 : vector<8x1xf32> to vector<8x8xf32>
    %325 = arith.subf %321, %324 : vector<8x8xf32>
    %326 = math.exp %325 : vector<8x8xf32>
    %cst_115 = arith.constant dense<0.000000e+00> : vector<8xf32>
    %327 = vector.multi_reduction <add>, %326, %cst_115 [1] : vector<8x8xf32> to vector<8xf32>
    %328 = vector.shape_cast %327 : vector<8xf32> to vector<8x1xf32>
    %cst_116 = arith.constant 1.000000e+00 : f32
    %329 = vector.broadcast %cst_116 : f32 to vector<8x1xf32>
    %330 = arith.divf %329, %328 : vector<8x1xf32>
    %331 = vector.broadcast %330 : vector<8x1xf32> to vector<8x8xf32>
    %332 = arith.mulf %326, %331 : vector<8x8xf32>
    %cst_117 = arith.constant dense<0.000000e+00> : vector<8x8xf32>
    %333 = tpu.matmul %332, %319, %cst_117 {dimension_numbers = #tpu.dot_dimension_numbers<[1], [0], [0], [1], [0, 0, 1, 1], [], []>} : vector<8x8xf32>, vector<8x8xf32>, vector<8x8xf32> -> vector<8x8xf32>
    %334 = vector.extract_strided_slice %316 {offsets = [0, 8], sizes = [8, 8], strides = [1, 1]} : vector<8x32xf32> to vector<8x8xf32>
    %335 = vector.extract_strided_slice %311 {offsets = [0, 8], sizes = [8, 8], strides = [1, 1]} : vector<8x32xf32> to vector<8x8xf32>
    %336 = vector.extract_strided_slice %314 {offsets = [0, 8], sizes = [8, 8], strides = [1, 1]} : vector<8x32xf32> to vector<8x8xf32>
    %cst_118 = arith.constant dense<0.000000e+00> : vector<8x8xf32>
    %337 = tpu.matmul %334, %335, %cst_118 {dimension_numbers = #tpu.dot_dimension_numbers<[1], [1], [0], [0], [0, 0, 1, 0], [], []>} : vector<8x8xf32>, vector<8x8xf32>, vector<8x8xf32> -> vector<8x8xf32>
    %338 = arith.addf %337, %300 : vector<8x8xf32>
    %cst_119 = arith.constant dense<0xFF800000> : vector<8xf32>
    %339 = vector.multi_reduction <maximumf>, %338, %cst_119 [1] : vector<8x8xf32> to vector<8xf32>
    %340 = vector.shape_cast %339 : vector<8xf32> to vector<8x1xf32>
    %341 = vector.broadcast %340 : vector<8x1xf32> to vector<8x8xf32>
    %342 = arith.subf %338, %341 : vector<8x8xf32>
    %343 = math.exp %342 : vector<8x8xf32>
    %cst_120 = arith.constant dense<0.000000e+00> : vector<8xf32>
    %344 = vector.multi_reduction <add>, %343, %cst_120 [1] : vector<8x8xf32> to vector<8xf32>
    %345 = vector.shape_cast %344 : vector<8xf32> to vector<8x1xf32>
    %cst_121 = arith.constant 1.000000e+00 : f32
    %346 = vector.broadcast %cst_121 : f32 to vector<8x1xf32>
    %347 = arith.divf %346, %345 : vector<8x1xf32>
    %348 = vector.broadcast %347 : vector<8x1xf32> to vector<8x8xf32>
    %349 = arith.mulf %343, %348 : vector<8x8xf32>
    %cst_122 = arith.constant dense<0.000000e+00> : vector<8x8xf32>
    %350 = tpu.matmul %349, %336, %cst_122 {dimension_numbers = #tpu.dot_dimension_numbers<[1], [0], [0], [1], [0, 0, 1, 1], [], []>} : vector<8x8xf32>, vector<8x8xf32>, vector<8x8xf32> -> vector<8x8xf32>
    %351 = vector.extract_strided_slice %316 {offsets = [0, 16], sizes = [8, 8], strides = [1, 1]} : vector<8x32xf32> to vector<8x8xf32>
    %352 = vector.extract_strided_slice %311 {offsets = [0, 16], sizes = [8, 8], strides = [1, 1]} : vector<8x32xf32> to vector<8x8xf32>
    %353 = vector.extract_strided_slice %314 {offsets = [0, 16], sizes = [8, 8], strides = [1, 1]} : vector<8x32xf32> to vector<8x8xf32>
    %cst_123 = arith.constant dense<0.000000e+00> : vector<8x8xf32>
    %354 = tpu.matmul %351, %352, %cst_123 {dimension_numbers = #tpu.dot_dimension_numbers<[1], [1], [0], [0], [0, 0, 1, 0], [], []>} : vector<8x8xf32>, vector<8x8xf32>, vector<8x8xf32> -> vector<8x8xf32>
    %355 = arith.addf %354, %300 : vector<8x8xf32>
    %cst_124 = arith.constant dense<0xFF800000> : vector<8xf32>
    %356 = vector.multi_reduction <maximumf>, %355, %cst_124 [1] : vector<8x8xf32> to vector<8xf32>
    %357 = vector.shape_cast %356 : vector<8xf32> to vector<8x1xf32>
    %358 = vector.broadcast %357 : vector<8x1xf32> to vector<8x8xf32>
    %359 = arith.subf %355, %358 : vector<8x8xf32>
    %360 = math.exp %359 : vector<8x8xf32>
    %cst_125 = arith.constant dense<0.000000e+00> : vector<8xf32>
    %361 = vector.multi_reduction <add>, %360, %cst_125 [1] : vector<8x8xf32> to vector<8xf32>
    %362 = vector.shape_cast %361 : vector<8xf32> to vector<8x1xf32>
    %cst_126 = arith.constant 1.000000e+00 : f32
    %363 = vector.broadcast %cst_126 : f32 to vector<8x1xf32>
    %364 = arith.divf %363, %362 : vector<8x1xf32>
    %365 = vector.broadcast %364 : vector<8x1xf32> to vector<8x8xf32>
    %366 = arith.mulf %360, %365 : vector<8x8xf32>
    %cst_127 = arith.constant dense<0.000000e+00> : vector<8x8xf32>
    %367 = tpu.matmul %366, %353, %cst_127 {dimension_numbers = #tpu.dot_dimension_numbers<[1], [0], [0], [1], [0, 0, 1, 1], [], []>} : vector<8x8xf32>, vector<8x8xf32>, vector<8x8xf32> -> vector<8x8xf32>
    %368 = vector.extract_strided_slice %316 {offsets = [0, 24], sizes = [8, 8], strides = [1, 1]} : vector<8x32xf32> to vector<8x8xf32>
    %369 = vector.extract_strided_slice %311 {offsets = [0, 24], sizes = [8, 8], strides = [1, 1]} : vector<8x32xf32> to vector<8x8xf32>
    %370 = vector.extract_strided_slice %314 {offsets = [0, 24], sizes = [8, 8], strides = [1, 1]} : vector<8x32xf32> to vector<8x8xf32>
    %cst_128 = arith.constant dense<0.000000e+00> : vector<8x8xf32>
    %371 = tpu.matmul %368, %369, %cst_128 {dimension_numbers = #tpu.dot_dimension_numbers<[1], [1], [0], [0], [0, 0, 1, 0], [], []>} : vector<8x8xf32>, vector<8x8xf32>, vector<8x8xf32> -> vector<8x8xf32>
    %372 = arith.addf %371, %300 : vector<8x8xf32>
    %cst_129 = arith.constant dense<0xFF800000> : vector<8xf32>
    %373 = vector.multi_reduction <maximumf>, %372, %cst_129 [1] : vector<8x8xf32> to vector<8xf32>
    %374 = vector.shape_cast %373 : vector<8xf32> to vector<8x1xf32>
    %375 = vector.broadcast %374 : vector<8x1xf32> to vector<8x8xf32>
    %376 = arith.subf %372, %375 : vector<8x8xf32>
    %377 = math.exp %376 : vector<8x8xf32>
    %cst_130 = arith.constant dense<0.000000e+00> : vector<8xf32>
    %378 = vector.multi_reduction <add>, %377, %cst_130 [1] : vector<8x8xf32> to vector<8xf32>
    %379 = vector.shape_cast %378 : vector<8xf32> to vector<8x1xf32>
    %cst_131 = arith.constant 1.000000e+00 : f32
    %380 = vector.broadcast %cst_131 : f32 to vector<8x1xf32>
    %381 = arith.divf %380, %379 : vector<8x1xf32>
    %382 = vector.broadcast %381 : vector<8x1xf32> to vector<8x8xf32>
    %383 = arith.mulf %377, %382 : vector<8x8xf32>
    %cst_132 = arith.constant dense<0.000000e+00> : vector<8x8xf32>
    %384 = tpu.matmul %383, %370, %cst_132 {dimension_numbers = #tpu.dot_dimension_numbers<[1], [0], [0], [1], [0, 0, 1, 1], [], []>} : vector<8x8xf32>, vector<8x8xf32>, vector<8x8xf32> -> vector<8x8xf32>
    %385 = tpu.concatenate %333, %350, %367, %384 in 1 : vector<8x8xf32>, vector<8x8xf32>, vector<8x8xf32>, vector<8x8xf32> -> vector<8x32xf32>
    %cst_133 = arith.constant dense<0.000000e+00> : vector<8x32xf32>
    %386 = tpu.matmul %385, %7, %cst_133 {dimension_numbers = #tpu.dot_dimension_numbers<[1], [0], [0], [1], [0, 0, 1, 1], [], []>} : vector<8x32xf32>, vector<32x32xf32>, vector<8x32xf32> -> vector<8x32xf32>
    %387 = vector.broadcast %304 : vector<1x32xf32> to vector<8x32xf32>
    %388 = arith.addf %386, %387 : vector<8x32xf32>
    %389 = arith.addf %296, %388 : vector<8x32xf32>
    %390 = vector.extract_strided_slice %0 {offsets = [4, 0], sizes = [1, 32], strides = [1, 1]} : vector<15x32xf32> to vector<1x32xf32>
    %391 = vector.extract_strided_slice %0 {offsets = [5, 0], sizes = [1, 32], strides = [1, 1]} : vector<15x32xf32> to vector<1x32xf32>
    %cst_134 = arith.constant dense<0.000000e+00> : vector<8xf32>
    %392 = vector.multi_reduction <add>, %389, %cst_134 [1] : vector<8x32xf32> to vector<8xf32>
    %393 = vector.shape_cast %392 : vector<8xf32> to vector<8x1xf32>
    %cst_135 = arith.constant 3.200000e+01 : f32
    %394 = vector.broadcast %cst_135 : f32 to vector<8x1xf32>
    %395 = arith.divf %393, %394 : vector<8x1xf32>
    %396 = vector.broadcast %395 : vector<8x1xf32> to vector<8x32xf32>
    %397 = arith.subf %389, %396 : vector<8x32xf32>
    %398 = arith.mulf %397, %397 : vector<8x32xf32>
    %cst_136 = arith.constant dense<0.000000e+00> : vector<8xf32>
    %399 = vector.multi_reduction <add>, %398, %cst_136 [1] : vector<8x32xf32> to vector<8xf32>
    %400 = vector.shape_cast %399 : vector<8xf32> to vector<8x1xf32>
    %cst_137 = arith.constant 3.200000e+01 : f32
    %401 = vector.broadcast %cst_137 : f32 to vector<8x1xf32>
    %402 = arith.divf %400, %401 : vector<8x1xf32>
    %403 = vector.broadcast %395 : vector<8x1xf32> to vector<8x32xf32>
    %404 = arith.subf %389, %403 : vector<8x32xf32>
    %cst_138 = arith.constant 9.99999974E-6 : f32
    %405 = vector.broadcast %cst_138 : f32 to vector<8x1xf32>
    %406 = arith.addf %402, %405 : vector<8x1xf32>
    %407 = math.rsqrt %406 : vector<8x1xf32>
    %408 = vector.broadcast %407 : vector<8x1xf32> to vector<8x32xf32>
    %409 = arith.mulf %404, %408 : vector<8x32xf32>
    %410 = vector.broadcast %390 : vector<1x32xf32> to vector<8x32xf32>
    %411 = arith.mulf %409, %410 : vector<8x32xf32>
    %412 = vector.broadcast %391 : vector<1x32xf32> to vector<8x32xf32>
    %413 = arith.addf %411, %412 : vector<8x32xf32>
    %c1_139 = arith.constant 1 : index
    %c0_140 = arith.constant 0 : index
    %c0_141 = arith.constant 0 : index
    %414 = vector.load %arg3[%c1_139, %c0_140, %c0_141] : memref<2x8x16xf32, #tpu.memory_space<vmem>>, vector<1x8x16xf32>
    %415 = vector.shape_cast %414 : vector<1x8x16xf32> to vector<8x16xf32>
    %416 = vector.extract_strided_slice %0 {offsets = [6, 0], sizes = [1, 32], strides = [1, 1]} : vector<15x32xf32> to vector<1x32xf32>
    %417 = vector.extract_strided_slice %0 {offsets = [7, 0], sizes = [1, 32], strides = [1, 1]} : vector<15x32xf32> to vector<1x32xf32>
    %418 = vector.extract_strided_slice %0 {offsets = [8, 0], sizes = [1, 32], strides = [1, 1]} : vector<15x32xf32> to vector<1x32xf32>
    %419 = vector.extract_strided_slice %0 {offsets = [9, 0], sizes = [1, 32], strides = [1, 1]} : vector<15x32xf32> to vector<1x32xf32>
    %420 = vector.extract_strided_slice %5 {offsets = [0, 0], sizes = [32, 32], strides = [1, 1]} : vector<32x96xf32> to vector<32x32xf32>
    %cst_142 = arith.constant dense<0.000000e+00> : vector<8x32xf32>
    %421 = tpu.matmul %413, %420, %cst_142 {dimension_numbers = #tpu.dot_dimension_numbers<[1], [0], [0], [1], [0, 0, 1, 1], [], []>} : vector<8x32xf32>, vector<32x32xf32>, vector<8x32xf32> -> vector<8x32xf32>
    %422 = vector.broadcast %416 : vector<1x32xf32> to vector<8x32xf32>
    %423 = arith.addf %421, %422 : vector<8x32xf32>
    %424 = vector.extract_strided_slice %5 {offsets = [0, 32], sizes = [32, 64], strides = [1, 1]} : vector<32x96xf32> to vector<32x64xf32>
    %cst_143 = arith.constant dense<0.000000e+00> : vector<16x64xf32>
    %425 = tpu.matmul %298, %424, %cst_143 {dimension_numbers = #tpu.dot_dimension_numbers<[1], [0], [0], [1], [0, 0, 1, 1], [], []>} : vector<16x32xf32>, vector<32x64xf32>, vector<16x64xf32> -> vector<16x64xf32>
    %426 = vector.extract_strided_slice %425 {offsets = [0, 0], sizes = [16, 32], strides = [1, 1]} : vector<16x64xf32> to vector<16x32xf32>
    %427 = vector.broadcast %417 : vector<1x32xf32> to vector<16x32xf32>
    %428 = arith.addf %426, %427 : vector<16x32xf32>
    %429 = vector.extract_strided_slice %425 {offsets = [0, 32], sizes = [16, 32], strides = [1, 1]} : vector<16x64xf32> to vector<16x32xf32>
    %430 = vector.broadcast %418 : vector<1x32xf32> to vector<16x32xf32>
    %431 = arith.addf %429, %430 : vector<16x32xf32>
    %cst_144 = arith.constant 0.353553385 : f32
    %432 = vector.broadcast %cst_144 : f32 to vector<8x32xf32>
    %433 = arith.mulf %423, %432 : vector<8x32xf32>
    %434 = vector.extract_strided_slice %433 {offsets = [0, 0], sizes = [8, 8], strides = [1, 1]} : vector<8x32xf32> to vector<8x8xf32>
    %435 = vector.extract_strided_slice %428 {offsets = [0, 0], sizes = [16, 8], strides = [1, 1]} : vector<16x32xf32> to vector<16x8xf32>
    %436 = vector.extract_strided_slice %431 {offsets = [0, 0], sizes = [16, 8], strides = [1, 1]} : vector<16x32xf32> to vector<16x8xf32>
    %cst_145 = arith.constant dense<0.000000e+00> : vector<8x16xf32>
    %437 = tpu.matmul %434, %435, %cst_145 {dimension_numbers = #tpu.dot_dimension_numbers<[1], [1], [0], [0], [0, 0, 1, 0], [], []>} : vector<8x8xf32>, vector<16x8xf32>, vector<8x16xf32> -> vector<8x16xf32>
    %438 = arith.addf %437, %415 : vector<8x16xf32>
    %cst_146 = arith.constant dense<0xFF800000> : vector<8xf32>
    %439 = vector.multi_reduction <maximumf>, %438, %cst_146 [1] : vector<8x16xf32> to vector<8xf32>
    %440 = vector.shape_cast %439 : vector<8xf32> to vector<8x1xf32>
    %441 = vector.broadcast %440 : vector<8x1xf32> to vector<8x16xf32>
    %442 = arith.subf %438, %441 : vector<8x16xf32>
    %443 = math.exp %442 : vector<8x16xf32>
    %cst_147 = arith.constant dense<0.000000e+00> : vector<8xf32>
    %444 = vector.multi_reduction <add>, %443, %cst_147 [1] : vector<8x16xf32> to vector<8xf32>
    %445 = vector.shape_cast %444 : vector<8xf32> to vector<8x1xf32>
    %cst_148 = arith.constant 1.000000e+00 : f32
    %446 = vector.broadcast %cst_148 : f32 to vector<8x1xf32>
    %447 = arith.divf %446, %445 : vector<8x1xf32>
    %448 = vector.broadcast %447 : vector<8x1xf32> to vector<8x16xf32>
    %449 = arith.mulf %443, %448 : vector<8x16xf32>
    %cst_149 = arith.constant dense<0.000000e+00> : vector<8x8xf32>
    %450 = tpu.matmul %449, %436, %cst_149 {dimension_numbers = #tpu.dot_dimension_numbers<[1], [0], [0], [1], [0, 0, 1, 1], [], []>} : vector<8x16xf32>, vector<16x8xf32>, vector<8x8xf32> -> vector<8x8xf32>
    %451 = vector.extract_strided_slice %433 {offsets = [0, 8], sizes = [8, 8], strides = [1, 1]} : vector<8x32xf32> to vector<8x8xf32>
    %452 = vector.extract_strided_slice %428 {offsets = [0, 8], sizes = [16, 8], strides = [1, 1]} : vector<16x32xf32> to vector<16x8xf32>
    %453 = vector.extract_strided_slice %431 {offsets = [0, 8], sizes = [16, 8], strides = [1, 1]} : vector<16x32xf32> to vector<16x8xf32>
    %cst_150 = arith.constant dense<0.000000e+00> : vector<8x16xf32>
    %454 = tpu.matmul %451, %452, %cst_150 {dimension_numbers = #tpu.dot_dimension_numbers<[1], [1], [0], [0], [0, 0, 1, 0], [], []>} : vector<8x8xf32>, vector<16x8xf32>, vector<8x16xf32> -> vector<8x16xf32>
    %455 = arith.addf %454, %415 : vector<8x16xf32>
    %cst_151 = arith.constant dense<0xFF800000> : vector<8xf32>
    %456 = vector.multi_reduction <maximumf>, %455, %cst_151 [1] : vector<8x16xf32> to vector<8xf32>
    %457 = vector.shape_cast %456 : vector<8xf32> to vector<8x1xf32>
    %458 = vector.broadcast %457 : vector<8x1xf32> to vector<8x16xf32>
    %459 = arith.subf %455, %458 : vector<8x16xf32>
    %460 = math.exp %459 : vector<8x16xf32>
    %cst_152 = arith.constant dense<0.000000e+00> : vector<8xf32>
    %461 = vector.multi_reduction <add>, %460, %cst_152 [1] : vector<8x16xf32> to vector<8xf32>
    %462 = vector.shape_cast %461 : vector<8xf32> to vector<8x1xf32>
    %cst_153 = arith.constant 1.000000e+00 : f32
    %463 = vector.broadcast %cst_153 : f32 to vector<8x1xf32>
    %464 = arith.divf %463, %462 : vector<8x1xf32>
    %465 = vector.broadcast %464 : vector<8x1xf32> to vector<8x16xf32>
    %466 = arith.mulf %460, %465 : vector<8x16xf32>
    %cst_154 = arith.constant dense<0.000000e+00> : vector<8x8xf32>
    %467 = tpu.matmul %466, %453, %cst_154 {dimension_numbers = #tpu.dot_dimension_numbers<[1], [0], [0], [1], [0, 0, 1, 1], [], []>} : vector<8x16xf32>, vector<16x8xf32>, vector<8x8xf32> -> vector<8x8xf32>
    %468 = vector.extract_strided_slice %433 {offsets = [0, 16], sizes = [8, 8], strides = [1, 1]} : vector<8x32xf32> to vector<8x8xf32>
    %469 = vector.extract_strided_slice %428 {offsets = [0, 16], sizes = [16, 8], strides = [1, 1]} : vector<16x32xf32> to vector<16x8xf32>
    %470 = vector.extract_strided_slice %431 {offsets = [0, 16], sizes = [16, 8], strides = [1, 1]} : vector<16x32xf32> to vector<16x8xf32>
    %cst_155 = arith.constant dense<0.000000e+00> : vector<8x16xf32>
    %471 = tpu.matmul %468, %469, %cst_155 {dimension_numbers = #tpu.dot_dimension_numbers<[1], [1], [0], [0], [0, 0, 1, 0], [], []>} : vector<8x8xf32>, vector<16x8xf32>, vector<8x16xf32> -> vector<8x16xf32>
    %472 = arith.addf %471, %415 : vector<8x16xf32>
    %cst_156 = arith.constant dense<0xFF800000> : vector<8xf32>
    %473 = vector.multi_reduction <maximumf>, %472, %cst_156 [1] : vector<8x16xf32> to vector<8xf32>
    %474 = vector.shape_cast %473 : vector<8xf32> to vector<8x1xf32>
    %475 = vector.broadcast %474 : vector<8x1xf32> to vector<8x16xf32>
    %476 = arith.subf %472, %475 : vector<8x16xf32>
    %477 = math.exp %476 : vector<8x16xf32>
    %cst_157 = arith.constant dense<0.000000e+00> : vector<8xf32>
    %478 = vector.multi_reduction <add>, %477, %cst_157 [1] : vector<8x16xf32> to vector<8xf32>
    %479 = vector.shape_cast %478 : vector<8xf32> to vector<8x1xf32>
    %cst_158 = arith.constant 1.000000e+00 : f32
    %480 = vector.broadcast %cst_158 : f32 to vector<8x1xf32>
    %481 = arith.divf %480, %479 : vector<8x1xf32>
    %482 = vector.broadcast %481 : vector<8x1xf32> to vector<8x16xf32>
    %483 = arith.mulf %477, %482 : vector<8x16xf32>
    %cst_159 = arith.constant dense<0.000000e+00> : vector<8x8xf32>
    %484 = tpu.matmul %483, %470, %cst_159 {dimension_numbers = #tpu.dot_dimension_numbers<[1], [0], [0], [1], [0, 0, 1, 1], [], []>} : vector<8x16xf32>, vector<16x8xf32>, vector<8x8xf32> -> vector<8x8xf32>
    %485 = vector.extract_strided_slice %433 {offsets = [0, 24], sizes = [8, 8], strides = [1, 1]} : vector<8x32xf32> to vector<8x8xf32>
    %486 = vector.extract_strided_slice %428 {offsets = [0, 24], sizes = [16, 8], strides = [1, 1]} : vector<16x32xf32> to vector<16x8xf32>
    %487 = vector.extract_strided_slice %431 {offsets = [0, 24], sizes = [16, 8], strides = [1, 1]} : vector<16x32xf32> to vector<16x8xf32>
    %cst_160 = arith.constant dense<0.000000e+00> : vector<8x16xf32>
    %488 = tpu.matmul %485, %486, %cst_160 {dimension_numbers = #tpu.dot_dimension_numbers<[1], [1], [0], [0], [0, 0, 1, 0], [], []>} : vector<8x8xf32>, vector<16x8xf32>, vector<8x16xf32> -> vector<8x16xf32>
    %489 = arith.addf %488, %415 : vector<8x16xf32>
    %cst_161 = arith.constant dense<0xFF800000> : vector<8xf32>
    %490 = vector.multi_reduction <maximumf>, %489, %cst_161 [1] : vector<8x16xf32> to vector<8xf32>
    %491 = vector.shape_cast %490 : vector<8xf32> to vector<8x1xf32>
    %492 = vector.broadcast %491 : vector<8x1xf32> to vector<8x16xf32>
    %493 = arith.subf %489, %492 : vector<8x16xf32>
    %494 = math.exp %493 : vector<8x16xf32>
    %cst_162 = arith.constant dense<0.000000e+00> : vector<8xf32>
    %495 = vector.multi_reduction <add>, %494, %cst_162 [1] : vector<8x16xf32> to vector<8xf32>
    %496 = vector.shape_cast %495 : vector<8xf32> to vector<8x1xf32>
    %cst_163 = arith.constant 1.000000e+00 : f32
    %497 = vector.broadcast %cst_163 : f32 to vector<8x1xf32>
    %498 = arith.divf %497, %496 : vector<8x1xf32>
    %499 = vector.broadcast %498 : vector<8x1xf32> to vector<8x16xf32>
    %500 = arith.mulf %494, %499 : vector<8x16xf32>
    %cst_164 = arith.constant dense<0.000000e+00> : vector<8x8xf32>
    %501 = tpu.matmul %500, %487, %cst_164 {dimension_numbers = #tpu.dot_dimension_numbers<[1], [0], [0], [1], [0, 0, 1, 1], [], []>} : vector<8x16xf32>, vector<16x8xf32>, vector<8x8xf32> -> vector<8x8xf32>
    %502 = tpu.concatenate %450, %467, %484, %501 in 1 : vector<8x8xf32>, vector<8x8xf32>, vector<8x8xf32>, vector<8x8xf32> -> vector<8x32xf32>
    %cst_165 = arith.constant dense<0.000000e+00> : vector<8x32xf32>
    %503 = tpu.matmul %502, %9, %cst_165 {dimension_numbers = #tpu.dot_dimension_numbers<[1], [0], [0], [1], [0, 0, 1, 1], [], []>} : vector<8x32xf32>, vector<32x32xf32>, vector<8x32xf32> -> vector<8x32xf32>
    %504 = vector.broadcast %419 : vector<1x32xf32> to vector<8x32xf32>
    %505 = arith.addf %503, %504 : vector<8x32xf32>
    %506 = arith.addf %413, %505 : vector<8x32xf32>
    %507 = vector.extract_strided_slice %0 {offsets = [10, 0], sizes = [1, 32], strides = [1, 1]} : vector<15x32xf32> to vector<1x32xf32>
    %508 = vector.extract_strided_slice %0 {offsets = [11, 0], sizes = [1, 32], strides = [1, 1]} : vector<15x32xf32> to vector<1x32xf32>
    %cst_166 = arith.constant dense<0.000000e+00> : vector<8xf32>
    %509 = vector.multi_reduction <add>, %506, %cst_166 [1] : vector<8x32xf32> to vector<8xf32>
    %510 = vector.shape_cast %509 : vector<8xf32> to vector<8x1xf32>
    %cst_167 = arith.constant 3.200000e+01 : f32
    %511 = vector.broadcast %cst_167 : f32 to vector<8x1xf32>
    %512 = arith.divf %510, %511 : vector<8x1xf32>
    %513 = vector.broadcast %512 : vector<8x1xf32> to vector<8x32xf32>
    %514 = arith.subf %506, %513 : vector<8x32xf32>
    %515 = arith.mulf %514, %514 : vector<8x32xf32>
    %cst_168 = arith.constant dense<0.000000e+00> : vector<8xf32>
    %516 = vector.multi_reduction <add>, %515, %cst_168 [1] : vector<8x32xf32> to vector<8xf32>
    %517 = vector.shape_cast %516 : vector<8xf32> to vector<8x1xf32>
    %cst_169 = arith.constant 3.200000e+01 : f32
    %518 = vector.broadcast %cst_169 : f32 to vector<8x1xf32>
    %519 = arith.divf %517, %518 : vector<8x1xf32>
    %520 = vector.broadcast %512 : vector<8x1xf32> to vector<8x32xf32>
    %521 = arith.subf %506, %520 : vector<8x32xf32>
    %cst_170 = arith.constant 9.99999974E-6 : f32
    %522 = vector.broadcast %cst_170 : f32 to vector<8x1xf32>
    %523 = arith.addf %519, %522 : vector<8x1xf32>
    %524 = math.rsqrt %523 : vector<8x1xf32>
    %525 = vector.broadcast %524 : vector<8x1xf32> to vector<8x32xf32>
    %526 = arith.mulf %521, %525 : vector<8x32xf32>
    %527 = vector.broadcast %507 : vector<1x32xf32> to vector<8x32xf32>
    %528 = arith.mulf %526, %527 : vector<8x32xf32>
    %529 = vector.broadcast %508 : vector<1x32xf32> to vector<8x32xf32>
    %530 = arith.addf %528, %529 : vector<8x32xf32>
    %cst_171 = arith.constant dense<0.000000e+00> : vector<8x64xf32>
    %531 = tpu.matmul %530, %11, %cst_171 {dimension_numbers = #tpu.dot_dimension_numbers<[1], [0], [0], [1], [0, 0, 1, 1], [], []>} : vector<8x32xf32>, vector<32x64xf32>, vector<8x64xf32> -> vector<8x64xf32>
    %532 = vector.broadcast %1 : vector<1x64xf32> to vector<8x64xf32>
    %533 = arith.addf %531, %532 : vector<8x64xf32>
    %cst_172 = arith.constant 5.000000e-01 : f32
    %534 = vector.broadcast %cst_172 : f32 to vector<8x64xf32>
    %535 = arith.mulf %534, %533 : vector<8x64xf32>
    %cst_173 = arith.constant 0.707106769 : f32
    %536 = vector.broadcast %cst_173 : f32 to vector<8x64xf32>
    %537 = arith.mulf %533, %536 : vector<8x64xf32>
    %538 = math.erf %537 : vector<8x64xf32>
    %cst_174 = arith.constant 1.000000e+00 : f32
    %539 = vector.broadcast %cst_174 : f32 to vector<8x64xf32>
    %540 = arith.addf %539, %538 : vector<8x64xf32>
    %541 = arith.mulf %535, %540 : vector<8x64xf32>
    %cst_175 = arith.constant dense<0.000000e+00> : vector<8x32xf32>
    %542 = tpu.matmul %541, %13, %cst_175 {dimension_numbers = #tpu.dot_dimension_numbers<[1], [1], [0], [0], [0, 0, 1, 0], [], []>} : vector<8x64xf32>, vector<32x64xf32>, vector<8x32xf32> -> vector<8x32xf32>
    %543 = vector.extract_strided_slice %0 {offsets = [12, 0], sizes = [1, 32], strides = [1, 1]} : vector<15x32xf32> to vector<1x32xf32>
    %544 = vector.broadcast %543 : vector<1x32xf32> to vector<8x32xf32>
    %545 = arith.addf %542, %544 : vector<8x32xf32>
    %546 = arith.addf %530, %545 : vector<8x32xf32>
    %547 = vector.extract_strided_slice %0 {offsets = [13, 0], sizes = [1, 32], strides = [1, 1]} : vector<15x32xf32> to vector<1x32xf32>
    %548 = vector.extract_strided_slice %0 {offsets = [14, 0], sizes = [1, 32], strides = [1, 1]} : vector<15x32xf32> to vector<1x32xf32>
    %cst_176 = arith.constant dense<0.000000e+00> : vector<8xf32>
    %549 = vector.multi_reduction <add>, %546, %cst_176 [1] : vector<8x32xf32> to vector<8xf32>
    %550 = vector.shape_cast %549 : vector<8xf32> to vector<8x1xf32>
    %cst_177 = arith.constant 3.200000e+01 : f32
    %551 = vector.broadcast %cst_177 : f32 to vector<8x1xf32>
    %552 = arith.divf %550, %551 : vector<8x1xf32>
    %553 = vector.broadcast %552 : vector<8x1xf32> to vector<8x32xf32>
    %554 = arith.subf %546, %553 : vector<8x32xf32>
    %555 = arith.mulf %554, %554 : vector<8x32xf32>
    %cst_178 = arith.constant dense<0.000000e+00> : vector<8xf32>
    %556 = vector.multi_reduction <add>, %555, %cst_178 [1] : vector<8x32xf32> to vector<8xf32>
    %557 = vector.shape_cast %556 : vector<8xf32> to vector<8x1xf32>
    %cst_179 = arith.constant 3.200000e+01 : f32
    %558 = vector.broadcast %cst_179 : f32 to vector<8x1xf32>
    %559 = arith.divf %557, %558 : vector<8x1xf32>
    %560 = vector.broadcast %552 : vector<8x1xf32> to vector<8x32xf32>
    %561 = arith.subf %546, %560 : vector<8x32xf32>
    %cst_180 = arith.constant 9.99999974E-6 : f32
    %562 = vector.broadcast %cst_180 : f32 to vector<8x1xf32>
    %563 = arith.addf %559, %562 : vector<8x1xf32>
    %564 = math.rsqrt %563 : vector<8x1xf32>
    %565 = vector.broadcast %564 : vector<8x1xf32> to vector<8x32xf32>
    %566 = arith.mulf %561, %565 : vector<8x32xf32>
    %567 = vector.broadcast %547 : vector<1x32xf32> to vector<8x32xf32>
    %568 = arith.mulf %566, %567 : vector<8x32xf32>
    %569 = vector.broadcast %548 : vector<1x32xf32> to vector<8x32xf32>
    %570 = arith.addf %568, %569 : vector<8x32xf32>
    %cst_181 = arith.constant 0.000000e+00 : f32
    %571 = vector.broadcast %cst_181 : f32 to vector<8x96xf32>
    %572 = tpu.concatenate %570, %571 in 1 : vector<8x32xf32>, vector<8x96xf32> -> vector<8x128xf32>
    %c1_182 = arith.constant 1 : index
    %c0_183 = arith.constant 0 : index
    %c0_184 = arith.constant 0 : index
    %573 = vector.load %arg9[%c1_182, %c0_183, %c0_184] : memref<2x8x128xf32, #tpu.memory_space<vmem>>, vector<1x8x128xf32>
    %574 = vector.shape_cast %573 : vector<1x8x128xf32> to vector<8x128xf32>
    %575 = vector.shape_cast %572 : vector<8x128xf32> to vector<1x8x128xf32>
    tpu.vector_store %arg9[%c1_182, %c0_183, %c0_184], %575 {strides = array<i32>} : memref<2x8x128xf32, #tpu.memory_space<vmem>>, vector<1x8x128xf32>,
    return
  }
}

</mosaic_0001>

<bundles_post_ra>
// kernel: tpu_custom_call.1
= control target key start
LH: loop header
LB: loop body
LE: loop exit
PB: predicated region body
PF: predicated region fallthrough
CT: control target
= control target key end

     0   :  { %14 = vsyncpa [#allocation3], 0  ;;  %s6013_s0 = inlined_call_operand.hbm [shape: f32[2,8,32], index: 0, kind: input, shape index: {}]   ;;  %s6014_s1 = inlined_call_operand.hbm [shape: f32[2,16,32], index: 1, kind: input, shape index: {}]   ;;  %s6015_s2 = inlined_call_operand.hbm [shape: f32[2,8,8], index: 2, kind: input, shape index: {}]   ;;  %s6016_s3 = inlined_call_operand.hbm [shape: f32[2,8,16], index: 3, kind: input, shape index: {}]   ;;  %s6017_s4 = inlined_call_operand.hbm [shape: f32[2,32,96], index: 4, kind: input, shape index: {}]   ;;  %s6018_s5 = inlined_call_operand.hbm [shape: f32[2,32,32], index: 5, kind: input, shape index: {}]   ;;  %s6019_s6 = inlined_call_operand.hbm [shape: f32[2,32,64], index: 6, kind: input, shape index: {}]   ;;  %s6020_s7 = inlined_call_operand.vmem [shape: f32[1,64], index: 7, kind: input, shape index: {}]   ;;  %s6021_s8 = inlined_call_operand.hbm [shape: f32[15,32], index: 8, kind: input, shape index: {}]   ;;  %s6022_s9 = inlined_call_operand.hbm [shape: f32[2,8,128], index: 9, kind: output, shape index: {}]  }
   0x1   :  { %15 = vsyncpa [#allocation6], 0 }
   0x2   :  { %16 = vsyncpa [#allocation9], 0 }
   0x3   :  { %17 = vsyncpa [#allocation12], 0 }
   0x4   :  { %18 = vsyncpa [#allocation15], 0 }
   0x5   :  { %19 = vsyncpa [#allocation4], 0  ;;  %s5137_s30 = smov [#allocation5]   ;;  %s5138_s11 = smov [#allocation8]  }
   0x6   :  { %s37_s10 = sshll.u32 %s5137_s30, 4  ;;  %s61_s12 = sshll.u32 %s5138_s11, 4  ;;  %s38_s10 = int_to_ptr.vmem [resolvable:$true] %s37_s10  ;;  %s62_s12 = int_to_ptr.vmem [resolvable:$true] %s61_s12 }
   0x7   :  { %s4953_s13 = scalar_lea.vmem %s38_s10, 512  ;;  %p4958_p1 = scmp.lt.s32.totalorder %s38_s10, %s38_s10 }
   0x8   :  { %p4954_p0 = scmp.ne.s32.totalorder %s38_s10, %s4953_s13  ;;  %p4959_p2 = scmp.lt.s32.totalorder %s4953_s13, %s4953_s13 }
   0xa   :  { %p4960_p3 = por %p4959_p2, %p4958_p1 }
   0xc   :  { %p4961_p4 = pnand %p4960_p3, %p4954_p0 }
   0xe   :  { %4964 = shalt.err (!%p4961_p4)
}
   0xf   :  { %s5139_s14 = smov 128   ;;  %s5140_s15 = smov 8  }
  0x10   :  { %43 = dma.hbm_to_vmem [thread:$0]  %s6014_s1, 512, %s38_s10, [#allocation6], %s5139_s14, %s5139_s14, %s5140_s15  }
  0x11   :  { %s4973_s18 = scalar_lea.vmem %s62_s12, 256  ;;  %p4978_p6 = scmp.lt.s32.totalorder %s62_s12, %s62_s12 }
  0x12   :  { %p4974_p5 = scmp.ne.s32.totalorder %s62_s12, %s4973_s18  ;;  %p4979_p7 = scmp.lt.s32.totalorder %s4973_s18, %s4973_s18 }
  0x14   :  { %p4980_p8 = por %p4979_p7, %p4978_p6 }
  0x16   :  { %p4981_p9 = pnand %p4980_p8, %p4974_p5 }
  0x18   :  { %4984 = shalt.err (!%p4981_p9)
}
  0x19   :  { %67 = dma.hbm_to_vmem [thread:$0]  %s6016_s3, 256, %s62_s12, [#allocation9], %s5139_s14, %s5139_s14, %s5140_s15  }
  0x1a   :  { %s5141_s21 = smov [#allocation11]   ;;  %s5142_s23 = smov [#allocation2]  }
  0x1b   :  { %s85_s22 = sshll.u32 %s5141_s21, 4  ;;  %s25_s24 = sshll.u32 %s5142_s23, 4  ;;  %s86_s22 = int_to_ptr.vmem [resolvable:$true] %s85_s22  ;;  %s26_s24 = int_to_ptr.vmem [resolvable:$true] %s25_s24 }
  0x1c   :  { %s4993_s1 = scalar_lea.vmem %s86_s22, 1024  ;;  %p4998_p11 = scmp.lt.s32.totalorder %s86_s22, %s86_s22 }
  0x1d   :  { %p4994_p10 = scmp.ne.s32.totalorder %s86_s22, %s4993_s1  ;;  %p4999_p12 = scmp.lt.s32.totalorder %s4993_s1, %s4993_s1 }
  0x1f   :  { %p5000_p13 = por %p4999_p12, %p4998_p11 }
  0x21   :  { %p5001_p0 = pnand %p5000_p13, %p4994_p10 }
  0x23   :  { %5004 = shalt.err (!%p5001_p0)
}
  0x24   :  { %91 = dma.hbm_to_vmem [thread:$0]  %s6018_s5, 1024, %s86_s22, [#allocation12], %s5139_s14, %s5139_s14, %s5140_s15  }
  0x25   :  { %s5013_s3 = scalar_lea.vmem %s26_s24, 256  ;;  %p5018_p2 = scmp.lt.s32.totalorder %s26_s24, %s26_s24 }
  0x26   :  { %p5014_p1 = scmp.ne.s32.totalorder %s26_s24, %s5013_s3  ;;  %p5019_p3 = scmp.lt.s32.totalorder %s5013_s3, %s5013_s3 }
  0x28   :  { %p5020_p4 = por %p5019_p3, %p5018_p2 }
  0x2a   :  { %p5021_p5 = pnand %p5020_p4, %p5014_p1 }
  0x2c   :  { %5024 = shalt.err (!%p5021_p5)
}
  0x2d   :  { %31 = dma.hbm_to_vmem [thread:$0]  %s6013_s0, 256, %s26_s24, [#allocation3], %s5139_s14, %s5139_s14, %s5140_s15  }
  0x2e   :  { %s5143_s29 = smov [#allocation7]   ;;  %s5144_s10 = smov [#allocation10]  }
  0x2f   :  { %s49_s30 = sshll.u32 %s5143_s29, 4  ;;  %s73_s11 = sshll.u32 %s5144_s10, 4  ;;  %s50_s30 = int_to_ptr.vmem [resolvable:$true] %s49_s30  ;;  %s74_s11 = int_to_ptr.vmem [resolvable:$true] %s73_s11 }
  0x30   :  { %s5033_s5 = scalar_lea.vmem %s50_s30, 256  ;;  %p5038_p7 = scmp.lt.s32.totalorder %s50_s30, %s50_s30 }
  0x31   :  { %p5034_p6 = scmp.ne.s32.totalorder %s50_s30, %s5033_s5  ;;  %p5039_p8 = scmp.lt.s32.totalorder %s5033_s5, %s5033_s5 }
  0x33   :  { %p5040_p9 = por %p5039_p8, %p5038_p7 }
  0x35   :  { %p5041_p10 = pnand %p5040_p9, %p5034_p6 }
  0x37   :  { %5044 = shalt.err (!%p5041_p10)
}
  0x38   :  { %55 = dma.hbm_to_vmem [thread:$0]  %s6015_s2, 256, %s50_s30, [#allocation6], %s5139_s14, %s5139_s14, %s5140_s15  }
  0x39   :  { %s5053_s0 = scalar_lea.vmem %s74_s11, 1024  ;;  %p5058_p12 = scmp.lt.s32.totalorder %s74_s11, %s74_s11 }
  0x3a   :  { %p5054_p11 = scmp.ne.s32.totalorder %s74_s11, %s5053_s0  ;;  %p5059_p13 = scmp.lt.s32.totalorder %s5053_s0, %s5053_s0 }
  0x3c   :  { %p5060_p0 = por %p5059_p13, %p5058_p12 }
  0x3e   :  { %p5061_p1 = pnand %p5060_p0, %p5054_p11 }
  0x40   :  { %5064 = shalt.err (!%p5061_p1)
}
  0x41   :  { %79 = dma.hbm_to_vmem [thread:$0]  %s6017_s4, 1024, %s74_s11, [#allocation9], %s5139_s14, %s5139_s14, %s5140_s15  }
  0x42   :  { %s5145_s18 = smov [#allocation13]   ;;  %s5146_s20 = smov [#allocation14]  }
  0x43   :  { %s97_s19 = sshll.u32 %s5145_s18, 4  ;;  %s111_s21 = sshll.u32 %s5146_s20, 4  ;;  %s98_s19 = int_to_ptr.vmem [resolvable:$true] %s97_s19  ;;  %s112_s21 = int_to_ptr.vmem [resolvable:$true] %s111_s21 }
  0x44   :  { %s5073_s2 = scalar_lea.vmem %s98_s19, 1024  ;;  %p5078_p3 = scmp.lt.s32.totalorder %s98_s19, %s98_s19 }
  0x45   :  { %p5074_p2 = scmp.ne.s32.totalorder %s98_s19, %s5073_s2  ;;  %p5079_p4 = scmp.lt.s32.totalorder %s5073_s2, %s5073_s2 }
  0x47   :  { %p5080_p5 = por %p5079_p4, %p5078_p3 }
  0x49   :  { %p5081_p6 = pnand %p5080_p5, %p5074_p2 }
  0x4b   :  { %5084 = shalt.err (!%p5081_p6)
}
  0x4c   :  { %103 = dma.hbm_to_vmem [thread:$0]  %s6019_s6, 1024, %s98_s19, [#allocation12], %s5139_s14, %s5139_s14, %s5140_s15  }
  0x4d   :  { %s5093_s4 = scalar_lea.vmem %s112_s21, 256  ;;  %p5098_p8 = scmp.lt.s32.totalorder %s112_s21, %s112_s21 }
  0x4e   :  { %p5094_p7 = scmp.ne.s32.totalorder %s112_s21, %s5093_s4  ;;  %p5099_p9 = scmp.lt.s32.totalorder %s5093_s4, %s5093_s4 }
  0x50   :  { %p5100_p10 = por %p5099_p9, %p5098_p8 }
  0x52   :  { %p5101_p11 = pnand %p5100_p10, %p5094_p7 }
  0x54   :  { %5104 = shalt.err (!%p5101_p11)
}
  0x55   :  { %117 = dma.hbm_to_vmem [thread:$0]  %s6021_s8, 256, %s112_s21, [#allocation15], %s5139_s14, %s5139_s14, %s5140_s15  }
  0x56   :  { %5125 = dma.done.wait [#allocation3], 256  }
  0x57   :  { %5126 = vsyncadd [#allocation3], 4294967040 }
  0x58   :  { %5127 = dma.done.wait [#allocation6], 768  }
  0x59   :  { %5128 = vsyncadd [#allocation6], 4294966528 }
  0x5a   :  { %5129 = dma.done.wait [#allocation9], 1280  }
  0x5b   :  { %5130 = vsyncadd [#allocation9], 4294966016 }
  0x5c   :  { %5131 = dma.done.wait [#allocation12], 2048  }
  0x5d   :  { %5132 = vsyncadd [#allocation12], 4294965248 }
  0x5e   :  { %5133 = dma.done.wait [#allocation15], 256  }
  0x5f   :  { %5134 = vsyncadd [#allocation15], 4294967040  ;;  %v250_v0 = vlaneseq  ;;  %v5147_v1 = vmov 0.0   ;;  %vm5148_vm0 = vmmov 0   ;;  %v5271_v4 = vld [vmem:[#allocation10 + $0x18] sm:$0xff]  ;;  %v5273_v5 = vld [vmem:[#allocation10 + $0x10] sm:$0xff] }
  0x60   :  { %4491 = vmatprep.subr.mxu1 %v5147_v1  ;;  %4499 = vmatprep.mubr.msk.f32.mxu1 %vm5148_vm0, %v5147_v1  ;;  %v5276_v6 = vld [vmem:[#allocation14] sm:$0xff]  ;;  %v5279_v7 = vld [vmem:[#allocation10 + $0x8] sm:$0xff]  ;;  %s5149_s6 = smov 32   ;;  %v5290_v10 = vld [vmem:[#allocation2] sm:$0xff]  ;;  %vm176_vm1 = vcmask 261120   ;;  %s5150_s8 = smov 88  }
  0x61   :  { %v5265_v2 = vshrl.u32 %v250_v0, 7  ;;  %4512 = vmatprep.subr.mxu0 %v5147_v1  ;;  %4514 = vmatprep.mubr.msk.f32.mxu0 %vm5148_vm0, %v5147_v1  ;;  %v5286_v9 = vld [vmem:[#allocation10] sm:$0xff]  ;;  %s5151_s25 = smov 96   ;;  %s5152_s26 = smov 80   ;;  %vm277_vm2 = vcmask 64512   ;;  %vm953_vm3 = vcmask 130048  }
  0x62   :  { %4492 = vmatpush3.msra.mxu1 %v5271_v4  ;;  %s5153_s3 = smov 120   ;;  %s5154_s27 = smov 72   ;;  %v175_v26 = vld [vmem:[#allocation7] sm:$0xff]  ;;  %vm955_vm4 = vcmask 195584   ;;  %vm2146_vm5 = vcmask 523264  }
  0x63   :  { %v257_v3 = vsub.s32 1, %v5265_v2  ;;  %4493 = vmatprep.subr.mxu1 %v5147_v1  ;;  %v252_v11 = vsub.s32 0, %v5265_v2  ;;  %s5155_s28 = smov 112   ;;  %s5156_s29 = smov 104   ;;  %v266_v43 = vsub.s32 2, %v5265_v2 }
  0x64   :  { %4494 = vmatpush3.msra.mxu1 %v5273_v5  ;;  %s5157_s30 = smov 64   ;;  %s5158_s10 = smov 48  }
  0x65   :  { %v258_v8 = vrot.slane %v5276_v6, %v257_v3  ;;  %4495 = vmatprep.subr.mxu1 %v5147_v1  ;;  %v5303_v12 = vrot.slane %v5276_v6, %v252_v11  ;;  %v267_v44 = vrot.slane %v5276_v6, %v266_v43  ;;  %s5159_s11 = smov 40   ;;  %s5160_s5 = smov 56  }
  0x66   :  { %4496 = vmatpush3.msra.mxu1 %v5279_v7  ;;  %s5161_s12 = smov 16   ;;  %s5162_s13 = smov 24  }
  0x67   :  { %260 = vrot.lane.b32.xlu0 %v258_v8, %s5149_s6  ;;  %4497 = vmatprep.subr.mxu1 %v5147_v1 }
  0x68   :  { %4498 = vmatpush3.msra.mxu1 %v5286_v9 }
  0x69   :  { %4500 = vmatmul.mubr.msk.f32.vlgmr.msra.gmra.mxu1 %vm176_vm1, %v5290_v10  ;;  %4502 = vmatprep.subr.mxu1 %v5147_v1 }
  0x6a   :  { %4504 = vmatprep.mubr.msk.f32.mxu1 %vm5148_vm0, %v5147_v1 }
  0xd9   :  { %v5305_v13 = vpop.permute.xlu0 %260 }
 0x129   :  { %v5307_v14 = vpop.f32.mrf.mxu1 }
 0x12a   :  { %v254_v15 = vadd.f32 %v5303_v12, %v5307_v14  ;;  %v263_v16 = vadd.f32 %v5305_v13, %v5307_v14 }
 0x12b   :  { %v4501_v17 = vpop.f32.mrf.mxu1 }
 0x12c   :  { %444 = vrot.lane.b32.xlu1 %v263_v16, %s5150_s8  ;;  %275 = vrot.lane.b32.xlu0 %v263_v16, %s5151_s25  ;;  %v273_v18 = vmul.f32 0.35355338, %v254_v15 }
 0x130   :  { %610 = vrot.lane.b32.xlu0 %v263_v16, %s5152_s26  ;;  %442 = vrot.lane.b32.xlu1 %v273_v18, %s5153_s3 }
 0x134   :  { %776 = vrot.lane.b32.xlu0 %v263_v16, %s5154_s27  ;;  %608 = vrot.lane.b32.xlu1 %v273_v18, %s5155_s28 }
 0x138   :  { %774 = vrot.lane.b32.xlu1 %v273_v18, %s5156_s29 }
 0x19e   :  { %v445_v19 = vpop.permute.xlu1 %444  ;;  %v276_v20 = vpop.permute.xlu0 %275 }
 0x19f   :  { %4503 = vmatpush3.xpose.msk.msra.mxu1 %vm277_vm2, %v276_v20  ;;  %4513 = vmatpush3.xpose.msk.msra.mxu0 %vm277_vm2, %v445_v19 }
 0x1a0   :  { %4522 = vmatprep.subr.mxu0 %v5147_v1  ;;  %4507 = vmatprep.subr.mxu1 %v5147_v1 }
 0x1a2   :  { %v611_v21 = vpop.permute.xlu0 %610  ;;  %v443_v22 = vpop.permute.xlu1 %442  ;;  %4505 = vmatmul.mubr.msk.f32.vlgmr.msra.gmra.mxu1 %vm277_vm2, %v273_v18 }
 0x1a3   :  { %4515 = vmatmul.mubr.msk.f32.vlgmr.msra.gmra.mxu0 %vm277_vm2, %v443_v22  ;;  %4509 = vmatprep.mubr.msk.f32.mxu1 %vm5148_vm0, %v5147_v1 }
 0x1a4   :  { %4523 = vmatpush3.xpose.msk.msra.mxu0 %vm277_vm2, %v611_v21  ;;  %4524 = vmatprep.mubr.msk.f32.mxu0 %vm5148_vm0, %v5147_v1 }
 0x1a5   :  { %4532 = vmatprep.subr.mxu0 %v5147_v1 }
 0x1a6   :  { %v777_v23 = vpop.permute.xlu0 %776  ;;  %v609_v24 = vpop.permute.xlu1 %608 }
 0x1a7   :  { %4525 = vmatmul.mubr.msk.f32.vlgmr.msra.gmra.mxu0 %vm277_vm2, %v609_v24 }
 0x1a8   :  { %4533 = vmatpush3.xpose.msk.msra.mxu0 %vm277_vm2, %v777_v23  ;;  %4534 = vmatprep.mubr.msk.f32.mxu0 %vm5148_vm0, %v5147_v1 }
 0x1a9   :  { %4542 = vmatprep.subr.mxu0 %v5147_v1 }
 0x1aa   :  { %v775_v25 = vpop.permute.xlu1 %774 }
 0x1ab   :  { %4535 = vmatmul.mubr.msk.f32.vlgmr.msra.gmra.mxu0 %vm277_vm2, %v775_v25 }
 0x1ac   :  { %4550 = vmatprep.mubr.msk.f32.mxu0 %vm5148_vm0, %v5147_v1 }
 0x262   :  { %v349_v27 = vpop.f32.mrf.mxu1 }
 0x263   :  { %v350_v28 = vadd.f32 %v349_v27, %v175_v26  ;;  %v516_v29 = vpop.f32.mrf.mxu0 }
 0x264   :  { %v517_v30 = vadd.f32 %v516_v29, %v175_v26  ;;  %v4506_v31 = vpop.f32.mrf.mxu1 }
 0x265   :  { %v4516_v32 = vpop.f32.mrf.mxu0  ;;  %v353_v33 = vsel %vm277_vm2, %v350_v28, -inf  ;;  %v5377_v31 = vld [vmem:[#allocation11 + $0x18] sm:$0xff] }
 0x266   :  { %354 = vmax.xlane.f32.xlu0 %v353_v33  ;;  %v520_v34 = vsel %vm277_vm2, %v517_v30, -inf  ;;  %4543 = vmatpush3.msra.mxu0 %v5377_v31  ;;  %v5381_v32 = vld [vmem:[#allocation11 + $0x10] sm:$0xff]  ;;  %v5383_v33 = vld [vmem:[#allocation11 + $0x8] sm:$0xff] }
 0x267   :  { %521 = vmax.xlane.f32.xlu1 %v520_v34  ;;  %v682_v35 = vpop.f32.mrf.mxu0  ;;  %4544 = vmatprep.subr.mxu0 %v5147_v1 }
 0x268   :  { %v683_v36 = vadd.f32 %v682_v35, %v175_v26  ;;  %4545 = vmatpush3.msra.mxu0 %v5381_v32  ;;  %v5389_v35 = vld [vmem:[#allocation11] sm:$0xff] }
 0x269   :  { %v4526_v37 = vpop.f32.mrf.mxu0  ;;  %4546 = vmatprep.subr.mxu0 %v5147_v1 }
 0x26a   :  { %v686_v38 = vsel %vm277_vm2, %v683_v36, -inf  ;;  %4547 = vmatpush3.msra.mxu0 %v5383_v33 }
 0x26b   :  { %v848_v39 = vpop.f32.mrf.mxu0  ;;  %687 = vmax.xlane.f32.xlu0 %v686_v38  ;;  %4548 = vmatprep.subr.mxu0 %v5147_v1 }
 0x26c   :  { %v849_v40 = vadd.f32 %v848_v39, %v175_v26  ;;  %4549 = vmatpush3.msra.mxu0 %v5389_v35 }
 0x26d   :  { %v4536_v41 = vpop.f32.mrf.mxu0 }
 0x26e   :  { %v852_v42 = vsel %vm277_vm2, %v849_v40, -inf }
 0x26f   :  { %853 = vmax.xlane.f32.xlu0 %v852_v42 }
 0x278   :  { %269 = vrot.lane.b32.xlu1 %v267_v44, %s5157_s30 }
 0x2ef   :  { %v355_v45 = vpop.xlane.xlu0 %354 }
 0x2f0   :  { %v356_v46 = vsub.f32 %v350_v28, %v355_v45  ;;  %v522_v47 = vpop.xlane.xlu1 %521 }
 0x2f1   :  { %v523_v48 = vsub.f32 %v517_v30, %v522_v47 }
 0x2f2   :  { %v357_v49 = vmul.f32 1.442695, %v356_v46 }
 0x2f3   :  { %v524_v50 = vmul.f32 1.442695, %v523_v48 }
 0x2f4   :  { %4864 = vpow2.f32 %v357_v49  ;;  %v5349_v51 = vpop.permute.xlu1 %269  ;;  %v688_v52 = vpop.xlane.xlu0 %687 }
 0x2f5   :  { %v272_v53 = vadd.f32 %v5349_v51, %v5307_v14  ;;  %v689_v54 = vsub.f32 %v683_v36, %v688_v52  ;;  %4866 = vpow2.f32 %v524_v50  ;;  %v5399_v50 = vld [vmem:[#allocation10 + $0x38] sm:$0xff]  ;;  %v5403_v52 = vld [vmem:[#allocation10 + $0x30] sm:$0xff] }
 0x2f7   :  { %v690_v55 = vmul.f32 1.442695, %v689_v54  ;;  %366 = vrot.lane.b32.xlu1 %v272_v53, %s5157_s30 }
 0x2f8   :  { %v854_v56 = vpop.xlane.xlu0 %853 }
 0x2f9   :  { %v855_v57 = vsub.f32 %v849_v40, %v854_v56  ;;  %4868 = vpow2.f32 %v690_v55 }
 0x2fb   :  { %v856_v58 = vmul.f32 1.442695, %v855_v57  ;;  %698 = vrot.lane.b32.xlu1 %v272_v53, %s5158_s10 }
 0x2fd   :  { %4870 = vpow2.f32 %v856_v58 }
 0x2ff   :  { %864 = vrot.lane.b32.xlu1 %v272_v53, %s5159_s11 }
 0x301   :  { %v4865_v59 = vpop.eup %4864 }
 0x302   :  { %v359_v60 = vsel %vm277_vm2, %v4865_v59, 0.0  ;;  %v4867_v61 = vpop.eup %4866 }
 0x303   :  { %360 = vadd.xlane.f32.xlu0 %v359_v60  ;;  %v526_v62 = vsel %vm277_vm2, %v4867_v61, 0.0  ;;  %v5418_v60 = vld [vmem:[#allocation10 + $0x28] sm:$0xff] }
 0x306   :  { %v4869_v63 = vpop.eup %4868 }
 0x307   :  { %527 = vadd.xlane.f32.xlu0 %v526_v62  ;;  %v692_v0 = vsel %vm277_vm2, %v4869_v63, 0.0 }
 0x30a   :  { %v4871_v8 = vpop.eup %4870 }
 0x30b   :  { %693 = vadd.xlane.f32.xlu0 %v692_v0  ;;  %v858_v14 = vsel %vm277_vm2, %v4871_v8, 0.0 }
 0x30f   :  { %859 = vadd.xlane.f32.xlu0 %v858_v14 }
 0x325   :  { %532 = vrot.lane.b32.xlu0 %v272_v53, %s5160_s5  ;;  %v959_v53 = vsub.s32 3, %v5265_v2 }
 0x327   :  { %v5413_v54 = vrot.slane %v5276_v6, %v959_v53 }
 0x369   :  { %v367_v15 = vpop.permute.xlu1 %366 }
 0x36a   :  { %4508 = vmatpush3.msra.mxu1 %v367_v15 }
 0x36b   :  { %4517 = vmatprep.subr.mxu1 %v5147_v1 }
 0x36d   :  { %v699_v24 = vpop.permute.xlu1 %698 }
 0x371   :  { %v865_v28 = vpop.permute.xlu1 %864 }
 0x38c   :  { %v361_v16 = vpop.xlane.xlu0 %360 }
 0x38d   :  { %4872 = vrcp.f32 %v361_v16 }
 0x390   :  { %v528_v17 = vpop.xlane.xlu0 %527 }
 0x391   :  { %4874 = vrcp.f32 %v528_v17  ;;  %v173_v17 = vld [vmem:[#allocation5] sm:$0xff] }
 0x394   :  { %v694_v18 = vpop.xlane.xlu0 %693 }
 0x395   :  { %4876 = vrcp.f32 %v694_v18 }
 0x398   :  { %v860_v19 = vpop.xlane.xlu0 %859 }
 0x399   :  { %4878 = vrcp.f32 %v860_v19 }
 0x39a   :  { %v4873_v20 = vpop.eup %4872 }
 0x39b   :  { %v364_v21 = vmul.f32 %v4873_v20, %v4865_v59 }
 0x39c   :  { %v533_v22 = vpop.permute.xlu0 %532 }
 0x39d   :  { %4510 = vmatmul.mubr.msk.f32.vlgmr.msra.gmra.mxu1 %vm277_vm2, %v364_v21 }
 0x39e   :  { %v4875_v23 = vpop.eup %4874  ;;  %4518 = vmatpush3.msra.mxu1 %v533_v22  ;;  %4519 = vmatprep.mubr.msk.f32.mxu1 %vm5148_vm0, %v5147_v1  ;;  %v174_v22 = vld [vmem:[#allocation5 + $0x8] sm:$0xff] }
 0x39f   :  { %4527 = vmatprep.subr.mxu1 %v5147_v1  ;;  %v531_v25 = vmul.f32 %v4875_v23, %v4867_v61  ;;  %v5421_v61 = vld [vmem:[#allocation10 + $0x20] sm:$0xff]  ;;  %v1051_v23 = vsub.s32 4, %v5265_v2 }
 0x3a1   :  { %4520 = vmatmul.mubr.msk.f32.vlgmr.msra.gmra.mxu1 %vm277_vm2, %v531_v25  ;;  %v5459_v25 = vrot.slane %v5276_v6, %v1051_v23 }
 0x3a2   :  { %v4877_v26 = vpop.eup %4876  ;;  %4528 = vmatpush3.msra.mxu1 %v699_v24  ;;  %4529 = vmatprep.mubr.msk.f32.mxu1 %vm5148_vm0, %v5147_v1  ;;  %v1056_v24 = vsub.s32 5, %v5265_v2 }
 0x3a3   :  { %4537 = vmatprep.subr.mxu1 %v5147_v1  ;;  %v697_v27 = vmul.f32 %v4877_v26, %v4869_v63 }
 0x3a5   :  { %4530 = vmatmul.mubr.msk.f32.vlgmr.msra.gmra.mxu1 %vm277_vm2, %v697_v27 }
 0x3a6   :  { %v4879_v29 = vpop.eup %4878  ;;  %4538 = vmatpush3.msra.mxu1 %v865_v28  ;;  %4539 = vmatprep.mubr.msk.f32.mxu1 %vm5148_vm0, %v5147_v1  ;;  %v5464_v28 = vrot.slane %v5276_v6, %v1056_v24 }
 0x3a7   :  { %v863_v30 = vmul.f32 %v4879_v29, %v4871_v8  ;;  %4553 = vmatprep.subr.mxu1 %v5147_v1 }
 0x3a9   :  { %4540 = vmatmul.mubr.msk.f32.vlgmr.msra.gmra.mxu1 %vm277_vm2, %v863_v30 }
 0x3aa   :  { %4561 = vmatprep.mubr.msk.f32.mxu1 %vm5148_vm0, %v5147_v1  ;;  %4554 = vmatpush3.msra.mxu1 %v5399_v50 }
 0x3ab   :  { %4555 = vmatprep.subr.mxu1 %v5147_v1 }
 0x3ac   :  { %4556 = vmatpush3.msra.mxu1 %v5403_v52 }
 0x3ad   :  { %4557 = vmatprep.subr.mxu1 %v5147_v1 }
 0x3ae   :  { %4558 = vmatpush3.msra.mxu1 %v5418_v60 }
 0x3af   :  { %4559 = vmatprep.subr.mxu1 %v5147_v1 }
 0x3b0   :  { %4560 = vmatpush3.msra.mxu1 %v5421_v61 }
 0x3b1   :  { %4575 = vmatprep.subr.mxu1 %v5147_v1 }
 0x45d   :  { %v438_v34 = vpop.f32.mrf.mxu1 }
 0x45f   :  { %v4511_v36 = vpop.f32.mrf.mxu1 }
 0x461   :  { %v604_v37 = vpop.f32.mrf.mxu1 }
 0x462   :  { %941 = vrot.lane.b32.xlu1 %v604_v37, %s5140_s15 }
 0x463   :  { %v4521_v38 = vpop.f32.mrf.mxu1 }
 0x465   :  { %v770_v39 = vpop.f32.mrf.mxu1 }
 0x466   :  { %945 = vrot.lane.b32.xlu1 %v770_v39, %s5161_s12 }
 0x467   :  { %v4531_v40 = vpop.f32.mrf.mxu1 }
 0x469   :  { %v936_v41 = vpop.f32.mrf.mxu1 }
 0x46a   :  { %949 = vrot.lane.b32.xlu1 %v936_v41, %s5162_s13  ;;  %v1062_v41 = vsub.s32 6, %v5265_v2 }
 0x46b   :  { %v4541_v42 = vpop.f32.mrf.mxu1 }
 0x46c   :  { %v5498_v42 = vrot.slane %v5276_v6, %v1062_v41 }
 0x46e   :  { %1145 = vrot.lane.b32.xlu1 %v5403_v52, %s5151_s25 }
 0x4d4   :  { %v942_v44 = vpop.permute.xlu1 %941 }
 0x4d5   :  { %v952_v46 = vsel %vm277_vm2, %v438_v34, %v942_v44  ;;  %v1236_v34 = vsub.s32 7, %v5265_v2 }
 0x4d7   :  { %v5476_v36 = vrot.slane %v5276_v6, %v1236_v34 }
 0x4d8   :  { %v946_v45 = vpop.permute.xlu1 %945 }
 0x4d9   :  { %v954_v47 = vsel %vm953_vm3, %v952_v46, %v946_v45 }
 0x4dc   :  { %v950_v48 = vpop.permute.xlu1 %949 }
 0x4dd   :  { %v956_v49 = vsel %vm955_vm4, %v954_v47, %v950_v48 }
 0x4de   :  { %4551 = vmatmul.mubr.msk.f32.vlgmr.msra.gmra.mxu0 %vm176_vm1, %v956_v49 }
 0x4df   :  { %4572 = vmatprep.mubr.msk.f32.mxu0 %vm176_vm1, %v173_v17 }
 0x4e0   :  { %v5432_v8 = vpop.permute.xlu1 %1145 }
 0x59e   :  { %v1030_v55 = vpop.f32.mrf.mxu0 }
 0x59f   :  { %v1031_v56 = vadd.f32 %v1030_v55, %v5413_v54  ;;  %v5516_v55 = vld [vmem:[#allocation8] sm:$0xff] }
 0x5a0   :  { %v4552_v57 = vpop.f32.mrf.mxu0 }
 0x5a1   :  { %v1034_v58 = vadd.f32 %v1031_v56, %v5290_v10 }
 0x5a3   :  { %v1035_v59 = vsel %vm176_vm1, %v1034_v58, 0.0 }
 0x5a4   :  { %1036 = vadd.xlane.f32.xlu0 %v1035_v59 }
 0x5ba   :  { %1147 = vrot.lane.b32.xlu0 %v5399_v50, %s5151_s25 }
 0x5be   :  { %1143 = vrot.lane.b32.xlu0 %v5418_v60, %s5151_s25 }
 0x62d   :  { %v1037_v10 = vpop.xlane.xlu0 %1036 }
 0x62e   :  { %v1039_v62 = vmul.f32 0.03125, %v1037_v10 }
 0x630   :  { %v1040_v63 = vsub.f32 %v1034_v58, %v1039_v62 }
 0x631   :  { %v5430_v0 = vpop.permute.xlu0 %1147 }
 0x632   :  { %v1041_v14 = vmul.f32 %v1040_v63, %v1040_v63  ;;  %4564 = vmatprep.subr.mxu0 %v5430_v0 }
 0x633   :  { %4565 = vmatpush3.msra.mxu0 %v5430_v0 }
 0x634   :  { %v1042_v15 = vsel %vm176_vm1, %v1041_v14, 0.0  ;;  %4566 = vmatprep.subr.mxu0 %v5432_v8 }
 0x635   :  { %1043 = vadd.xlane.f32.xlu1 %v1042_v15  ;;  %4567 = vmatpush3.msra.mxu0 %v5432_v8  ;;  %v5441_v16 = vpop.permute.xlu0 %1143  ;;  %v5522_v15 = vld [vmem:[#allocation14 + $0x8] sm:$0x7f] }
 0x636   :  { %4568 = vmatprep.subr.mxu0 %v5441_v16  ;;  %v1243_v17 = vrot.slane %v5522_v15, %v252_v11 }
 0x637   :  { %4569 = vmatpush3.msra.mxu0 %v5441_v16 }
 0x646   :  { %1141 = vrot.lane.b32.xlu1 %v5421_v61, %s5151_s25 }
 0x6be   :  { %v1044_v18 = vpop.xlane.xlu1 %1043 }
 0x6bf   :  { %v1045_v19 = vmul.f32 0.03125, %v1044_v18 }
 0x6c1   :  { %v1046_v20 = vadd.f32 1e-05, %v1045_v19 }
 0x6c2   :  { %v5446_v21 = vpop.permute.xlu1 %1141 }
 0x6c3   :  { %4880 = vrsqrt.f32 %v1046_v20  ;;  %4570 = vmatprep.subr.mxu0 %v5446_v21 }
 0x6c4   :  { %4571 = vmatpush3.msra.mxu0 %v5446_v21 }
 0x6c5   :  { %4573 = vmatmul.mubr.msk.f32.vlgmr.msra.gmra.mxu0 %vm176_vm1, %v174_v22  ;;  %4582 = vmatprep.subr.mxu0 %v5147_v1 }
 0x6c6   :  { %4586 = vmatprep.mubr.msk.f32.mxu0 %vm5148_vm0, %v5147_v1 }
 0x6d0   :  { %v4881_v26 = vpop.eup %4880 }
 0x6d1   :  { %v1048_v27 = vmul.f32 %v4881_v26, %v1040_v63 }
 0x6d3   :  { %v1053_v29 = vmul.f32 %v5459_v25, %v1048_v27 }
 0x6d5   :  { %v5468_v30 = vadd.f32 %v5464_v28, %v1053_v29 }
 0x6d7   :  { %4562 = vmatmul.mubr.msk.f32.vlgmr.msra.gmra.mxu1 %vm176_vm1, %v5468_v30 }
 0x6d8   :  { %4579 = vmatprep.mubr.msk.f32.mxu1 %vm5148_vm0, %v5147_v1 }
 0x785   :  { %v4574_v37 = vpop.f32.mrf.mxu0 }
 0x786   :  { %v5479_v38 = vadd.f32 %v4574_v37, %v5476_v36 }
 0x787   :  { %v1225_v39 = vpop.f32.mrf.mxu0 }
 0x788   :  { %1427 = vrot.lane.b32.xlu0 %v5479_v38, %s5153_s3  ;;  %4576 = vmatpush3.xpose.msk.msra.mxu1 %vm277_vm2, %v5479_v38  ;;  %v5486_v40 = vadd.f32 %v5476_v36, %v1225_v39 }
 0x789   :  { %4577 = vmatprep.subr.mxu1 %v5147_v1 }
 0x78a   :  { %1425 = vrot.lane.b32.xlu1 %v5486_v40, %s5153_s3 }
 0x78c   :  { %4578 = vmatpush3.xpose.msk.msra.mxu1 %vm277_vm2, %v5486_v40 }
 0x78d   :  { %4589 = vmatprep.subr.mxu1 %v5147_v1 }
 0x797   :  { %v1133_v44 = vpop.f32.mrf.mxu1 }
 0x798   :  { %v1134_v45 = vadd.f32 %v1133_v44, %v5498_v42 }
 0x799   :  { %v4563_v46 = vpop.f32.mrf.mxu1 }
 0x79a   :  { %v5501_v47 = vmul.f32 0.35355338, %v1134_v45 }
 0x79c   :  { %1423 = vrot.lane.b32.xlu0 %v5501_v47, %s5153_s3  ;;  %4580 = vmatmul.mubr.msk.f32.vlgmr.msra.gmra.mxu1 %vm277_vm2, %v5501_v47 }
 0x79d   :  { %4593 = vmatprep.mubr.msk.f32.mxu1 %vm5148_vm0, %v5147_v1 }
 0x7fa   :  { %v1428_v48 = vpop.permute.xlu0 %1427 }
 0x7fb   :  { %4590 = vmatpush3.xpose.msk.msra.mxu1 %vm277_vm2, %v1428_v48 }
 0x7fc   :  { %v1426_v6 = vpop.permute.xlu1 %1425  ;;  %4591 = vmatprep.subr.mxu1 %v5147_v1 }
 0x7ff   :  { %4592 = vmatpush3.xpose.msk.msra.mxu1 %vm277_vm2, %v1426_v6 }
 0x800   :  { %4610 = vmatprep.subr.mxu1 %v5147_v1 }
 0x80e   :  { %v1424_v49 = vpop.permute.xlu0 %1423 }
 0x80f   :  { %4594 = vmatmul.mubr.msk.f32.vlgmr.msra.gmra.mxu1 %vm277_vm2, %v1424_v49 }
 0x810   :  { %4614 = vmatprep.mubr.msk.f32.mxu1 %vm5148_vm0, %v5147_v1 }
 0x85c   :  { %v1326_v56 = vpop.f32.mrf.mxu1 }
 0x85d   :  { %v1327_v57 = vadd.f32 %v1326_v56, %v5516_v55 }
 0x85e   :  { %v4581_v58 = vpop.f32.mrf.mxu1 }
 0x85f   :  { %v1330_v59 = vsel %vm953_vm3, %v1327_v57, -inf }
 0x860   :  { %1331 = vmax.xlane.f32.xlu1 %v1330_v59 }
 0x8cf   :  { %v1501_v10 = vpop.f32.mrf.mxu1 }
 0x8d0   :  { %v1502_v62 = vadd.f32 %v1501_v10, %v5516_v55 }
 0x8d1   :  { %v4595_v63 = vpop.f32.mrf.mxu1 }
 0x8d2   :  { %v1505_v14 = vsel %vm953_vm3, %v1502_v62, -inf }
 0x8d3   :  { %1506 = vmax.xlane.f32.xlu0 %v1505_v14 }
 0x8e9   :  { %1245 = vrot.lane.b32.xlu0 %v1243_v17, %s5149_s6  ;;  %v1332_v11 = vpop.xlane.xlu1 %1331 }
 0x8ea   :  { %v1333_v26 = vsub.f32 %v1327_v57, %v1332_v11 }
 0x8ec   :  { %v1334_v27 = vmul.f32 1.442695, %v1333_v26 }
 0x8ee   :  { %4882 = vpow2.f32 %v1334_v27 }
 0x95c   :  { %v1507_v18 = vpop.xlane.xlu0 %1506 }
 0x95d   :  { %v1508_v29 = vsub.f32 %v1502_v62, %v1507_v18 }
 0x95f   :  { %v1509_v34 = vmul.f32 1.442695, %v1508_v29 }
 0x960   :  { %v5528_v19 = vpop.permute.xlu0 %1245 }
 0x961   :  { %v5531_v20 = vadd.f32 %v5528_v19, %v1225_v39  ;;  %v5534_v22 = vadd.f32 %v4574_v37, %v5528_v19  ;;  %4884 = vpow2.f32 %v1509_v34  ;;  %v4883_v37 = vpop.eup %4882 }
 0x962   :  { %v1336_v39 = vsel %vm953_vm3, %v4883_v37, 0.0 }
 0x963   :  { %1346 = vrot.lane.b32.xlu1 %v5534_v22, %s5151_s25  ;;  %1344 = vrot.lane.b32.xlu0 %v5531_v20, %s5151_s25 }
 0x967   :  { %1517 = vrot.lane.b32.xlu1 %v5531_v20, %s5150_s8  ;;  %1519 = vrot.lane.b32.xlu0 %v5534_v22, %s5150_s8 }
 0x96b   :  { %1600 = vrot.lane.b32.xlu0 %v5479_v38, %s5155_s28 }
 0x96e   :  { %v4885_v44 = vpop.eup %4884 }
 0x96f   :  { %1596 = vrot.lane.b32.xlu0 %v5501_v47, %s5155_s28  ;;  %v1511_v45 = vsel %vm953_vm3, %v4885_v44, 0.0 }
 0x98b   :  { %1337 = vadd.xlane.f32.xlu1 %v1336_v39 }
 0x98f   :  { %1512 = vadd.xlane.f32.xlu1 %v1511_v45 }
 0x9a0   :  { %1598 = vrot.lane.b32.xlu1 %v5486_v40, %s5155_s28 }
 0x9d5   :  { %v1347_v46 = vpop.permute.xlu1 %1346  ;;  %v1345_v48 = vpop.permute.xlu0 %1344 }
 0x9d6   :  { %4583 = vmatpush3.msra.mxu0 %v1347_v46 }
 0x9d7   :  { %4584 = vmatprep.subr.mxu0 %v5147_v1 }
 0x9d8   :  { %4585 = vmatpush3.msra.mxu0 %v1345_v48 }
 0x9d9   :  { %4596 = vmatprep.subr.mxu0 %v5147_v1  ;;  %v1518_v6 = vpop.permute.xlu1 %1517  ;;  %v1520_v58 = vpop.permute.xlu0 %1519 }
 0x9dd   :  { %v1601_v63 = vpop.permute.xlu0 %1600 }
 0x9e1   :  { %v1597_v17 = vpop.permute.xlu0 %1596 }
 0xa14   :  { %v1338_v49 = vpop.xlane.xlu1 %1337 }
 0xa15   :  { %4886 = vrcp.f32 %v1338_v49 }
 0xa18   :  { %v1513_v56 = vpop.xlane.xlu1 %1512 }
 0xa19   :  { %4888 = vrcp.f32 %v1513_v56 }
 0xa1c   :  { %v1599_v14 = vpop.permute.xlu1 %1598 }
 0xa22   :  { %v4887_v57 = vpop.eup %4886 }
 0xa23   :  { %v1341_v59 = vmul.f32 %v4887_v57, %v4883_v37 }
 0xa25   :  { %4587 = vmatmul.mubr.msk.f32.vlgmr.msra.gmra.mxu0 %vm953_vm3, %v1341_v59 }
 0xa26   :  { %v4889_v10 = vpop.eup %4888  ;;  %4597 = vmatpush3.msra.mxu0 %v1520_v58  ;;  %4600 = vmatprep.mubr.msk.f32.mxu0 %vm5148_vm0, %v5147_v1 }
 0xa27   :  { %4598 = vmatprep.subr.mxu0 %v5147_v1  ;;  %v1516_v62 = vmul.f32 %v4889_v10, %v4885_v44 }
 0xa28   :  { %4599 = vmatpush3.msra.mxu0 %v1518_v6 }
 0xa29   :  { %4603 = vmatprep.subr.mxu0 %v5147_v1  ;;  %4601 = vmatmul.mubr.msk.f32.vlgmr.msra.gmra.mxu0 %vm953_vm3, %v1516_v62 }
 0xa2a   :  { %4604 = vmatpush3.xpose.msk.msra.mxu0 %vm277_vm2, %v1601_v63  ;;  %4607 = vmatprep.mubr.msk.f32.mxu0 %vm5148_vm0, %v5147_v1 }
 0xa2b   :  { %4605 = vmatprep.subr.mxu0 %v5147_v1 }
 0xa2e   :  { %4606 = vmatpush3.xpose.msk.msra.mxu0 %vm277_vm2, %v1599_v14 }
 0xa2f   :  { %4624 = vmatprep.subr.mxu0 %v5147_v1 }
 0xa31   :  { %4608 = vmatmul.mubr.msk.f32.vlgmr.msra.gmra.mxu0 %vm277_vm2, %v1597_v17 }
 0xa32   :  { %4628 = vmatprep.mubr.msk.f32.mxu0 %vm5148_vm0, %v5147_v1 }
 0xae5   :  { %v5569_v18 = vpop.f32.mrf.mxu0 }
 0xae7   :  { %v4588_v11 = vpop.f32.mrf.mxu0 }
 0xae9   :  { %v1592_v26 = vpop.f32.mrf.mxu0 }
 0xaeb   :  { %v4602_v27 = vpop.f32.mrf.mxu0 }
 0xaf1   :  { %v1674_v29 = vpop.f32.mrf.mxu0 }
 0xaf2   :  { %v1675_v34 = vadd.f32 %v1674_v29, %v5516_v55 }
 0xaf3   :  { %v4609_v37 = vpop.f32.mrf.mxu0 }
 0xaf4   :  { %v1678_v39 = vsel %vm953_vm3, %v1675_v34, -inf }
 0xaf5   :  { %1679 = vmax.xlane.f32.xlu1 %v1678_v39 }
 0xb06   :  { %1690 = vrot.lane.b32.xlu1 %v5531_v20, %s5152_s26 }
 0xb0a   :  { %1773 = vrot.lane.b32.xlu1 %v5479_v38, %s5156_s29 }
 0xb0e   :  { %1769 = vrot.lane.b32.xlu1 %v5501_v47, %s5156_s29 }
 0xb7e   :  { %v1680_v44 = vpop.xlane.xlu1 %1679 }
 0xb7f   :  { %v1681_v45 = vsub.f32 %v1675_v34, %v1680_v44 }
 0xb81   :  { %v1682_v46 = vmul.f32 1.442695, %v1681_v45 }
 0xb82   :  { %v1691_v56 = vpop.permute.xlu1 %1690 }
 0xb83   :  { %4890 = vpow2.f32 %v1682_v46  ;;  %v5610_v46 = vld [vmem:[#allocation11 + $0x38] sm:$0xff] }
 0xb86   :  { %v1774_v58 = vpop.permute.xlu1 %1773 }
 0xb8a   :  { %v1770_v59 = vpop.permute.xlu1 %1769 }
 0xb90   :  { %v4891_v48 = vpop.eup %4890 }
 0xb91   :  { %v1684_v6 = vsel %vm953_vm3, %v4891_v48, 0.0 }
 0xb92   :  { %1685 = vadd.xlane.f32.xlu0 %v1684_v6  ;;  %v5622_v6 = vld [vmem:[#allocation11 + $0x20] sm:$0xff] }
 0xba8   :  { %1692 = vrot.lane.b32.xlu0 %v5534_v22, %s5152_s26 }
 0xbac   :  { %1771 = vrot.lane.b32.xlu0 %v5486_v40, %s5156_s29 }
 0xc1b   :  { %v1686_v49 = vpop.xlane.xlu0 %1685 }
 0xc1c   :  { %4892 = vrcp.f32 %v1686_v49 }
 0xc1f   :  { %v1693_v38 = vpop.permute.xlu0 %1692 }
 0xc20   :  { %4611 = vmatpush3.msra.mxu1 %v1693_v38 }
 0xc21   :  { %4612 = vmatprep.subr.mxu1 %v5147_v1 }
 0xc22   :  { %4613 = vmatpush3.msra.mxu1 %v1691_v56 }
 0xc23   :  { %4617 = vmatprep.subr.mxu1 %v5147_v1  ;;  %v1772_v40 = vpop.permute.xlu0 %1771 }
 0xc29   :  { %v4893_v47 = vpop.eup %4892 }
 0xc2a   :  { %v1689_v57 = vmul.f32 %v4893_v47, %v4891_v48  ;;  %v5612_v48 = vld [vmem:[#allocation11 + $0x30] sm:$0xff] }
 0xc2c   :  { %4615 = vmatmul.mubr.msk.f32.vlgmr.msra.gmra.mxu1 %vm953_vm3, %v1689_v57 }
 0xc2d   :  { %4618 = vmatpush3.xpose.msk.msra.mxu1 %vm277_vm2, %v1774_v58  ;;  %4621 = vmatprep.mubr.msk.f32.mxu1 %vm5148_vm0, %v5147_v1 }
 0xc2e   :  { %4619 = vmatprep.subr.mxu1 %v5147_v1 }
 0xc31   :  { %4620 = vmatpush3.xpose.msk.msra.mxu1 %vm277_vm2, %v1772_v40 }
 0xc32   :  { %4642 = vmatprep.subr.mxu1 %v5147_v1 }
 0xc34   :  { %4622 = vmatmul.mubr.msk.f32.vlgmr.msra.gmra.mxu1 %vm277_vm2, %v1770_v59 }
 0xc35   :  { %4650 = vmatprep.mubr.msk.f32.mxu1 %vm5148_vm0, %v5147_v1 }
 0xcec   :  { %v1765_v10 = vpop.f32.mrf.mxu1 }
 0xcee   :  { %v4616_v62 = vpop.f32.mrf.mxu1 }
 0xcf4   :  { %v1847_v63 = vpop.f32.mrf.mxu1 }
 0xcf5   :  { %v1848_v14 = vadd.f32 %v1847_v63, %v5516_v55 }
 0xcf6   :  { %v4623_v17 = vpop.f32.mrf.mxu1 }
 0xcf7   :  { %v1851_v11 = vsel %vm953_vm3, %v1848_v14, -inf }
 0xcf8   :  { %1852 = vmax.xlane.f32.xlu0 %v1851_v11 }
 0xd0e   :  { %1865 = vrot.lane.b32.xlu0 %v5534_v22, %s5154_s27 }
 0xd12   :  { %1943 = vrot.lane.b32.xlu0 %v1592_v26, %s5140_s15 }
 0xd81   :  { %v1853_v27 = vpop.xlane.xlu0 %1852 }
 0xd82   :  { %v1854_v29 = vsub.f32 %v1848_v14, %v1853_v27 }
 0xd84   :  { %v1855_v34 = vmul.f32 1.442695, %v1854_v29 }
 0xd85   :  { %v1866_v37 = vpop.permute.xlu0 %1865 }
 0xd86   :  { %4894 = vpow2.f32 %v1855_v34  ;;  %4625 = vmatpush3.msra.mxu0 %v1866_v37 }
 0xd87   :  { %4626 = vmatprep.subr.mxu0 %v5147_v1 }
 0xd89   :  { %v1944_v56 = vpop.permute.xlu0 %1943 }
 0xd8a   :  { %v1954_v57 = vsel %vm277_vm2, %v5569_v18, %v1944_v56 }
 0xd93   :  { %v4895_v39 = vpop.eup %4894 }
 0xd94   :  { %v1857_v55 = vsel %vm953_vm3, %v4895_v39, 0.0 }
 0xd95   :  { %1858 = vadd.xlane.f32.xlu1 %v1857_v55  ;;  %v5653_v55 = vld [vmem:[#allocation13] sm:$0xff] }
 0xda6   :  { %1863 = vrot.lane.b32.xlu1 %v5531_v20, %s5154_s27  ;;  %v5616_v20 = vld [vmem:[#allocation11 + $0x28] sm:$0xff] }
 0xdaa   :  { %1947 = vrot.lane.b32.xlu1 %v1765_v10, %s5161_s12  ;;  %v5637_v10 = vrot.slane %v5522_v15, %v257_v3  ;;  %v5647_v3 = vld [vmem:[#allocation13 + $0x10] sm:$0xff] }
 0xe1e   :  { %v1859_v22 = vpop.xlane.xlu1 %1858 }
 0xe1f   :  { %4896 = vrcp.f32 %v1859_v22 }
 0xe22   :  { %v1864_v26 = vpop.permute.xlu1 %1863 }
 0xe23   :  { %4627 = vmatpush3.msra.mxu0 %v1864_v26 }
 0xe24   :  { %4631 = vmatprep.subr.mxu0 %v5147_v1 }
 0xe26   :  { %v1948_v47 = vpop.permute.xlu1 %1947 }
 0xe27   :  { %v1955_v58 = vsel %vm953_vm3, %v1954_v57, %v1948_v47 }
 0xe2c   :  { %v4897_v44 = vpop.eup %4896 }
 0xe2d   :  { %v1862_v45 = vmul.f32 %v4897_v44, %v4895_v39  ;;  %v5643_v39 = vld [vmem:[#allocation13 + $0x18] sm:$0xff] }
 0xe2e   :  { %4643 = vmatpush3.msra.mxu1 %v5643_v39 }
 0xe2f   :  { %4629 = vmatmul.mubr.msk.f32.vlgmr.msra.gmra.mxu0 %vm953_vm3, %v1862_v45  ;;  %4644 = vmatprep.subr.mxu1 %v5147_v1  ;;  %v5662_v45 = vrot.slane %v5522_v15, %v266_v43  ;;  %v5682_v43 = vld [vmem:[#allocation2 + $0x8] sm:$0xff] }
 0xe30   :  { %4639 = vmatprep.mubr.msk.f32.mxu0 %vm5148_vm0, %v5147_v1  ;;  %4632 = vmatpush3.msra.mxu0 %v5610_v46 }
 0xe31   :  { %4633 = vmatprep.subr.mxu0 %v5147_v1  ;;  %4645 = vmatpush3.msra.mxu1 %v5647_v3 }
 0xe32   :  { %4634 = vmatpush3.msra.mxu0 %v5612_v48  ;;  %4646 = vmatprep.subr.mxu1 %v5147_v1 }
 0xe33   :  { %4635 = vmatprep.subr.mxu0 %v5147_v1 }
 0xe34   :  { %4636 = vmatpush3.msra.mxu0 %v5616_v20 }
 0xe35   :  { %4637 = vmatprep.subr.mxu0 %v5147_v1 }
 0xe36   :  { %4638 = vmatpush3.msra.mxu0 %v5622_v6 }
 0xe37   :  { %4653 = vmatprep.subr.mxu0 %v5147_v1 }
 0xeef   :  { %v1938_v49 = vpop.f32.mrf.mxu0 }
 0xef0   :  { %1951 = vrot.lane.b32.xlu0 %v1938_v49, %s5162_s13 }
 0xef1   :  { %v4630_v38 = vpop.f32.mrf.mxu0 }
 0xef2   :  { %v5667_v38 = vrot.slane %v5522_v15, %v959_v53  ;;  %v5714_v53 = vld [vmem:[%s6020_s7] ss:$0 sm:$0xff]  ;;  %s5163_s7 = smov [#allocation16]  }
 0xef3   :  { %s4242_s17 = sshll.u32 %s5163_s7, 4  ;;  %s4243_s17 = int_to_ptr.vmem [resolvable:$true] %s4242_s17 }
 0xef4   :  { %s5105_s18 = scalar_lea.vmem %s4243_s17, 256  ;;  %p5110_p13 = scmp.lt.s32.totalorder %s4243_s17, %s4243_s17 }
 0xef5   :  { %p5106_p12 = scmp.ne.s32.totalorder %s4243_s17, %s5105_s18  ;;  %p5111_p0 = scmp.lt.s32.totalorder %s5105_s18, %s5105_s18 }
 0xef7   :  { %p5112_p1 = por %p5111_p0, %p5110_p13 }
 0xef9   :  { %p5113_p2 = pnand %p5112_p1, %p5106_p12 }
 0xf62   :  { %v1952_v40 = vpop.permute.xlu0 %1951 }
 0xf63   :  { %v1956_v59 = vsel %vm955_vm4, %v1955_v58, %v1952_v40 }
 0xf64   :  { %4640 = vmatmul.mubr.msk.f32.vlgmr.msra.gmra.mxu0 %vm176_vm1, %v1956_v59 }
 0xf65   :  { %4661 = vmatprep.mubr.msk.f32.mxu0 %vm5148_vm0, %v5147_v1 }
0x1024   :  { %v2030_v62 = vpop.f32.mrf.mxu0 }
0x1025   :  { %v2031_v63 = vadd.f32 %v2030_v62, %v5637_v10 }
0x1026   :  { %v4641_v14 = vpop.f32.mrf.mxu0 }
0x1027   :  { %v2034_v18 = vadd.f32 %v2031_v63, %v5468_v30  ;;  %v5650_v30 = vld [vmem:[#allocation13 + $0x8] sm:$0xff] }
0x1028   :  { %4647 = vmatpush3.msra.mxu1 %v5650_v30 }
0x1029   :  { %v2035_v17 = vsel %vm176_vm1, %v2034_v18, 0.0  ;;  %4648 = vmatprep.subr.mxu1 %v5147_v1 }
0x102a   :  { %2036 = vadd.xlane.f32.xlu1 %v2035_v17  ;;  %4649 = vmatpush3.msra.mxu1 %v5653_v55 }
0x102b   :  { %4664 = vmatprep.subr.mxu1 %v5147_v1 }
0x10b3   :  { %v2037_v11 = vpop.xlane.xlu1 %2036 }
0x10b4   :  { %v2038_v27 = vmul.f32 0.03125, %v2037_v11 }
0x10b6   :  { %v2039_v29 = vsub.f32 %v2034_v18, %v2038_v27 }
0x10b8   :  { %v2040_v34 = vmul.f32 %v2039_v29, %v2039_v29 }
0x10ba   :  { %v2041_v37 = vsel %vm176_vm1, %v2040_v34, 0.0 }
0x10bb   :  { %2042 = vadd.xlane.f32.xlu0 %v2041_v37 }
0x1144   :  { %v2043_v22 = vpop.xlane.xlu0 %2042 }
0x1145   :  { %v2044_v26 = vmul.f32 0.03125, %v2043_v22 }
0x1147   :  { %v2045_v44 = vadd.f32 1e-05, %v2044_v26 }
0x1149   :  { %4898 = vrsqrt.f32 %v2045_v44 }
0x1156   :  { %v4899_v49 = vpop.eup %4898 }
0x1157   :  { %v2047_v56 = vmul.f32 %v4899_v49, %v2039_v29 }
0x1159   :  { %v2052_v47 = vmul.f32 %v5662_v45, %v2047_v56 }
0x115b   :  { %v5671_v57 = vadd.f32 %v5667_v38, %v2052_v47  ;;  %v2264_v47 = vld [vmem:[#allocation7 + $0x8] sm:$0xff] }
0x115d   :  { %4651 = vmatmul.mubr.msk.f32.vlgmr.msra.gmra.mxu1 %vm176_vm1, %v5671_v57 }
0x115e   :  { %4665 = vmatpush3.msra.mxu1 %v5271_v4  ;;  %4672 = vmatprep.mubr.msk.f32.mxu1 %vm5148_vm0, %v5147_v1  ;;  %v5691_v4 = vld [vmem:[#allocation13 + $0x38] sm:$0xff] }
0x115f   :  { %4666 = vmatprep.subr.mxu1 %v5147_v1  ;;  %4654 = vmatpush3.xpose.msk.msra.mxu0 %vm2146_vm5, %v5691_v4 }
0x1160   :  { %4667 = vmatpush3.msra.mxu1 %v5273_v5  ;;  %4655 = vmatprep.subr.mxu0 %v5147_v1  ;;  %v5696_v5 = vld [vmem:[#allocation13 + $0x30] sm:$0xff] }
0x1161   :  { %4668 = vmatprep.subr.mxu1 %v5147_v1 }
0x1162   :  { %4669 = vmatpush3.msra.mxu1 %v5279_v7  ;;  %v5701_v7 = vld [vmem:[#allocation13 + $0x28] sm:$0xff] }
0x1163   :  { %4670 = vmatprep.subr.mxu1 %v5147_v1  ;;  %4656 = vmatpush3.xpose.msk.msra.mxu0 %vm2146_vm5, %v5696_v5 }
0x1164   :  { %4671 = vmatpush3.msra.mxu1 %v5286_v9  ;;  %4657 = vmatprep.subr.mxu0 %v5147_v1  ;;  %v5706_v9 = vld [vmem:[#allocation13 + $0x20] sm:$0xff] }
0x1165   :  { %4673 = vmatmul.mubr.msk.f32.vlgmr.msra.gmra.mxu1 %vm176_vm1, %v5682_v43  ;;  %4675 = vmatprep.subr.mxu1 %v5147_v1 }
0x1166   :  { %4677 = vmatprep.mubr.msk.f32.mxu1 %vm5148_vm0, %v5147_v1 }
0x1167   :  { %4658 = vmatpush3.xpose.msk.msra.mxu0 %vm2146_vm5, %v5701_v7 }
0x1168   :  { %4659 = vmatprep.subr.mxu0 %v5147_v1 }
0x116b   :  { %4660 = vmatpush3.xpose.msk.msra.mxu0 %vm2146_vm5, %v5706_v9 }
0x116c   :  { %4685 = vmatprep.subr.mxu0 %v5147_v1 }
0x121d   :  { %v2133_v15 = vpop.f32.mrf.mxu1 }
0x121e   :  { %v2134_v58 = vadd.f32 %v5714_v53, %v2133_v15 }
0x121f   :  { %v4652_v40 = vpop.f32.mrf.mxu1 }
0x1220   :  { %v2138_v59 = vmul.f32 0.70710677, %v2134_v58  ;;  %v2137_v27 = vmul.f32 0.5, %v2134_v58 }
0x1222   :  { %4900 = verf.f32 %v2138_v59 }
0x1225   :  { %v5717_v62 = vpop.f32.mrf.mxu1 }
0x1226   :  { %v2338_v63 = vadd.f32 %v5717_v62, %v5303_v12  ;;  %v2339_v14 = vadd.f32 %v5717_v62, %v5305_v13 }
0x1227   :  { %v4674_v18 = vpop.f32.mrf.mxu1 }
0x1228   :  { %2511 = vrot.lane.b32.xlu1 %v2339_v14, %s5150_s8  ;;  %2343 = vrot.lane.b32.xlu0 %v2339_v14, %s5151_s25  ;;  %v2341_v17 = vmul.f32 0.35355338, %v2338_v63 }
0x122c   :  { %2677 = vrot.lane.b32.xlu0 %v2339_v14, %s5152_s26  ;;  %2509 = vrot.lane.b32.xlu1 %v2341_v17, %s5153_s3 }
0x122f   :  { %v4901_v11 = vpop.eup %4900 }
0x1230   :  { %v2140_v29 = vadd.f32 1.0, %v4901_v11  ;;  %2843 = vrot.lane.b32.xlu0 %v2339_v14, %s5154_s27  ;;  %2675 = vrot.lane.b32.xlu1 %v2341_v17, %s5155_s28 }
0x1232   :  { %v2141_v12 = vmul.f32 %v2140_v29, %v2137_v27 }
0x1234   :  { %2841 = vrot.lane.b32.xlu1 %v2341_v17, %s5156_s29  ;;  %4662 = vmatmul.mubr.msk.f32.vlgmr.msra.gmra.mxu0 %vm2146_vm5, %v2141_v12 }
0x1235   :  { %4687 = vmatprep.mubr.msk.f32.mxu0 %vm5148_vm0, %v5147_v1 }
0x129a   :  { %v2512_v13 = vpop.permute.xlu1 %2511  ;;  %v2344_v34 = vpop.permute.xlu0 %2343 }
0x129b   :  { %4676 = vmatpush3.xpose.msk.msra.mxu1 %vm277_vm2, %v2344_v34  ;;  %4686 = vmatpush3.xpose.msk.msra.mxu0 %vm277_vm2, %v2512_v13  ;;  %v2340_v34 = vadd.f32 %v5717_v62, %v5349_v51 }
0x129c   :  { %4695 = vmatprep.subr.mxu0 %v5147_v1  ;;  %4680 = vmatprep.subr.mxu1 %v5147_v1 }
0x129e   :  { %v2678_v37 = vpop.permute.xlu0 %2677  ;;  %v2510_v22 = vpop.permute.xlu1 %2509  ;;  %4678 = vmatmul.mubr.msk.f32.vlgmr.msra.gmra.mxu1 %vm277_vm2, %v2341_v17 }
0x129f   :  { %4688 = vmatmul.mubr.msk.f32.vlgmr.msra.gmra.mxu0 %vm277_vm2, %v2510_v22  ;;  %4682 = vmatprep.mubr.msk.f32.mxu1 %vm5148_vm0, %v5147_v1 }
0x12a0   :  { %4696 = vmatpush3.xpose.msk.msra.mxu0 %vm277_vm2, %v2678_v37  ;;  %4697 = vmatprep.mubr.msk.f32.mxu0 %vm5148_vm0, %v5147_v1 }
0x12a1   :  { %4705 = vmatprep.subr.mxu0 %v5147_v1 }
0x12a2   :  { %v2844_v26 = vpop.permute.xlu0 %2843  ;;  %v2676_v44 = vpop.permute.xlu1 %2675 }
0x12a3   :  { %4698 = vmatmul.mubr.msk.f32.vlgmr.msra.gmra.mxu0 %vm277_vm2, %v2676_v44 }
0x12a4   :  { %4706 = vmatpush3.xpose.msk.msra.mxu0 %vm277_vm2, %v2844_v26  ;;  %4707 = vmatprep.mubr.msk.f32.mxu0 %vm5148_vm0, %v5147_v1 }
0x12a5   :  { %4715 = vmatprep.subr.mxu0 %v5147_v1 }
0x12a6   :  { %v2842_v49 = vpop.permute.xlu1 %2841 }
0x12a7   :  { %4708 = vmatmul.mubr.msk.f32.vlgmr.msra.gmra.mxu0 %vm277_vm2, %v2842_v49 }
0x12a8   :  { %4716 = vmatpush3.msra.mxu0 %v5377_v31  ;;  %4723 = vmatprep.mubr.msk.f32.mxu0 %vm5148_vm0, %v5147_v1 }
0x12a9   :  { %4717 = vmatprep.subr.mxu0 %v5147_v1 }
0x12aa   :  { %4718 = vmatpush3.msra.mxu0 %v5381_v32 }
0x12ab   :  { %4719 = vmatprep.subr.mxu0 %v5147_v1 }
0x12ac   :  { %4720 = vmatpush3.msra.mxu0 %v5383_v33 }
0x12ad   :  { %4721 = vmatprep.subr.mxu0 %v5147_v1 }
0x12ae   :  { %4722 = vmatpush3.msra.mxu0 %v5389_v35 }
0x12af   :  { %4737 = vmatprep.subr.mxu0 %v5430_v0 }
0x12f4   :  { %v5761_v56 = vpop.f32.mrf.mxu0 }
0x12f6   :  { %v4663_v31 = vpop.f32.mrf.mxu0 }
0x135e   :  { %v2416_v15 = vpop.f32.mrf.mxu1 }
0x135f   :  { %v2417_v58 = vadd.f32 %v2416_v15, %v2264_v47  ;;  %v2583_v40 = vpop.f32.mrf.mxu0 }
0x1360   :  { %v2584_v59 = vadd.f32 %v2583_v40, %v2264_v47  ;;  %v4679_v63 = vpop.f32.mrf.mxu1 }
0x1361   :  { %v4689_v32 = vpop.f32.mrf.mxu0  ;;  %v2420_v14 = vsel %vm277_vm2, %v2417_v58, -inf }
0x1362   :  { %2421 = vmax.xlane.f32.xlu0 %v2420_v14  ;;  %v2587_v33 = vsel %vm277_vm2, %v2584_v59, -inf }
0x1363   :  { %2588 = vmax.xlane.f32.xlu1 %v2587_v33  ;;  %v2749_v18 = vpop.f32.mrf.mxu0 }
0x1364   :  { %v2750_v35 = vadd.f32 %v2749_v18, %v2264_v47 }
0x1365   :  { %v4699_v17 = vpop.f32.mrf.mxu0 }
0x1366   :  { %v2753_v11 = vsel %vm277_vm2, %v2750_v35, -inf }
0x1367   :  { %v2915_v27 = vpop.f32.mrf.mxu0  ;;  %2754 = vmax.xlane.f32.xlu0 %v2753_v11 }
0x1368   :  { %v2916_v29 = vadd.f32 %v2915_v27, %v2264_v47 }
0x1369   :  { %v4709_v12 = vpop.f32.mrf.mxu0 }
0x136a   :  { %v2919_v13 = vsel %vm277_vm2, %v2916_v29, -inf }
0x136b   :  { %2920 = vmax.xlane.f32.xlu0 %v2919_v13 }
0x1374   :  { %2433 = vrot.lane.b32.xlu1 %v2340_v34, %s5157_s30 }
0x13eb   :  { %v2422_v37 = vpop.xlane.xlu0 %2421 }
0x13ec   :  { %v2423_v22 = vsub.f32 %v2417_v58, %v2422_v37  ;;  %v2589_v26 = vpop.xlane.xlu1 %2588 }
0x13ed   :  { %v2590_v44 = vsub.f32 %v2584_v59, %v2589_v26 }
0x13ee   :  { %v2424_v49 = vmul.f32 1.442695, %v2423_v22 }
0x13ef   :  { %v2591_v31 = vmul.f32 1.442695, %v2590_v44 }
0x13f0   :  { %4902 = vpow2.f32 %v2424_v49  ;;  %v2434_v15 = vpop.permute.xlu1 %2433  ;;  %v2755_v40 = vpop.xlane.xlu0 %2754 }
0x13f1   :  { %4904 = vpow2.f32 %v2591_v31  ;;  %v2756_v47 = vsub.f32 %v2750_v35, %v2755_v40  ;;  %4681 = vmatpush3.msra.mxu1 %v2434_v15 }
0x13f2   :  { %4690 = vmatprep.subr.mxu1 %v5147_v1 }
0x13f3   :  { %v2757_v63 = vmul.f32 1.442695, %v2756_v47 }
0x13f4   :  { %v2921_v32 = vpop.xlane.xlu0 %2920 }
0x13f5   :  { %4906 = vpow2.f32 %v2757_v63  ;;  %v2922_v51 = vsub.f32 %v2916_v29, %v2921_v32 }
0x13f7   :  { %v2923_v62 = vmul.f32 1.442695, %v2922_v51 }
0x13f9   :  { %4908 = vpow2.f32 %v2923_v62 }
0x13fd   :  { %v4903_v14 = vpop.eup %4902 }
0x13fe   :  { %v4905_v58 = vpop.eup %4904  ;;  %v2426_v59 = vsel %vm277_vm2, %v4903_v14, 0.0 }
0x13ff   :  { %2427 = vadd.xlane.f32.xlu1 %v2426_v59  ;;  %v2593_v33 = vsel %vm277_vm2, %v4905_v58, 0.0 }
0x1400   :  { %2594 = vadd.xlane.f32.xlu0 %v2593_v33 }
0x1402   :  { %v4907_v18 = vpop.eup %4906 }
0x1403   :  { %v2759_v35 = vsel %vm277_vm2, %v4907_v18, 0.0 }
0x1404   :  { %2760 = vadd.xlane.f32.xlu1 %v2759_v35 }
0x1406   :  { %v4909_v17 = vpop.eup %4908 }
0x1407   :  { %v2925_v11 = vsel %vm277_vm2, %v4909_v17, 0.0 }
0x1408   :  { %2926 = vadd.xlane.f32.xlu0 %v2925_v11 }
0x1415   :  { %2765 = vrot.lane.b32.xlu1 %v2340_v34, %s5158_s10 }
0x1419   :  { %2931 = vrot.lane.b32.xlu1 %v2340_v34, %s5159_s11 }
0x141e   :  { %2599 = vrot.lane.b32.xlu0 %v2340_v34, %s5160_s5 }
0x1488   :  { %v2428_v27 = vpop.xlane.xlu1 %2427 }
0x1489   :  { %4910 = vrcp.f32 %v2428_v27  ;;  %v2595_v29 = vpop.xlane.xlu0 %2594  ;;  %v2262_v27 = vld [vmem:[#allocation5 + $0x18] sm:$0xff] }
0x148a   :  { %4912 = vrcp.f32 %v2595_v29 }
0x148d   :  { %v2761_v12 = vpop.xlane.xlu1 %2760 }
0x148e   :  { %4914 = vrcp.f32 %v2761_v12 }
0x1491   :  { %v2927_v13 = vpop.xlane.xlu0 %2926  ;;  %v2766_v49 = vpop.permute.xlu1 %2765 }
0x1492   :  { %4916 = vrcp.f32 %v2927_v13 }
0x1495   :  { %v2600_v44 = vpop.permute.xlu0 %2599  ;;  %v2932_v47 = vpop.permute.xlu1 %2931 }
0x1496   :  { %v4911_v37 = vpop.eup %4910 }
0x1497   :  { %v2431_v22 = vmul.f32 %v4911_v37, %v4903_v14  ;;  %v4913_v26 = vpop.eup %4912 }
0x1498   :  { %v2598_v34 = vmul.f32 %v4913_v26, %v4905_v58 }
0x1499   :  { %4683 = vmatmul.mubr.msk.f32.vlgmr.msra.gmra.mxu1 %vm277_vm2, %v2431_v22 }
0x149a   :  { %4691 = vmatpush3.msra.mxu1 %v2600_v44  ;;  %4692 = vmatprep.mubr.msk.f32.mxu1 %vm5148_vm0, %v5147_v1 }
0x149b   :  { %4700 = vmatprep.subr.mxu1 %v5147_v1  ;;  %v4915_v31 = vpop.eup %4914 }
0x149c   :  { %v2764_v15 = vmul.f32 %v4915_v31, %v4907_v18 }
0x149d   :  { %4693 = vmatmul.mubr.msk.f32.vlgmr.msra.gmra.mxu1 %vm277_vm2, %v2598_v34 }
0x149e   :  { %4701 = vmatpush3.msra.mxu1 %v2766_v49  ;;  %4702 = vmatprep.mubr.msk.f32.mxu1 %vm5148_vm0, %v5147_v1 }
0x149f   :  { %4710 = vmatprep.subr.mxu1 %v5147_v1  ;;  %v4917_v40 = vpop.eup %4916 }
0x14a0   :  { %v2930_v63 = vmul.f32 %v4917_v40, %v4909_v17  ;;  %v2261_v17 = vld [vmem:[#allocation5 + $0x10] sm:$0xff] }
0x14a1   :  { %4703 = vmatmul.mubr.msk.f32.vlgmr.msra.gmra.mxu1 %vm277_vm2, %v2764_v15 }
0x14a2   :  { %4711 = vmatpush3.msra.mxu1 %v2932_v47  ;;  %4712 = vmatprep.mubr.msk.f32.mxu1 %vm5148_vm0, %v5147_v1 }
0x14a3   :  { %4726 = vmatprep.subr.mxu1 %v5147_v1 }
0x14a5   :  { %4713 = vmatmul.mubr.msk.f32.vlgmr.msra.gmra.mxu1 %vm277_vm2, %v2930_v63 }
0x14a6   :  { %4727 = vmatpush3.msra.mxu1 %v5399_v50  ;;  %4734 = vmatprep.mubr.msk.f32.mxu1 %vm5148_vm0, %v5147_v1 }
0x14a7   :  { %4728 = vmatprep.subr.mxu1 %v5147_v1 }
0x14a8   :  { %4729 = vmatpush3.msra.mxu1 %v5403_v52 }
0x14a9   :  { %4730 = vmatprep.subr.mxu1 %v5147_v1 }
0x14aa   :  { %4731 = vmatpush3.msra.mxu1 %v5418_v60 }
0x14ab   :  { %4732 = vmatprep.subr.mxu1 %v5147_v1 }
0x14ac   :  { %4733 = vmatpush3.msra.mxu1 %v5421_v61 }
0x14ad   :  { %4748 = vmatprep.subr.mxu1 %v5147_v1 }
0x1559   :  { %v2505_v32 = vpop.f32.mrf.mxu1 }
0x155b   :  { %v4684_v51 = vpop.f32.mrf.mxu1 }
0x155d   :  { %v2671_v50 = vpop.f32.mrf.mxu1 }
0x155e   :  { %3008 = vrot.lane.b32.xlu0 %v2671_v50, %s5140_s15 }
0x155f   :  { %v4694_v62 = vpop.f32.mrf.mxu1 }
0x1561   :  { %v2837_v14 = vpop.f32.mrf.mxu1 }
0x1562   :  { %3012 = vrot.lane.b32.xlu1 %v2837_v14, %s5161_s12  ;;  %v5864_v14 = vld [vmem:[#allocation8 + $0x8] sm:$0xff] }
0x1563   :  { %v4704_v52 = vpop.f32.mrf.mxu1 }
0x1565   :  { %v3003_v58 = vpop.f32.mrf.mxu1 }
0x1566   :  { %3016 = vrot.lane.b32.xlu0 %v3003_v58, %s5162_s13 }
0x1567   :  { %v4714_v60 = vpop.f32.mrf.mxu1 }
0x15d0   :  { %v3009_v59 = vpop.permute.xlu0 %3008 }
0x15d1   :  { %v3019_v61 = vsel %vm277_vm2, %v2505_v32, %v3009_v59 }
0x15d4   :  { %v3013_v33 = vpop.permute.xlu1 %3012 }
0x15d5   :  { %v3020_v18 = vsel %vm953_vm3, %v3019_v61, %v3013_v33 }
0x15d8   :  { %v3017_v35 = vpop.permute.xlu0 %3016 }
0x15d9   :  { %v3021_v11 = vsel %vm955_vm4, %v3020_v18, %v3017_v35 }
0x15da   :  { %4724 = vmatmul.mubr.msk.f32.vlgmr.msra.gmra.mxu0 %vm176_vm1, %v3021_v11 }
0x15db   :  { %4738 = vmatpush3.msra.mxu0 %v5430_v0  ;;  %4745 = vmatprep.mubr.msk.f32.mxu0 %vm176_vm1, %v2261_v17 }
0x15dc   :  { %4739 = vmatprep.subr.mxu0 %v5432_v8 }
0x15dd   :  { %4740 = vmatpush3.msra.mxu0 %v5432_v8 }
0x15de   :  { %4741 = vmatprep.subr.mxu0 %v5441_v16 }
0x15df   :  { %4742 = vmatpush3.msra.mxu0 %v5441_v16 }
0x15e0   :  { %4743 = vmatprep.subr.mxu0 %v5446_v21 }
0x15e1   :  { %4744 = vmatpush3.msra.mxu0 %v5446_v21 }
0x15e2   :  { %4746 = vmatmul.mubr.msk.f32.vlgmr.msra.gmra.mxu0 %vm176_vm1, %v2262_v27  ;;  %4755 = vmatprep.subr.mxu0 %v5147_v1 }
0x15e3   :  { %4759 = vmatprep.mubr.msk.f32.mxu0 %vm5148_vm0, %v5147_v1 }
0x169a   :  { %v3091_v0 = vpop.f32.mrf.mxu0 }
0x169b   :  { %v3092_v29 = vadd.f32 %v3091_v0, %v5413_v54 }
0x169c   :  { %v4725_v8 = vpop.f32.mrf.mxu0 }
0x169d   :  { %v3095_v12 = vadd.f32 %v3092_v29, %v5682_v43 }
0x169f   :  { %v3096_v16 = vsel %vm176_vm1, %v3095_v12, 0.0 }
0x16a0   :  { %3097 = vadd.xlane.f32.xlu1 %v3096_v16 }
0x16a2   :  { %v4747_v13 = vpop.f32.mrf.mxu0 }
0x16a3   :  { %v5830_v43 = vadd.f32 %v4747_v13, %v5476_v36  ;;  %v5876_v11 = vadd.f32 %v4747_v13, %v5528_v19 }
0x16a4   :  { %v3258_v37 = vpop.f32.mrf.mxu0 }
0x16a5   :  { %v5824_v21 = vadd.f32 %v3258_v37, %v5476_v36  ;;  %v5869_v33 = vadd.f32 %v3258_v37, %v5528_v19 }
0x16b1   :  { %3446 = vrot.lane.b32.xlu1 %v5824_v21, %s5153_s3 }
0x1729   :  { %v3098_v22 = vpop.xlane.xlu1 %3097 }
0x172a   :  { %v3099_v26 = vmul.f32 0.03125, %v3098_v22 }
0x172c   :  { %v3100_v44 = vsub.f32 %v3095_v12, %v3099_v26 }
0x172d   :  { %v3447_v62 = vpop.permute.xlu1 %3446 }
0x172e   :  { %v3101_v49 = vmul.f32 %v3100_v44, %v3100_v44 }
0x1730   :  { %v3102_v54 = vsel %vm176_vm1, %v3101_v49, 0.0 }
0x1731   :  { %3103 = vadd.xlane.f32.xlu0 %v3102_v54 }
0x1747   :  { %3448 = vrot.lane.b32.xlu0 %v5830_v43, %s5153_s3 }
0x17ba   :  { %v3104_v34 = vpop.xlane.xlu0 %3103 }
0x17bb   :  { %v3105_v31 = vmul.f32 0.03125, %v3104_v34 }
0x17bd   :  { %v3106_v15 = vadd.f32 1e-05, %v3105_v31 }
0x17be   :  { %v3449_v50 = vpop.permute.xlu0 %3448 }
0x17bf   :  { %4918 = vrsqrt.f32 %v3106_v15 }
0x17cc   :  { %v4919_v40 = vpop.eup %4918 }
0x17cd   :  { %v3108_v47 = vmul.f32 %v4919_v40, %v3100_v44 }
0x17cf   :  { %v3109_v63 = vmul.f32 %v3108_v47, %v5459_v25 }
0x17d1   :  { %v5836_v32 = vadd.f32 %v3109_v63, %v5464_v28 }
0x17d3   :  { %4735 = vmatmul.mubr.msk.f32.vlgmr.msra.gmra.mxu1 %vm176_vm1, %v5836_v32 }
0x17d4   :  { %4749 = vmatpush3.xpose.msk.msra.mxu1 %vm277_vm2, %v5830_v43  ;;  %4752 = vmatprep.mubr.msk.f32.mxu1 %vm5148_vm0, %v5147_v1 }
0x17d5   :  { %4750 = vmatprep.subr.mxu1 %v5147_v1 }
0x17d8   :  { %4751 = vmatpush3.xpose.msk.msra.mxu1 %vm277_vm2, %v5824_v21 }
0x17d9   :  { %4762 = vmatprep.subr.mxu1 %v5147_v1 }
0x1893   :  { %v3182_v25 = vpop.f32.mrf.mxu1 }
0x1894   :  { %v3183_v28 = vadd.f32 %v3182_v25, %v5498_v42 }
0x1895   :  { %v4736_v36 = vpop.f32.mrf.mxu1 }
0x1896   :  { %v5849_v51 = vmul.f32 0.35355338, %v3183_v28 }
0x1898   :  { %3444 = vrot.lane.b32.xlu1 %v5849_v51, %s5153_s3  ;;  %4753 = vmatmul.mubr.msk.f32.vlgmr.msra.gmra.mxu1 %vm277_vm2, %v5849_v51 }
0x1899   :  { %4763 = vmatpush3.xpose.msk.msra.mxu1 %vm277_vm2, %v3449_v50  ;;  %4766 = vmatprep.mubr.msk.f32.mxu1 %vm5148_vm0, %v5147_v1 }
0x189a   :  { %4764 = vmatprep.subr.mxu1 %v5147_v1 }
0x189d   :  { %4765 = vmatpush3.xpose.msk.msra.mxu1 %vm277_vm2, %v3447_v62 }
0x189e   :  { %4783 = vmatprep.subr.mxu1 %v5147_v1 }
0x190a   :  { %v3445_v42 = vpop.permute.xlu1 %3444 }
0x190b   :  { %4767 = vmatmul.mubr.msk.f32.vlgmr.msra.gmra.mxu1 %vm277_vm2, %v3445_v42 }
0x190c   :  { %4787 = vmatprep.mubr.msk.f32.mxu1 %vm5148_vm0, %v5147_v1 }
0x1958   :  { %v3347_v52 = vpop.f32.mrf.mxu1 }
0x1959   :  { %v3348_v58 = vadd.f32 %v3347_v52, %v5864_v14 }
0x195a   :  { %v4754_v60 = vpop.f32.mrf.mxu1 }
0x195b   :  { %v3351_v59 = vsel %vm953_vm3, %v3348_v58, -inf }
0x195c   :  { %3352 = vmax.xlane.f32.xlu0 %v3351_v59 }
0x1972   :  { %3365 = vrot.lane.b32.xlu0 %v5869_v33, %s5151_s25 }
0x19cb   :  { %v3522_v61 = vpop.f32.mrf.mxu1 }
0x19cc   :  { %v3523_v18 = vadd.f32 %v3522_v61, %v5864_v14 }
0x19cd   :  { %v4768_v35 = vpop.f32.mrf.mxu1 }
0x19ce   :  { %v3526_v17 = vsel %vm953_vm3, %v3523_v18, -inf }
0x19cf   :  { %3527 = vmax.xlane.f32.xlu1 %v3526_v17 }
0x19e0   :  { %3367 = vrot.lane.b32.xlu1 %v5876_v11, %s5151_s25 }
0x19e4   :  { %3540 = vrot.lane.b32.xlu1 %v5876_v11, %s5150_s8 }
0x19e5   :  { %v3353_v27 = vpop.xlane.xlu0 %3352 }
0x19e6   :  { %v3354_v0 = vsub.f32 %v3348_v58, %v3353_v27 }
0x19e8   :  { %v3355_v29 = vmul.f32 1.442695, %v3354_v0  ;;  %3538 = vrot.lane.b32.xlu1 %v5869_v33, %s5150_s8 }
0x19e9   :  { %v3366_v22 = vpop.permute.xlu0 %3365 }
0x19ea   :  { %4920 = vpow2.f32 %v3355_v29 }
0x19ec   :  { %3619 = vrot.lane.b32.xlu1 %v5824_v21, %s5155_s28 }
0x19f7   :  { %v4921_v8 = vpop.eup %4920 }
0x19f8   :  { %v3357_v19 = vsel %vm953_vm3, %v4921_v8, 0.0 }
0x19f9   :  { %3358 = vadd.xlane.f32.xlu0 %v3357_v19 }
0x1a58   :  { %v3528_v12 = vpop.xlane.xlu1 %3527 }
0x1a59   :  { %v3529_v16 = vsub.f32 %v3523_v18, %v3528_v12 }
0x1a5b   :  { %v3530_v13 = vmul.f32 1.442695, %v3529_v16 }
0x1a5c   :  { %v3368_v37 = vpop.permute.xlu1 %3367 }
0x1a5d   :  { %4922 = vpow2.f32 %v3530_v13  ;;  %4756 = vmatpush3.msra.mxu0 %v3368_v37 }
0x1a5e   :  { %4757 = vmatprep.subr.mxu0 %v5147_v1 }
0x1a5f   :  { %4758 = vmatpush3.msra.mxu0 %v3366_v22 }
0x1a60   :  { %4769 = vmatprep.subr.mxu0 %v5147_v1  ;;  %v3541_v54 = vpop.permute.xlu1 %3540 }
0x1a64   :  { %v3539_v15 = vpop.permute.xlu1 %3538 }
0x1a68   :  { %v3620_v28 = vpop.permute.xlu1 %3619 }
0x1a6a   :  { %v4923_v26 = vpop.eup %4922 }
0x1a6b   :  { %v3532_v44 = vsel %vm953_vm3, %v4923_v26, 0.0 }
0x1a6c   :  { %3533 = vadd.xlane.f32.xlu0 %v3532_v44 }
0x1a82   :  { %v3359_v49 = vpop.xlane.xlu0 %3358  ;;  %3621 = vrot.lane.b32.xlu0 %v5830_v43, %s5155_s28 }
0x1a83   :  { %4924 = vrcp.f32 %v3359_v49 }
0x1a86   :  { %3617 = vrot.lane.b32.xlu0 %v5849_v51, %s5155_s28 }
0x1a90   :  { %v4925_v34 = vpop.eup %4924 }
0x1a91   :  { %v3362_v31 = vmul.f32 %v4925_v34, %v4921_v8 }
0x1a93   :  { %4760 = vmatmul.mubr.msk.f32.vlgmr.msra.gmra.mxu0 %vm953_vm3, %v3362_v31 }
0x1a94   :  { %4770 = vmatpush3.msra.mxu0 %v3541_v54  ;;  %4773 = vmatprep.mubr.msk.f32.mxu0 %vm5148_vm0, %v5147_v1 }
0x1a95   :  { %4771 = vmatprep.subr.mxu0 %v5147_v1 }
0x1a96   :  { %4772 = vmatpush3.msra.mxu0 %v3539_v15 }
0x1a97   :  { %4776 = vmatprep.subr.mxu0 %v5147_v1 }
0x1af5   :  { %v3534_v40 = vpop.xlane.xlu0 %3533 }
0x1af6   :  { %4926 = vrcp.f32 %v3534_v40 }
0x1af9   :  { %v3622_v25 = vpop.permute.xlu0 %3621 }
0x1afd   :  { %v3618_v36 = vpop.permute.xlu0 %3617 }
0x1b03   :  { %v4927_v47 = vpop.eup %4926 }
0x1b04   :  { %v3537_v63 = vmul.f32 %v4927_v47, %v4923_v26 }
0x1b06   :  { %4774 = vmatmul.mubr.msk.f32.vlgmr.msra.gmra.mxu0 %vm953_vm3, %v3537_v63 }
0x1b07   :  { %4777 = vmatpush3.xpose.msk.msra.mxu0 %vm277_vm2, %v3622_v25  ;;  %4780 = vmatprep.mubr.msk.f32.mxu0 %vm5148_vm0, %v5147_v1 }
0x1b08   :  { %4778 = vmatprep.subr.mxu0 %v5147_v1 }
0x1b0b   :  { %4779 = vmatpush3.xpose.msk.msra.mxu0 %vm277_vm2, %v3620_v28 }
0x1b0c   :  { %4797 = vmatprep.subr.mxu0 %v5147_v1 }
0x1b0e   :  { %4781 = vmatmul.mubr.msk.f32.vlgmr.msra.gmra.mxu0 %vm277_vm2, %v3618_v36 }
0x1b0f   :  { %4801 = vmatprep.mubr.msk.f32.mxu0 %vm5148_vm0, %v5147_v1 }
0x1b53   :  { %v5909_v50 = vpop.f32.mrf.mxu0 }
0x1b55   :  { %v4761_v62 = vpop.f32.mrf.mxu0 }
0x1bc6   :  { %v3613_v42 = vpop.f32.mrf.mxu0 }
0x1bc8   :  { %v4775_v52 = vpop.f32.mrf.mxu0 }
0x1bce   :  { %v3695_v58 = vpop.f32.mrf.mxu0 }
0x1bcf   :  { %v3696_v60 = vadd.f32 %v3695_v58, %v5864_v14 }
0x1bd0   :  { %v4782_v59 = vpop.f32.mrf.mxu0 }
0x1bd1   :  { %v3699_v61 = vsel %vm953_vm3, %v3696_v60, -inf }
0x1bd2   :  { %3700 = vmax.xlane.f32.xlu1 %v3699_v61 }
0x1be3   :  { %3711 = vrot.lane.b32.xlu1 %v5869_v33, %s5152_s26 }
0x1be7   :  { %3794 = vrot.lane.b32.xlu1 %v5830_v43, %s5156_s29 }
0x1beb   :  { %3790 = vrot.lane.b32.xlu1 %v5849_v51, %s5156_s29 }
0x1c5b   :  { %v3701_v18 = vpop.xlane.xlu1 %3700 }
0x1c5c   :  { %v3702_v35 = vsub.f32 %v3696_v60, %v3701_v18 }
0x1c5e   :  { %v3703_v17 = vmul.f32 1.442695, %v3702_v35 }
0x1c5f   :  { %v3712_v8 = vpop.permute.xlu1 %3711 }
0x1c60   :  { %4928 = vpow2.f32 %v3703_v17 }
0x1c63   :  { %v3795_v12 = vpop.permute.xlu1 %3794 }
0x1c67   :  { %v3791_v16 = vpop.permute.xlu1 %3790 }
0x1c6d   :  { %v4929_v27 = vpop.eup %4928 }
0x1c6e   :  { %v3705_v0 = vsel %vm953_vm3, %v4929_v27, 0.0 }
0x1c6f   :  { %3706 = vadd.xlane.f32.xlu0 %v3705_v0 }
0x1c85   :  { %3713 = vrot.lane.b32.xlu0 %v5876_v11, %s5152_s26 }
0x1c89   :  { %3792 = vrot.lane.b32.xlu0 %v5824_v21, %s5156_s29 }
0x1cf8   :  { %v3707_v29 = vpop.xlane.xlu0 %3706 }
0x1cf9   :  { %4930 = vrcp.f32 %v3707_v29 }
0x1cfc   :  { %v3714_v43 = vpop.permute.xlu0 %3713 }
0x1cfd   :  { %4784 = vmatpush3.msra.mxu1 %v3714_v43 }
0x1cfe   :  { %4785 = vmatprep.subr.mxu1 %v5147_v1 }
0x1cff   :  { %4786 = vmatpush3.msra.mxu1 %v3712_v8 }
0x1d00   :  { %4790 = vmatprep.subr.mxu1 %v5147_v1  ;;  %v3793_v21 = vpop.permute.xlu0 %3792 }
0x1d06   :  { %v4931_v51 = vpop.eup %4930 }
0x1d07   :  { %v3710_v19 = vmul.f32 %v4931_v51, %v4929_v27 }
0x1d09   :  { %4788 = vmatmul.mubr.msk.f32.vlgmr.msra.gmra.mxu1 %vm953_vm3, %v3710_v19 }
0x1d0a   :  { %4791 = vmatpush3.xpose.msk.msra.mxu1 %vm277_vm2, %v3795_v12  ;;  %4794 = vmatprep.mubr.msk.f32.mxu1 %vm5148_vm0, %v5147_v1 }
0x1d0b   :  { %4792 = vmatprep.subr.mxu1 %v5147_v1 }
0x1d0e   :  { %4793 = vmatpush3.xpose.msk.msra.mxu1 %vm277_vm2, %v3793_v21 }
0x1d0f   :  { %4815 = vmatprep.subr.mxu1 %v5147_v1 }
0x1d11   :  { %4795 = vmatmul.mubr.msk.f32.vlgmr.msra.gmra.mxu1 %vm277_vm2, %v3791_v16 }
0x1d12   :  { %4816 = vmatpush3.msra.mxu1 %v5643_v39  ;;  %4823 = vmatprep.mubr.msk.f32.mxu1 %vm5148_vm0, %v5147_v1 }
0x1d13   :  { %4817 = vmatprep.subr.mxu1 %v5147_v1 }
0x1d14   :  { %4818 = vmatpush3.msra.mxu1 %v5647_v3 }
0x1d15   :  { %4819 = vmatprep.subr.mxu1 %v5147_v1 }
0x1d16   :  { %4820 = vmatpush3.msra.mxu1 %v5650_v30 }
0x1d17   :  { %4821 = vmatprep.subr.mxu1 %v5147_v1 }
0x1d18   :  { %4822 = vmatpush3.msra.mxu1 %v5653_v55 }
0x1dc9   :  { %v3786_v13 = vpop.f32.mrf.mxu1 }
0x1dcb   :  { %v4789_v37 = vpop.f32.mrf.mxu1 }
0x1dd1   :  { %v3868_v22 = vpop.f32.mrf.mxu1 }
0x1dd2   :  { %v3869_v39 = vadd.f32 %v3868_v22, %v5864_v14 }
0x1dd3   :  { %v4796_v26 = vpop.f32.mrf.mxu1 }
0x1dd4   :  { %v3872_v44 = vsel %vm953_vm3, %v3869_v39, -inf }
0x1dd5   :  { %3873 = vmax.xlane.f32.xlu0 %v3872_v44 }
0x1deb   :  { %3886 = vrot.lane.b32.xlu0 %v5876_v11, %s5154_s27 }
0x1def   :  { %3964 = vrot.lane.b32.xlu0 %v3613_v42, %s5140_s15 }
0x1e5e   :  { %v3874_v3 = vpop.xlane.xlu0 %3873 }
0x1e5f   :  { %v3875_v30 = vsub.f32 %v3869_v39, %v3874_v3 }
0x1e61   :  { %v3876_v49 = vmul.f32 1.442695, %v3875_v30 }
0x1e62   :  { %v3887_v54 = vpop.permute.xlu0 %3886 }
0x1e63   :  { %4932 = vpow2.f32 %v3876_v49  ;;  %4798 = vmatpush3.msra.mxu0 %v3887_v54 }
0x1e64   :  { %4799 = vmatprep.subr.mxu0 %v5147_v1 }
0x1e66   :  { %v3965_v40 = vpop.permute.xlu0 %3964 }
0x1e67   :  { %v3975_v63 = vsel %vm277_vm2, %v5909_v50, %v3965_v40 }
0x1e70   :  { %v4933_v55 = vpop.eup %4932 }
0x1e71   :  { %v3878_v14 = vsel %vm953_vm3, %v4933_v55, 0.0 }
0x1e72   :  { %3879 = vadd.xlane.f32.xlu1 %v3878_v14 }
0x1e83   :  { %3884 = vrot.lane.b32.xlu1 %v5869_v33, %s5154_s27 }
0x1e87   :  { %3968 = vrot.lane.b32.xlu1 %v3786_v13, %s5161_s12 }
0x1efb   :  { %v3880_v11 = vpop.xlane.xlu1 %3879 }
0x1efc   :  { %4934 = vrcp.f32 %v3880_v11 }
0x1eff   :  { %v3885_v34 = vpop.permute.xlu1 %3884 }
0x1f00   :  { %4800 = vmatpush3.msra.mxu0 %v3885_v34 }
0x1f01   :  { %4804 = vmatprep.subr.mxu0 %v5147_v1 }
0x1f03   :  { %v3969_v47 = vpop.permute.xlu1 %3968 }
0x1f09   :  { %v4935_v31 = vpop.eup %4934 }
0x1f0a   :  { %v3883_v15 = vmul.f32 %v4935_v31, %v4933_v55 }
0x1f0c   :  { %4802 = vmatmul.mubr.msk.f32.vlgmr.msra.gmra.mxu0 %vm953_vm3, %v3883_v15 }
0x1f0d   :  { %4805 = vmatpush3.msra.mxu0 %v5610_v46  ;;  %4812 = vmatprep.mubr.msk.f32.mxu0 %vm5148_vm0, %v5147_v1 }
0x1f0e   :  { %4806 = vmatprep.subr.mxu0 %v5147_v1 }
0x1f0f   :  { %4807 = vmatpush3.msra.mxu0 %v5612_v48  ;;  %v3976_v48 = vsel %vm953_vm3, %v3975_v63, %v3969_v47 }
0x1f10   :  { %4808 = vmatprep.subr.mxu0 %v5147_v1 }
0x1f11   :  { %4809 = vmatpush3.msra.mxu0 %v5616_v20 }
0x1f12   :  { %4810 = vmatprep.subr.mxu0 %v5147_v1 }
0x1f13   :  { %4811 = vmatpush3.msra.mxu0 %v5622_v6 }
0x1f14   :  { %4826 = vmatprep.subr.mxu0 %v5147_v1 }
0x1fcc   :  { %v3959_v33 = vpop.f32.mrf.mxu0 }
0x1fcd   :  { %3972 = vrot.lane.b32.xlu0 %v3959_v33, %s5162_s13 }
0x1fce   :  { %v4803_v46 = vpop.f32.mrf.mxu0 }
0x203f   :  { %v3973_v25 = vpop.permute.xlu0 %3972 }
0x2040   :  { %v3977_v20 = vsel %vm955_vm4, %v3976_v48, %v3973_v25 }
0x2041   :  { %4813 = vmatmul.mubr.msk.f32.vlgmr.msra.gmra.mxu0 %vm176_vm1, %v3977_v20 }
0x2042   :  { %4827 = vmatpush3.xpose.msk.msra.mxu0 %vm2146_vm5, %v5691_v4  ;;  %4834 = vmatprep.mubr.msk.f32.mxu0 %vm5148_vm0, %v5147_v1 }
0x2043   :  { %4828 = vmatprep.subr.mxu0 %v5147_v1 }
0x2046   :  { %4829 = vmatpush3.xpose.msk.msra.mxu0 %vm2146_vm5, %v5696_v5  ;;  %v4944_v5 = vld [vmem:[#allocation14 + $0x8] sm:$0x7f] }
0x2047   :  { %4830 = vmatprep.subr.mxu0 %v5147_v1  ;;  %v2145_v62 = vrot.slane %v4944_v5, %v1051_v23  ;;  %v2249_v19 = vrot.slane %v4944_v5, %v1056_v24  ;;  %v2254_v21 = vrot.slane %v4944_v5, %v1062_v41 }
0x204a   :  { %4831 = vmatpush3.xpose.msk.msra.mxu0 %vm2146_vm5, %v5701_v7 }
0x204b   :  { %4832 = vmatprep.subr.mxu0 %v5147_v1  ;;  %v2229_v1 = vadd.f32 %v5761_v56, %v2145_v62 }
0x204e   :  { %4833 = vmatpush3.xpose.msk.msra.mxu0 %vm2146_vm5, %v5706_v9  ;;  %v2232_v9 = vadd.f32 %v2229_v1, %v5671_v57 }
0x2101   :  { %v4047_v6 = vpop.f32.mrf.mxu0 }
0x2102   :  { %v4048_v4 = vadd.f32 %v4047_v6, %v5637_v10 }
0x2103   :  { %v4814_v28 = vpop.f32.mrf.mxu0 }
0x2104   :  { %v4051_v36 = vadd.f32 %v4048_v4, %v5836_v32  ;;  %v2233_v32 = vsel %vm176_vm1, %v2232_v9, 0.0 }
0x2106   :  { %v4052_v50 = vsel %vm176_vm1, %v4051_v36, 0.0 }
0x2107   :  { %4053 = vadd.xlane.f32.xlu1 %v4052_v50 }
0x2190   :  { %v4054_v42 = vpop.xlane.xlu1 %4053 }
0x2191   :  { %v4055_v7 = vmul.f32 0.03125, %v4054_v42 }
0x2193   :  { %v4056_v52 = vsub.f32 %v4051_v36, %v4055_v7 }
0x2195   :  { %v4057_v58 = vmul.f32 %v4056_v52, %v4056_v52 }
0x2197   :  { %v4058_v10 = vsel %vm176_vm1, %v4057_v58, 0.0 }
0x2198   :  { %4059 = vadd.xlane.f32.xlu0 %v4058_v10 }
0x219c   :  { %2234 = vadd.xlane.f32.xlu0 %v2233_v32 }
0x2221   :  { %v4060_v60 = vpop.xlane.xlu0 %4059 }
0x2222   :  { %v4061_v59 = vmul.f32 0.03125, %v4060_v60 }
0x2224   :  { %v4062_v61 = vadd.f32 1e-05, %v4061_v59 }
0x2225   :  { %v2235_v18 = vpop.xlane.xlu0 %2234 }
0x2226   :  { %4936 = vrsqrt.f32 %v4062_v61  ;;  %v2236_v23 = vmul.f32 0.03125, %v2235_v18 }
0x2228   :  { %v2237_v35 = vsub.f32 %v2232_v9, %v2236_v23 }
0x222a   :  { %v2238_v17 = vmul.f32 %v2237_v35, %v2237_v35 }
0x222c   :  { %v2239_v56 = vsel %vm176_vm1, %v2238_v17, 0.0 }
0x222d   :  { %2240 = vadd.xlane.f32.xlu0 %v2239_v56 }
0x2233   :  { %v4937_v27 = vpop.eup %4936 }
0x2234   :  { %v4064_v0 = vmul.f32 %v4937_v27, %v4056_v52 }
0x2236   :  { %v4065_v57 = vmul.f32 %v4064_v0, %v5662_v45 }
0x2238   :  { %v4066_v29 = vadd.f32 %v4065_v57, %v5667_v38 }
0x223a   :  { %4824 = vmatmul.mubr.msk.f32.vlgmr.msra.gmra.mxu1 %vm176_vm1, %v4066_v29 }
0x22b6   :  { %v2241_v43 = vpop.xlane.xlu0 %2240 }
0x22b7   :  { %v2242_v8 = vmul.f32 0.03125, %v2241_v43 }
0x22b9   :  { %v2243_v51 = vadd.f32 1e-05, %v2242_v8 }
0x22bb   :  { %4938 = vrsqrt.f32 %v2243_v51 }
0x22c8   :  { %v4939_v12 = vpop.eup %4938 }
0x22c9   :  { %v2245_v16 = vmul.f32 %v4939_v12, %v2237_v35 }
0x22cb   :  { %v2250_v13 = vmul.f32 %v2249_v19, %v2245_v16 }
0x22cd   :  { %v2255_v37 = vadd.f32 %v2254_v21, %v2250_v13 }
0x22cf   :  { %v2256_v45 = vsel %vm176_vm1, %v2255_v37, 0.0 }
0x22d0   :  { %2257 = vst [vmem:[#allocation16] sm:$0xff] %v2256_v45 }
0x22fa   :  { %v4136_v38 = vpop.f32.mrf.mxu1 }
0x22fb   :  { %v4137_v22 = vadd.f32 %v5714_v53, %v4136_v38 }
0x22fc   :  { %v4825_v39 = vpop.f32.mrf.mxu1 }
0x22fd   :  { %v4141_v26 = vmul.f32 0.70710677, %v4137_v22  ;;  %v4140_v3 = vmul.f32 0.5, %v4137_v22 }
0x22ff   :  { %4940 = verf.f32 %v4141_v26 }
0x230c   :  { %v4941_v44 = vpop.eup %4940 }
0x230d   :  { %v4143_v30 = vadd.f32 1.0, %v4941_v44 }
0x230f   :  { %v4144_v24 = vmul.f32 %v4143_v30, %v4140_v3 }
0x2311   :  { %4835 = vmatmul.mubr.msk.f32.vlgmr.msra.gmra.mxu0 %vm2146_vm5, %v4144_v24 }
0x23d1   :  { %v4214_v2 = vpop.f32.mrf.mxu0 }
0x23d2   :  { %v4215_v41 = vadd.f32 %v4214_v2, %v2145_v62 }
0x23d3   :  { %v4836_v49 = vpop.f32.mrf.mxu0 }
0x23d4   :  { %v4218_v54 = vadd.f32 %v4215_v41, %v4066_v29 }
0x23d6   :  { %v4219_v55 = vsel %vm176_vm1, %v4218_v54, 0.0 }
0x23d7   :  { %4220 = vadd.xlane.f32.xlu1 %v4219_v55 }
0x2460   :  { %v4221_v14 = vpop.xlane.xlu1 %4220 }
0x2461   :  { %v4222_v11 = vmul.f32 0.03125, %v4221_v14 }
0x2463   :  { %v4223_v34 = vsub.f32 %v4218_v54, %v4222_v11 }
0x2465   :  { %v4224_v53 = vmul.f32 %v4223_v34, %v4223_v34 }
0x2467   :  { %v4225_v31 = vsel %vm176_vm1, %v4224_v53, 0.0 }
0x2468   :  { %4226 = vadd.xlane.f32.xlu1 %v4225_v31 }
0x24f1   :  { %v4227_v15 = vpop.xlane.xlu1 %4226 }
0x24f2   :  { %v4228_v33 = vmul.f32 0.03125, %v4227_v15 }
0x24f4   :  { %v4229_v46 = vadd.f32 1e-05, %v4228_v33 }
0x24f6   :  { %4942 = vrsqrt.f32 %v4229_v46 }
0x2503   :  { %v4943_v40 = vpop.eup %4942 }
0x2504   :  { %v4231_v47 = vmul.f32 %v4943_v40, %v4223_v34 }
0x2506   :  { %v4232_v63 = vmul.f32 %v4231_v47, %v2249_v19 }
0x2508   :  { %v4233_v48 = vadd.f32 %v4232_v63, %v2254_v21 }
0x250a   :  { %v4234_v25 = vsel %vm176_vm1, %v4233_v48, 0.0 }
0x250b   :  { %4236 = vst [vmem:[#allocation16 + $0x8] sm:$0xff] %v4234_v25 }
0x250c   :  { %5116 = shalt.err (!%p5113_p2)
}
0x250d   :  { %4248 = dma.vmem_to_hbm [thread:$0]  %s4243_s17, 256, %s6022_s9, [#allocation4], %s5139_s14, %s5139_s14, %s5140_s15  }
0x250e   :  { %5135 = dma.done.wait [#allocation4], 256  }
0x250f   :  { %5136 = vsyncadd [#allocation4], 4294967040 }
0x2510   :  { %4252 = vsyncpa [#allocation3], 1 }
0x2511   :  { %4253 = vsyncpa [#allocation6], 1 }
0x2512   :  { %4254 = vsyncpa [#allocation9], 1 }
0x2513   :  { %4255 = vsyncpa [#allocation12], 1 }
0x2514   :  { %4256 = vsyncpa [#allocation15], 1 }
0x2515   :  { %4257 = vsyncpa [#allocation4], 1 }

</bundles_post_ra>
